<compile_context>
chip_gen: v7x
topology: tpu7x:2x2x1
jax: 0.10.0
libtpu: 0.0.40
codegen_flags: <defaults>
</compile_context>

<pallas_src>
import math

import jax
import jax.numpy as jnp
from jax.experimental import pallas as pl
from jax.experimental.pallas import tpu as pltpu

# ---------------- small config (PyTorch defaults scaled down) ----------------
B, T, S = 2, 3, 8
C    = 16      # chr_dim
SD   = 16      # stock_deter_dim
SS   = 32      # stock_stoch_dim
MD   = 16      # market_deter_dim
MS   = 32      # market_stoch_dim
A    = 32      # stock_aggr_dim
F    = 8       # factor_dim
NCLS = 8       # dist n_classes (SS % NCLS == 0, MS % NCLS == 0)
HID      = [32, 32]    # hidden arch of the small MLPs (torch default [128,128])
AGGR_HID = [32, 32]    # hidden arch of the aggregation encoder MLP

LANES       = 128
STOCK_SLAB  = 3 * SS + F + 1 + SD     # 121 -> padded to 128 lanes
MARKET_SLAB = 3 * MS + F + MD         # 120 -> padded to 128 lanes


def _round_up(x, m):
    return (x + m - 1) // m * m


def _uniform(key, shape, bound):
    return jax.random.uniform(key, shape, jnp.float32, -bound, bound)


# ----------------------- host-side parameter slab packing --------------------
class _Packer:
    """Packs all weight matrices / bias vectors of one kernel into two
    lane-128-padded f32 slabs (matrix slab + vector slab)."""

    def __init__(self):
        self._mats, self._vecs = [], []
        self._mrow, self._vrow = 0, 0

    def mat(self, a):
        a = jnp.asarray(a, jnp.float32)
        assert a.ndim == 2 and a.shape[1] <= LANES
        off = self._mrow
        self._mats.append((off, a))
        self._mrow += _round_up(a.shape[0], 8)
        return ('m', off, int(a.shape[0]), int(a.shape[1]))

    def vec(self, a):
        a = jnp.asarray(a, jnp.float32).reshape(-1)
        assert a.shape[0] <= LANES
        off = self._vrow
        self._vecs.append((off, a))
        self._vrow += 1
        return ('v', off, int(a.shape[0]))

    def finalize(self):
        w = jnp.zeros((_round_up(max(self._mrow, 8), 8), LANES), jnp.float32)
        for off, a in self._mats:
            w = w.at[off:off + a.shape[0], :a.shape[1]].set(a)
        v = jnp.zeros((_round_up(max(self._vrow, 8), 8), LANES), jnp.float32)
        for off, a in self._vecs:
            v = v.at[off, :a.shape[0]].set(a)
        return w, v


# in-kernel slab accessors (offsets are static Python ints baked at trace time)
def _m(w_ref, h):
    _, off, din, dout = h
    return w_ref[off:off + din, :dout]


def _v(v_ref, h):
    _, off, d = h
    return v_ref[off:off + 1, :d]


# ------------------------------ network builders ------------------------------
def _build_fused_mlp(key, pk, part_dims, branch_parts, hidden, branch_outs):
    """Pack one (optionally multi-branch, i.e. fused-sibling) torch-style MLP.

    Each branch b is the reference MLP with arch
      [sum of consumed part dims] + hidden + [branch_outs[b]]
    (Linear -> Tanh -> LayerNorm on hidden layers, plain Linear last).
    Branches are fused into block-diagonal weights (one matmul chain for the
    whole family); LayerNorm is applied per branch ("per half").  Layer 0 is
    stored split by input part so the kernel does partial matmuls instead of a
    lane-axis concat of its inputs.
    """
    nb = len(branch_outs)
    nlin = len(hidden) + 1
    kit = iter(jax.random.split(key, nb * nlin * 2))
    layers = []
    h0 = hidden[0]

    # ---- layer 0: per-input-part fused weights ----
    per_branch = []
    for bp in branch_parts:
        din_b = sum(pd for pd, use in zip(part_dims, bp) if use)
        bound = 1.0 / math.sqrt(din_b)
        per_branch.append((_uniform(next(kit), (din_b, h0), bound),
                           _uniform(next(kit), (h0,), bound)))
    w_parts = []
    for p, pd in enumerate(part_dims):
        wp = jnp.zeros((pd, h0 * nb), jnp.float32)
        for b in range(nb):
            if branch_parts[b][p]:
                roff = sum(part_dims[q] for q in range(p) if branch_parts[b][q])
                wp = wp.at[:, b * h0:(b + 1) * h0].set(per_branch[b][0][roff:roff + pd])
        w_parts.append(pk.mat(wp))
    layers.append({
        'w_parts': w_parts,
        'b': pk.vec(jnp.concatenate([pb[1] for pb in per_branch])),
        'ln': (pk.vec(jnp.ones((h0 * nb,))), pk.vec(jnp.zeros((h0 * nb,)))),
        'groups': nb,
    })

    # ---- hidden layers + final linear layer (block-diagonal across branches) ----
    prev = h0
    for li in range(1, nlin):
        is_last = li == nlin - 1
        outs = branch_outs if is_last else [hidden[li]] * nb
        w_full = jnp.zeros((prev * nb, sum(outs)), jnp.float32)
        biases = []
        bound = 1.0 / math.sqrt(prev)
        coff = 0
        for b in range(nb):
            w = _uniform(next(kit), (prev, outs[b]), bound)
            w_full = w_full.at[b * prev:(b + 1) * prev, coff:coff + outs[b]].set(w)
            biases.append(_uniform(next(kit), (outs[b],), bound))
            coff += outs[b]
        layer = {'w_parts': [pk.mat(w_full)],
                 'b': pk.vec(jnp.concatenate(biases)),
                 'ln': None, 'groups': nb}
        if not is_last:
            hw = hidden[li]
            layer['ln'] = (pk.vec(jnp.ones((hw * nb,))), pk.vec(jnp.zeros((hw * nb,))))
            prev = hw
        layers.append(layer)
    return {'layers': layers}


def _build_gru(key, pk, part_dims, h):
    """PyTorch GRU cell with fused gates: one (din,3H) input matmul (stored
    split by input part) and one (H,3H) hidden matmul."""
    ks = jax.random.split(key, 4)
    bound = 1.0 / math.sqrt(h)
    wi = _uniform(ks[0], (sum(part_dims), 3 * h), bound)
    wi_parts, off = [], 0
    for pd in part_dims:
        wi_parts.append(pk.mat(wi[off:off + pd]))
        off += pd
    return {'wi_parts': wi_parts,
            'wh': pk.mat(_uniform(ks[1], (h, 3 * h), bound)),
            'bi': pk.vec(_uniform(ks[2], (3 * h,), bound)),
            'bh': pk.vec(_uniform(ks[3], (3 * h,), bound)),
            'h': h}


# ------------------------- in-kernel compute helpers --------------------------
def _mlp_apply(w_ref, v_ref, net, x_parts):
    parts = x_parts
    for layer in net['layers']:
        y = _v(v_ref, layer['b'])
        for part, wh in zip(parts, layer['w_parts']):
            w = _m(w_ref, wh)
            if wh[2] == 1:     # din == 1 -> rank-1 term as a broadcast multiply
                y = y + part * w
            else:
                y = y + jnp.dot(part, w, preferred_element_type=jnp.float32)
        if layer['ln'] is not None:
            gh, bh = layer['ln']
            y = jnp.tanh(y)
            n, d = y.shape
            g = layer['groups']
            yg = y.reshape(n, g, d // g)            # per-branch LayerNorm
            mu = jnp.mean(yg, axis=-1, keepdims=True)
            var = jnp.mean(jnp.square(yg - mu), axis=-1, keepdims=True)
            yg = (yg - mu) * jax.lax.rsqrt(var + 1e-5)
            y = yg.reshape(n, d) * _v(v_ref, gh) + _v(v_ref, bh)
        parts = [y]
    return parts[0]


def _gru_apply(w_ref, v_ref, g, x_parts, h_prev):
    gi = _v(v_ref, g['bi'])
    for part, wh in zip(x_parts, g['wi_parts']):
        gi = gi + jnp.dot(part, _m(w_ref, wh), preferred_element_type=jnp.float32)
    gh = jnp.dot(h_prev, _m(w_ref, g['wh']),
                 preferred_element_type=jnp.float32) + _v(v_ref, g['bh'])
    h = g['h']
    r = jax.nn.sigmoid(gi[:, :h] + gh[:, :h])
    z = jax.nn.sigmoid(gi[:, h:2 * h] + gh[:, h:2 * h])
    n = jnp.tanh(gi[:, 2 * h:3 * h] + r * gh[:, 2 * h:3 * h])
    return (1.0 - z) * n + z * h_prev


def _grouped_softmax(logits, ncls):
    # TODO(synk): MultiCategoricalWithLogits mean assumed = per-group softmax probs.
    n, d = logits.shape
    x = logits.reshape(n, d // ncls, ncls)
    x = x - jnp.max(x, axis=-1, keepdims=True)
    e = jnp.exp(x)
    return (e / jnp.sum(e, axis=-1, keepdims=True)).reshape(n, d)


# -------------------- kernel 1: AttentionStockAggr over (B, T) ----------------
def _make_aggr_kernel(h):
    scale = 1.0 / math.sqrt(A)

    def kernel(chr_ref, ret_ref, w_ref, v_ref, o_ref):
        chr_g = chr_ref[0, 0]                                          # (S, C)
        ret_g = ret_ref[0, 0]                                          # (S, 1)
        emb = _mlp_apply(w_ref, v_ref, h['enc_mlp'], [chr_g, ret_g])   # (S, A)
        tok = _v(v_ref, h['aggr_token'])                               # (1, A)
        q = jnp.dot(tok, _m(w_ref, h['q_w']),
                    preferred_element_type=jnp.float32) + _v(v_ref, h['q_b'])
        kv = jnp.dot(emb, _m(w_ref, h['kv_w']),
                     preferred_element_type=jnp.float32) + _v(v_ref, h['kv_b'])
        k, v = kv[:, :A], kv[:, A:]                                    # (S, A) each
        s = jnp.sum(k * q, axis=-1, keepdims=True) * scale             # (S, 1)
        s = s - jnp.max(s, axis=0, keepdims=True)
        e = jnp.exp(s)
        attn = e / jnp.sum(e, axis=0, keepdims=True)
        ctx = jnp.sum(attn * v, axis=0, keepdims=True)                 # (1, A)
        o_ref[0, 0] = (jnp.dot(ctx, _m(w_ref, h['out_w']),
                               preferred_element_type=jnp.float32)
                       + _v(v_ref, h['out_b']))

    return kernel


def stock_aggr_forward(slabs, handles, chrs, rets):
    b, t, s, c = chrs.shape
    return pl.pallas_call(
        _make_aggr_kernel(handles),
        out_shape=jax.ShapeDtypeStruct((b, t, 1, A), jnp.float32),
        grid=(b, t),
        in_specs=[
            pl.BlockSpec((1, 1, s, c), lambda i, j: (i, j, 0, 0)),
            pl.BlockSpec((1, 1, s, 1), lambda i, j: (i, j, 0, 0)),
            pl.BlockSpec(slabs['aggr_w'].shape, lambda i, j: (0, 0)),
            pl.BlockSpec(slabs['aggr_v'].shape, lambda i, j: (0, 0)),
        ],
        out_specs=pl.BlockSpec((1, 1, 1, A), lambda i, j: (i, j, 0, 0)),
        compiler_params=pltpu.CompilerParams(
            dimension_semantics=("parallel", "parallel")),
    )(chrs, rets, slabs['aggr_w'], slabs['aggr_v'])


# ---------------- kernel 2: fused recurrence, grid = (B par, T arb) -----------
def _make_rec_kernel(h, s):
    def kernel(chr_ref, aggr_ref, w_ref, v_ref, stock_ref, market_ref,
               mh_scr, sh_scr):
        b = pl.program_id(0)
        t = pl.program_id(1)

        @pl.when(t == 0)
        def _():
            mh_scr[...] = jnp.broadcast_to(_v(v_ref, h['market_h0']), (1, MD))
            sh_scr[...] = jnp.broadcast_to(_v(v_ref, h['stock_h0']), (s, SD))

        chr_t = chr_ref[b, t]                  # (S, C)
        aggr_t = aggr_ref[b, t]                # (1, A)
        mh = mh_scr[...]                       # (1, MD)   market_hiddens[-1]
        sh = sh_scr[...]                       # (S, SD)   stock_hiddens[-1]

        # fused stock posterior|prior MLP -> (S, 2*SS)
        s_full = _mlp_apply(w_ref, v_ref, h['stock_net'], [chr_t, sh])
        stock_post, stock_prior = s_full[:, :SS], s_full[:, SS:2 * SS]

        # fused market posterior|prior MLP -> (1, 2*MS)
        m_full = _mlp_apply(w_ref, v_ref, h['market_net'], [aggr_t, mh])
        market_post, market_prior = m_full[:, :MS], m_full[:, MS:2 * MS]

        # deterministic (do_sample=False) path: distribution mean
        stock_sample = _grouped_softmax(stock_post, NCLS)              # (S, SS)
        market_sample = _grouped_softmax(market_post, NCLS)            # (1, MS)

        # fused beta|alpha heads -> (S, F+1)
        ba = _mlp_apply(w_ref, v_ref, h['ba_net'], [sh, stock_sample])
        beta, alpha = ba[:, :F], ba[:, F:F + 1]

        new_mh = _gru_apply(w_ref, v_ref, h['market_gru'],
                            [market_sample], mh)                        # (1, MD)
        factor = _mlp_apply(w_ref, v_ref, h['factor_net'],
                            [new_mh, market_sample])                    # (1, F)

        # stock GRU consumes the PRE-update market hidden (market_hiddens[-2]);
        # the (1,.) market terms broadcast over the S stocks inside the gates.
        new_sh = _gru_apply(w_ref, v_ref, h['stock_gru'],
                            [mh, market_sample, stock_sample], sh)      # (S, SD)

        mh_scr[...] = new_mh
        sh_scr[...] = new_sh

        # two lane-dense (128-wide) output slabs per step
        stock_ref[0, 0] = jnp.concatenate(
            [stock_prior, stock_post, stock_sample, beta, alpha, new_sh,
             jnp.zeros((s, LANES - STOCK_SLAB), jnp.float32)], axis=-1)
        market_ref[0, 0] = jnp.concatenate(
            [market_prior, market_post, market_sample, factor, new_mh,
             jnp.zeros((1, LANES - MARKET_SLAB), jnp.float32)], axis=-1)

    return kernel


def factor_recurrent_forward(slabs, handles, chrs, aggr):
    b, t, s, _ = chrs.shape
    return pl.pallas_call(
        _make_rec_kernel(handles, s),
        out_shape=(jax.ShapeDtypeStruct((b, t, s, LANES), jnp.float32),
                   jax.ShapeDtypeStruct((b, t, 1, LANES), jnp.float32)),
        grid=(b, t),
        in_specs=[
            # whole sequence + all weights stay VMEM-resident (constant specs);
            # current (b, t) is indexed inside the kernel.
            pl.BlockSpec(chrs.shape, lambda i, j: (0, 0, 0, 0)),
            pl.BlockSpec(aggr.shape, lambda i, j: (0, 0, 0, 0)),
            pl.BlockSpec(slabs['rec_w'].shape, lambda i, j: (0, 0)),
            pl.BlockSpec(slabs['rec_v'].shape, lambda i, j: (0, 0)),
        ],
        out_specs=(
            pl.BlockSpec((1, 1, s, LANES), lambda i, j: (i, j, 0, 0)),
            pl.BlockSpec((1, 1, 1, LANES), lambda i, j: (i, j, 0, 0)),
        ),
        scratch_shapes=[pltpu.VMEM((1, MD), jnp.float32),
                        pltpu.VMEM((s, SD), jnp.float32)],
        compiler_params=pltpu.CompilerParams(
            dimension_semantics=("parallel", "arbitrary")),
    )(chrs, aggr, slabs['rec_w'], slabs['rec_v'])


# ------------------------------ parameter init --------------------------------
def init_model(key):
    ka, kr = jax.random.split(key)

    # ---- aggregation kernel slabs (AttentionStockAggr) ----
    pk = _Packer()
    ks = jax.random.split(ka, 9)
    ah = {}
    ah['enc_mlp'] = _build_fused_mlp(ks[0], pk, [C, 1], [[True, True]], AGGR_HID, [A])
    ah['aggr_token'] = pk.vec(jnp.zeros((A,), jnp.float32))   # nn.Parameter(zeros)
    bound = 1.0 / math.sqrt(A)
    ah['q_w'] = pk.mat(_uniform(ks[1], (A, A), bound))
    ah['q_b'] = pk.vec(_uniform(ks[2], (A,), bound))
    ah['kv_w'] = pk.mat(jnp.concatenate(             # fused K|V projection
        [_uniform(ks[3], (A, A), bound), _uniform(ks[4], (A, A), bound)], axis=1))
    ah['kv_b'] = pk.vec(jnp.concatenate(
        [_uniform(ks[5], (A,), bound), _uniform(ks[6], (A,), bound)]))
    ah['out_w'] = pk.mat(_uniform(ks[7], (A, A), bound))
    ah['out_b'] = pk.vec(_uniform(ks[8], (A,), bound))
    aggr_w, aggr_v = pk.finalize()

    # ---- recurrent kernel slabs ----
    pk = _Packer()
    ks = jax.random.split(kr, 6)
    rh = {}
    rh['stock_net'] = _build_fused_mlp(       # posterior | prior
        ks[0], pk, [C, SD], [[True, True], [False, True]], HID, [SS, SS])
    rh['market_net'] = _build_fused_mlp(      # posterior | prior
        ks[1], pk, [A, MD], [[True, True], [False, True]], HID, [MS, MS])
    rh['ba_net'] = _build_fused_mlp(          # beta | alpha
        ks[2], pk, [SD, SS], [[True, True], [True, True]], HID, [F, 1])
    rh['factor_net'] = _build_fused_mlp(ks[3], pk, [MD, MS], [[True, True]], HID, [F])
    rh['market_gru'] = _build_gru(ks[4], pk, [MS], MD)
    rh['stock_gru'] = _build_gru(ks[5], pk, [MD, MS, SS], SD)
    rh['market_h0'] = pk.vec(jnp.zeros((MD,), jnp.float32))   # nn.Parameter(zeros)
    rh['stock_h0'] = pk.vec(jnp.zeros((SD,), jnp.float32))
    rec_w, rec_v = pk.finalize()

    slabs = {'aggr_w': aggr_w, 'aggr_v': aggr_v, 'rec_w': rec_w, 'rec_v': rec_v}
    handles = {'aggr': ah, 'rec': rh}
    return slabs, handles


# --------------------------------- forward ------------------------------------
def forward(slabs, handles, chrs, rets):
    bv, tv, sv, _ = chrs.shape

    aggr = stock_aggr_forward(slabs, handles['aggr'], chrs, rets)       # (B,T,1,A)
    stock_out, market_out = factor_recurrent_forward(
        slabs, handles['rec'], chrs, aggr)                              # slabs

    # slice the two lane-dense slabs back apart (wrapper-side, layout only)
    sp_prior = stock_out[..., 0:SS]
    sp_post  = stock_out[..., SS:2 * SS]
    sp_samp  = stock_out[..., 2 * SS:3 * SS]
    betas    = stock_out[..., 3 * SS:3 * SS + F]
    alphas   = stock_out[..., 3 * SS + F]
    sh_seq   = stock_out[..., 3 * SS + F + 1:3 * SS + F + 1 + SD]

    mp_prior = market_out[..., 0:MS]
    mp_post  = market_out[..., MS:2 * MS]
    mp_samp  = market_out[..., 2 * MS:3 * MS]
    factors  = market_out[:, :, 0, 3 * MS:3 * MS + F]
    mh_seq   = market_out[:, :, 0, 3 * MS + F:3 * MS + F + MD]

    # hidden-state lists include the (learned, zero-init) initial hidden, as in
    # the reference.
    mh0 = slabs['rec_v'][handles['rec']['market_h0'][1], :MD]
    sh0 = slabs['rec_v'][handles['rec']['stock_h0'][1], :SD]
    market_hiddens = jnp.concatenate(
        [jnp.broadcast_to(mh0, (bv, 1, MD)), mh_seq], axis=1)           # (B,T+1,MD)
    stock_hiddens = jnp.concatenate(
        [jnp.broadcast_to(sh0, (bv, 1, sv, SD)), sh_seq], axis=1)       # (B,T+1,S,SD)

    return {
        'factors': factors,                                  # (B, T, F)
        'betas': betas,                                      # (B, T, S, F)
        'alphas': alphas,                                    # (B, T, S)
        'stock_prior_params': sp_prior,                      # (B, T, S, SS)
        'stock_posterior_params': sp_post,                   # (B, T, S, SS)
        'stock_posterior_samples': sp_samp,                  # (B, T, S, SS)
        'market_prior_params': mp_prior,                     # (B, T, 1, MS)
        'market_posterior_params': mp_post,                  # (B, T, 1, MS)
        'market_posterior_samples': mp_samp,                 # (B, T, 1, MS)
        'stock_aggrs': aggr,                                 # (B, T, 1, A)
        'market_hiddens': market_hiddens,                    # (B, T+1, MD)
        'stock_hiddens': stock_hiddens,                      # (B, T+1, S, SD)
    }


# ----------------------------------- main --------------------------------------
if __name__ == "__main__":
    key = jax.random.PRNGKey(0)
    kp, kc, krt = jax.random.split(key, 3)
    slabs, handles = init_model(kp)
    chrs = jax.random.normal(kc, (B, T, S, C), jnp.float32)
    rets = jax.random.normal(krt, (B, T, S, 1), jnp.float32) * 0.1

    fwd = jax.jit(lambda sl, ch, rt: forward(sl, handles, ch, rt))
    out = jax.block_until_ready(fwd(slabs, chrs, rets))

    assert out['factors'].shape == (B, T, F)
    assert out['betas'].shape == (B, T, S, F)
    assert out['alphas'].shape == (B, T, S)
    assert out['stock_posterior_samples'].shape == (B, T, S, SS)
    assert out['market_posterior_samples'].shape == (B, T, 1, MS)
    assert out['stock_aggrs'].shape == (B, T, 1, A)
    assert out['market_hiddens'].shape == (B, T + 1, MD)
    assert out['stock_hiddens'].shape == (B, T + 1, S, SD)
    assert all(bool(jnp.all(jnp.isfinite(v))) for v in jax.tree_util.tree_leaves(out))

    print("KERNEL_OK")
</pallas_src>

<mosaic_0001>
module attributes {stable_mosaic.version = 11 : i64} {
  func.func @kernel(%arg0: i32, %arg1: i32, %arg2: memref<2x3x8x16xf32, #tpu.memory_space<vmem>>, %arg3: memref<2x3x1x32xf32, #tpu.memory_space<vmem>>, %arg4: memref<768x128xf32, #tpu.memory_space<vmem>>, %arg5: memref<40x128xf32, #tpu.memory_space<vmem>>, %arg6: memref<1x1x8x128xf32, #tpu.memory_space<vmem>>, %arg7: memref<1x1x1x128xf32, #tpu.memory_space<vmem>>, %arg8: memref<1x16xf32, #tpu.memory_space<vmem>>, %arg9: memref<8x16xf32, #tpu.memory_space<vmem>>) attributes {dimension_semantics = [#tpu.dimension_semantics<parallel>, #tpu.dimension_semantics<arbitrary>], iteration_bounds = array<i64: 2, 3>, scalar_prefetch = 0 : i64, scratch_operands = 2 : i64, tpu.core_type = #tpu.core_type<tc>, window_params = [{pipeline_mode = #tpu.pipeline_mode<synchronous>, transform_indices = @transform_0, window_bounds = array<i64: 2, 3, 8, 16>}, {pipeline_mode = #tpu.pipeline_mode<synchronous>, transform_indices = @transform_1, window_bounds = array<i64: 2, 3, 1, 32>}, {pipeline_mode = #tpu.pipeline_mode<synchronous>, transform_indices = @transform_2, window_bounds = array<i64: 768, 128>}, {pipeline_mode = #tpu.pipeline_mode<synchronous>, transform_indices = @transform_3, window_bounds = array<i64: 40, 128>}, {transform_indices = @transform_4, window_bounds = array<i64: 1, 1, 8, 128>}, {transform_indices = @transform_5, window_bounds = array<i64: 1, 1, 1, 128>}]} {
    %c0_i32 = arith.constant 0 : i32
    %0 = arith.cmpi eq, %arg1, %c0_i32 : i32
    %1 = arith.extui %0 : i1 to i32
    %c0_i32_0 = arith.constant 0 : i32
    %2 = arith.cmpi ne, %1, %c0_i32_0 : i32
    scf.if %2 {
      %c32_150 = arith.constant 32 : index
      %c0_151 = arith.constant 0 : index
      %403 = vector.load %arg5[%c32_150, %c0_151] : memref<40x128xf32, #tpu.memory_space<vmem>>, vector<1x16xf32>
      %c0_152 = arith.constant 0 : index
      %c0_153 = arith.constant 0 : index
      %404 = vector.load %arg8[%c0_152, %c0_153] : memref<1x16xf32, #tpu.memory_space<vmem>>, vector<1x16xf32>
      tpu.vector_store %arg8[%c0_152, %c0_153], %403 {strides = array<i32>} : memref<1x16xf32, #tpu.memory_space<vmem>>, vector<1x16xf32>,
      %c33 = arith.constant 33 : index
      %c0_154 = arith.constant 0 : index
      %405 = vector.load %arg5[%c33, %c0_154] : memref<40x128xf32, #tpu.memory_space<vmem>>, vector<1x16xf32>
      %406 = vector.shape_cast %405 : vector<1x16xf32> to vector<1x16xf32>
      %407 = vector.broadcast %406 : vector<1x16xf32> to vector<8x16xf32>
      %c0_155 = arith.constant 0 : index
      %c0_156 = arith.constant 0 : index
      %408 = vector.load %arg9[%c0_155, %c0_156] : memref<8x16xf32, #tpu.memory_space<vmem>>, vector<8x16xf32>
      tpu.vector_store %arg9[%c0_155, %c0_156], %407 {strides = array<i32>} : memref<8x16xf32, #tpu.memory_space<vmem>>, vector<8x16xf32>,
    } else {
    }
    %3 = arith.index_cast %arg0 : i32 to index
    %4 = arith.index_cast %arg1 : i32 to index
    %c0 = arith.constant 0 : index
    %c0_1 = arith.constant 0 : index
    %5 = vector.load %arg2[%3, %4, %c0, %c0_1] : memref<2x3x8x16xf32, #tpu.memory_space<vmem>>, vector<1x1x8x16xf32>
    %6 = vector.shape_cast %5 : vector<1x1x8x16xf32> to vector<8x16xf32>
    %7 = arith.index_cast %arg0 : i32 to index
    %8 = arith.index_cast %arg1 : i32 to index
    %c0_2 = arith.constant 0 : index
    %c0_3 = arith.constant 0 : index
    %9 = vector.load %arg3[%7, %8, %c0_2, %c0_3] : memref<2x3x1x32xf32, #tpu.memory_space<vmem>>, vector<1x1x1x32xf32>
    %10 = vector.shape_cast %9 : vector<1x1x1x32xf32> to vector<1x32xf32>
    %c0_4 = arith.constant 0 : index
    %c0_5 = arith.constant 0 : index
    %11 = vector.load %arg8[%c0_4, %c0_5] : memref<1x16xf32, #tpu.memory_space<vmem>>, vector<1x16xf32>
    %c0_6 = arith.constant 0 : index
    %c0_7 = arith.constant 0 : index
    %12 = vector.load %arg9[%c0_6, %c0_7] : memref<8x16xf32, #tpu.memory_space<vmem>>, vector<8x16xf32>
    %c0_8 = arith.constant 0 : index
    %c0_9 = arith.constant 0 : index
    %13 = vector.load %arg5[%c0_8, %c0_9] : memref<40x128xf32, #tpu.memory_space<vmem>>, vector<1x64xf32>
    %c0_10 = arith.constant 0 : index
    %c0_11 = arith.constant 0 : index
    %14 = vector.load %arg4[%c0_10, %c0_11] : memref<768x128xf32, #tpu.memory_space<vmem>>, vector<16x64xf32>
    %cst = arith.constant dense<0.000000e+00> : vector<8x64xf32>
    %15 = tpu.matmul %6, %14, %cst {dimension_numbers = #tpu.dot_dimension_numbers<[1], [0], [0], [1], [0, 0, 1, 1], [], []>} : vector<8x16xf32>, vector<16x64xf32>, vector<8x64xf32> -> vector<8x64xf32>
    %16 = vector.broadcast %13 : vector<1x64xf32> to vector<8x64xf32>
    %17 = arith.addf %16, %15 : vector<8x64xf32>
    %c16 = arith.constant 16 : index
    %c0_12 = arith.constant 0 : index
    %18 = vector.load %arg4[%c16, %c0_12] : memref<768x128xf32, #tpu.memory_space<vmem>>, vector<16x64xf32>
    %cst_13 = arith.constant dense<0.000000e+00> : vector<8x64xf32>
    %19 = tpu.matmul %12, %18, %cst_13 {dimension_numbers = #tpu.dot_dimension_numbers<[1], [0], [0], [1], [0, 0, 1, 1], [], []>} : vector<8x16xf32>, vector<16x64xf32>, vector<8x64xf32> -> vector<8x64xf32>
    %20 = arith.addf %17, %19 : vector<8x64xf32>
    %21 = math.tanh %20 : vector<8x64xf32>
    %22 = vector.shape_cast %21 : vector<8x64xf32> to vector<8x2x32xf32>
    %cst_14 = arith.constant dense<0.000000e+00> : vector<8x2xf32>
    %23 = vector.multi_reduction <add>, %22, %cst_14 [2] : vector<8x2x32xf32> to vector<8x2xf32>
    %24 = vector.shape_cast %23 : vector<8x2xf32> to vector<8x2x1xf32>
    %cst_15 = arith.constant 3.200000e+01 : f32
    %25 = vector.broadcast %cst_15 : f32 to vector<8x2x1xf32>
    %26 = arith.divf %24, %25 : vector<8x2x1xf32>
    %27 = vector.broadcast %26 : vector<8x2x1xf32> to vector<8x2x32xf32>
    %28 = arith.subf %22, %27 : vector<8x2x32xf32>
    %29 = arith.mulf %28, %28 : vector<8x2x32xf32>
    %cst_16 = arith.constant dense<0.000000e+00> : vector<8x2xf32>
    %30 = vector.multi_reduction <add>, %29, %cst_16 [2] : vector<8x2x32xf32> to vector<8x2xf32>
    %31 = vector.shape_cast %30 : vector<8x2xf32> to vector<8x2x1xf32>
    %cst_17 = arith.constant 3.200000e+01 : f32
    %32 = vector.broadcast %cst_17 : f32 to vector<8x2x1xf32>
    %33 = arith.divf %31, %32 : vector<8x2x1xf32>
    %34 = vector.broadcast %26 : vector<8x2x1xf32> to vector<8x2x32xf32>
    %35 = arith.subf %22, %34 : vector<8x2x32xf32>
    %cst_18 = arith.constant 9.99999974E-6 : f32
    %36 = vector.broadcast %cst_18 : f32 to vector<8x2x1xf32>
    %37 = arith.addf %33, %36 : vector<8x2x1xf32>
    %38 = math.rsqrt %37 : vector<8x2x1xf32>
    %39 = vector.broadcast %38 : vector<8x2x1xf32> to vector<8x2x32xf32>
    %40 = arith.mulf %35, %39 : vector<8x2x32xf32>
    %41 = vector.shape_cast %40 : vector<8x2x32xf32> to vector<8x64xf32>
    %c1 = arith.constant 1 : index
    %c0_19 = arith.constant 0 : index
    %42 = vector.load %arg5[%c1, %c0_19] : memref<40x128xf32, #tpu.memory_space<vmem>>, vector<1x64xf32>
    %43 = vector.broadcast %42 : vector<1x64xf32> to vector<8x64xf32>
    %44 = arith.mulf %41, %43 : vector<8x64xf32>
    %c2 = arith.constant 2 : index
    %c0_20 = arith.constant 0 : index
    %45 = vector.load %arg5[%c2, %c0_20] : memref<40x128xf32, #tpu.memory_space<vmem>>, vector<1x64xf32>
    %46 = vector.broadcast %45 : vector<1x64xf32> to vector<8x64xf32>
    %47 = arith.addf %44, %46 : vector<8x64xf32>
    %c3 = arith.constant 3 : index
    %c0_21 = arith.constant 0 : index
    %48 = vector.load %arg5[%c3, %c0_21] : memref<40x128xf32, #tpu.memory_space<vmem>>, vector<1x64xf32>
    %c32 = arith.constant 32 : index
    %c0_22 = arith.constant 0 : index
    %49 = vector.load %arg4[%c32, %c0_22] : memref<768x128xf32, #tpu.memory_space<vmem>>, vector<64x64xf32>
    %cst_23 = arith.constant dense<0.000000e+00> : vector<8x64xf32>
    %50 = tpu.matmul %47, %49, %cst_23 {dimension_numbers = #tpu.dot_dimension_numbers<[1], [0], [0], [1], [0, 0, 1, 1], [], []>} : vector<8x64xf32>, vector<64x64xf32>, vector<8x64xf32> -> vector<8x64xf32>
    %51 = vector.broadcast %48 : vector<1x64xf32> to vector<8x64xf32>
    %52 = arith.addf %51, %50 : vector<8x64xf32>
    %53 = math.tanh %52 : vector<8x64xf32>
    %54 = vector.shape_cast %53 : vector<8x64xf32> to vector<8x2x32xf32>
    %cst_24 = arith.constant dense<0.000000e+00> : vector<8x2xf32>
    %55 = vector.multi_reduction <add>, %54, %cst_24 [2] : vector<8x2x32xf32> to vector<8x2xf32>
    %56 = vector.shape_cast %55 : vector<8x2xf32> to vector<8x2x1xf32>
    %cst_25 = arith.constant 3.200000e+01 : f32
    %57 = vector.broadcast %cst_25 : f32 to vector<8x2x1xf32>
    %58 = arith.divf %56, %57 : vector<8x2x1xf32>
    %59 = vector.broadcast %58 : vector<8x2x1xf32> to vector<8x2x32xf32>
    %60 = arith.subf %54, %59 : vector<8x2x32xf32>
    %61 = arith.mulf %60, %60 : vector<8x2x32xf32>
    %cst_26 = arith.constant dense<0.000000e+00> : vector<8x2xf32>
    %62 = vector.multi_reduction <add>, %61, %cst_26 [2] : vector<8x2x32xf32> to vector<8x2xf32>
    %63 = vector.shape_cast %62 : vector<8x2xf32> to vector<8x2x1xf32>
    %cst_27 = arith.constant 3.200000e+01 : f32
    %64 = vector.broadcast %cst_27 : f32 to vector<8x2x1xf32>
    %65 = arith.divf %63, %64 : vector<8x2x1xf32>
    %66 = vector.broadcast %58 : vector<8x2x1xf32> to vector<8x2x32xf32>
    %67 = arith.subf %54, %66 : vector<8x2x32xf32>
    %cst_28 = arith.constant 9.99999974E-6 : f32
    %68 = vector.broadcast %cst_28 : f32 to vector<8x2x1xf32>
    %69 = arith.addf %65, %68 : vector<8x2x1xf32>
    %70 = math.rsqrt %69 : vector<8x2x1xf32>
    %71 = vector.broadcast %70 : vector<8x2x1xf32> to vector<8x2x32xf32>
    %72 = arith.mulf %67, %71 : vector<8x2x32xf32>
    %73 = vector.shape_cast %72 : vector<8x2x32xf32> to vector<8x64xf32>
    %c4 = arith.constant 4 : index
    %c0_29 = arith.constant 0 : index
    %74 = vector.load %arg5[%c4, %c0_29] : memref<40x128xf32, #tpu.memory_space<vmem>>, vector<1x64xf32>
    %75 = vector.broadcast %74 : vector<1x64xf32> to vector<8x64xf32>
    %76 = arith.mulf %73, %75 : vector<8x64xf32>
    %c5 = arith.constant 5 : index
    %c0_30 = arith.constant 0 : index
    %77 = vector.load %arg5[%c5, %c0_30] : memref<40x128xf32, #tpu.memory_space<vmem>>, vector<1x64xf32>
    %78 = vector.broadcast %77 : vector<1x64xf32> to vector<8x64xf32>
    %79 = arith.addf %76, %78 : vector<8x64xf32>
    %c6 = arith.constant 6 : index
    %c0_31 = arith.constant 0 : index
    %80 = vector.load %arg5[%c6, %c0_31] : memref<40x128xf32, #tpu.memory_space<vmem>>, vector<1x64xf32>
    %c96 = arith.constant 96 : index
    %c0_32 = arith.constant 0 : index
    %81 = vector.load %arg4[%c96, %c0_32] : memref<768x128xf32, #tpu.memory_space<vmem>>, vector<64x64xf32>
    %cst_33 = arith.constant dense<0.000000e+00> : vector<8x64xf32>
    %82 = tpu.matmul %79, %81, %cst_33 {dimension_numbers = #tpu.dot_dimension_numbers<[1], [0], [0], [1], [0, 0, 1, 1], [], []>} : vector<8x64xf32>, vector<64x64xf32>, vector<8x64xf32> -> vector<8x64xf32>
    %83 = vector.broadcast %80 : vector<1x64xf32> to vector<8x64xf32>
    %84 = arith.addf %83, %82 : vector<8x64xf32>
    %85 = vector.extract_strided_slice %84 {offsets = [0, 0], sizes = [8, 32], strides = [1, 1]} : vector<8x64xf32> to vector<8x32xf32>
    %86 = vector.extract_strided_slice %84 {offsets = [0, 32], sizes = [8, 32], strides = [1, 1]} : vector<8x64xf32> to vector<8x32xf32>
    %c7 = arith.constant 7 : index
    %c0_34 = arith.constant 0 : index
    %87 = vector.load %arg5[%c7, %c0_34] : memref<40x128xf32, #tpu.memory_space<vmem>>, vector<1x64xf32>
    %c160 = arith.constant 160 : index
    %c0_35 = arith.constant 0 : index
    %88 = vector.load %arg4[%c160, %c0_35] : memref<768x128xf32, #tpu.memory_space<vmem>>, vector<32x64xf32>
    %cst_36 = arith.constant dense<0.000000e+00> : vector<1x64xf32>
    %89 = tpu.matmul %10, %88, %cst_36 {dimension_numbers = #tpu.dot_dimension_numbers<[1], [0], [0], [1], [0, 0, 1, 1], [], []>} : vector<1x32xf32>, vector<32x64xf32>, vector<1x64xf32> -> vector<1x64xf32>
    %90 = arith.addf %87, %89 : vector<1x64xf32>
    %c192 = arith.constant 192 : index
    %c0_37 = arith.constant 0 : index
    %91 = vector.load %arg4[%c192, %c0_37] : memref<768x128xf32, #tpu.memory_space<vmem>>, vector<16x64xf32>
    %cst_38 = arith.constant dense<0.000000e+00> : vector<1x64xf32>
    %92 = tpu.matmul %11, %91, %cst_38 {dimension_numbers = #tpu.dot_dimension_numbers<[1], [0], [0], [1], [0, 0, 1, 1], [], []>} : vector<1x16xf32>, vector<16x64xf32>, vector<1x64xf32> -> vector<1x64xf32>
    %93 = arith.addf %90, %92 : vector<1x64xf32>
    %94 = math.tanh %93 : vector<1x64xf32>
    %95 = vector.shape_cast %94 : vector<1x64xf32> to vector<1x2x32xf32>
    %cst_39 = arith.constant dense<0.000000e+00> : vector<1x2xf32>
    %96 = vector.multi_reduction <add>, %95, %cst_39 [2] : vector<1x2x32xf32> to vector<1x2xf32>
    %97 = vector.shape_cast %96 : vector<1x2xf32> to vector<1x2x1xf32>
    %cst_40 = arith.constant 3.200000e+01 : f32
    %98 = vector.broadcast %cst_40 : f32 to vector<1x2x1xf32>
    %99 = arith.divf %97, %98 : vector<1x2x1xf32>
    %100 = vector.broadcast %99 : vector<1x2x1xf32> to vector<1x2x32xf32>
    %101 = arith.subf %95, %100 : vector<1x2x32xf32>
    %102 = arith.mulf %101, %101 : vector<1x2x32xf32>
    %cst_41 = arith.constant dense<0.000000e+00> : vector<1x2xf32>
    %103 = vector.multi_reduction <add>, %102, %cst_41 [2] : vector<1x2x32xf32> to vector<1x2xf32>
    %104 = vector.shape_cast %103 : vector<1x2xf32> to vector<1x2x1xf32>
    %cst_42 = arith.constant 3.200000e+01 : f32
    %105 = vector.broadcast %cst_42 : f32 to vector<1x2x1xf32>
    %106 = arith.divf %104, %105 : vector<1x2x1xf32>
    %107 = vector.broadcast %99 : vector<1x2x1xf32> to vector<1x2x32xf32>
    %108 = arith.subf %95, %107 : vector<1x2x32xf32>
    %cst_43 = arith.constant 9.99999974E-6 : f32
    %109 = vector.broadcast %cst_43 : f32 to vector<1x2x1xf32>
    %110 = arith.addf %106, %109 : vector<1x2x1xf32>
    %111 = math.rsqrt %110 : vector<1x2x1xf32>
    %112 = vector.broadcast %111 : vector<1x2x1xf32> to vector<1x2x32xf32>
    %113 = arith.mulf %108, %112 : vector<1x2x32xf32>
    %114 = vector.shape_cast %113 : vector<1x2x32xf32> to vector<1x64xf32>
    %c8 = arith.constant 8 : index
    %c0_44 = arith.constant 0 : index
    %115 = vector.load %arg5[%c8, %c0_44] : memref<40x128xf32, #tpu.memory_space<vmem>>, vector<1x64xf32>
    %116 = arith.mulf %114, %115 : vector<1x64xf32>
    %c9 = arith.constant 9 : index
    %c0_45 = arith.constant 0 : index
    %117 = vector.load %arg5[%c9, %c0_45] : memref<40x128xf32, #tpu.memory_space<vmem>>, vector<1x64xf32>
    %118 = arith.addf %116, %117 : vector<1x64xf32>
    %c10 = arith.constant 10 : index
    %c0_46 = arith.constant 0 : index
    %119 = vector.load %arg5[%c10, %c0_46] : memref<40x128xf32, #tpu.memory_space<vmem>>, vector<1x64xf32>
    %c208 = arith.constant 208 : index
    %c0_47 = arith.constant 0 : index
    %120 = vector.load %arg4[%c208, %c0_47] : memref<768x128xf32, #tpu.memory_space<vmem>>, vector<64x64xf32>
    %cst_48 = arith.constant dense<0.000000e+00> : vector<1x64xf32>
    %121 = tpu.matmul %118, %120, %cst_48 {dimension_numbers = #tpu.dot_dimension_numbers<[1], [0], [0], [1], [0, 0, 1, 1], [], []>} : vector<1x64xf32>, vector<64x64xf32>, vector<1x64xf32> -> vector<1x64xf32>
    %122 = arith.addf %119, %121 : vector<1x64xf32>
    %123 = math.tanh %122 : vector<1x64xf32>
    %124 = vector.shape_cast %123 : vector<1x64xf32> to vector<1x2x32xf32>
    %cst_49 = arith.constant dense<0.000000e+00> : vector<1x2xf32>
    %125 = vector.multi_reduction <add>, %124, %cst_49 [2] : vector<1x2x32xf32> to vector<1x2xf32>
    %126 = vector.shape_cast %125 : vector<1x2xf32> to vector<1x2x1xf32>
    %cst_50 = arith.constant 3.200000e+01 : f32
    %127 = vector.broadcast %cst_50 : f32 to vector<1x2x1xf32>
    %128 = arith.divf %126, %127 : vector<1x2x1xf32>
    %129 = vector.broadcast %128 : vector<1x2x1xf32> to vector<1x2x32xf32>
    %130 = arith.subf %124, %129 : vector<1x2x32xf32>
    %131 = arith.mulf %130, %130 : vector<1x2x32xf32>
    %cst_51 = arith.constant dense<0.000000e+00> : vector<1x2xf32>
    %132 = vector.multi_reduction <add>, %131, %cst_51 [2] : vector<1x2x32xf32> to vector<1x2xf32>
    %133 = vector.shape_cast %132 : vector<1x2xf32> to vector<1x2x1xf32>
    %cst_52 = arith.constant 3.200000e+01 : f32
    %134 = vector.broadcast %cst_52 : f32 to vector<1x2x1xf32>
    %135 = arith.divf %133, %134 : vector<1x2x1xf32>
    %136 = vector.broadcast %128 : vector<1x2x1xf32> to vector<1x2x32xf32>
    %137 = arith.subf %124, %136 : vector<1x2x32xf32>
    %cst_53 = arith.constant 9.99999974E-6 : f32
    %138 = vector.broadcast %cst_53 : f32 to vector<1x2x1xf32>
    %139 = arith.addf %135, %138 : vector<1x2x1xf32>
    %140 = math.rsqrt %139 : vector<1x2x1xf32>
    %141 = vector.broadcast %140 : vector<1x2x1xf32> to vector<1x2x32xf32>
    %142 = arith.mulf %137, %141 : vector<1x2x32xf32>
    %143 = vector.shape_cast %142 : vector<1x2x32xf32> to vector<1x64xf32>
    %c11 = arith.constant 11 : index
    %c0_54 = arith.constant 0 : index
    %144 = vector.load %arg5[%c11, %c0_54] : memref<40x128xf32, #tpu.memory_space<vmem>>, vector<1x64xf32>
    %145 = arith.mulf %143, %144 : vector<1x64xf32>
    %c12 = arith.constant 12 : index
    %c0_55 = arith.constant 0 : index
    %146 = vector.load %arg5[%c12, %c0_55] : memref<40x128xf32, #tpu.memory_space<vmem>>, vector<1x64xf32>
    %147 = arith.addf %145, %146 : vector<1x64xf32>
    %c13 = arith.constant 13 : index
    %c0_56 = arith.constant 0 : index
    %148 = vector.load %arg5[%c13, %c0_56] : memref<40x128xf32, #tpu.memory_space<vmem>>, vector<1x64xf32>
    %c272 = arith.constant 272 : index
    %c0_57 = arith.constant 0 : index
    %149 = vector.load %arg4[%c272, %c0_57] : memref<768x128xf32, #tpu.memory_space<vmem>>, vector<64x64xf32>
    %cst_58 = arith.constant dense<0.000000e+00> : vector<1x64xf32>
    %150 = tpu.matmul %147, %149, %cst_58 {dimension_numbers = #tpu.dot_dimension_numbers<[1], [0], [0], [1], [0, 0, 1, 1], [], []>} : vector<1x64xf32>, vector<64x64xf32>, vector<1x64xf32> -> vector<1x64xf32>
    %151 = arith.addf %148, %150 : vector<1x64xf32>
    %152 = vector.extract_strided_slice %151 {offsets = [0, 0], sizes = [1, 32], strides = [1, 1]} : vector<1x64xf32> to vector<1x32xf32>
    %153 = vector.extract_strided_slice %151 {offsets = [0, 32], sizes = [1, 32], strides = [1, 1]} : vector<1x64xf32> to vector<1x32xf32>
    %154 = vector.shape_cast %85 : vector<8x32xf32> to vector<8x4x8xf32>
    %cst_59 = arith.constant dense<0xFF800000> : vector<8x4xf32>
    %155 = vector.multi_reduction <maximumf>, %154, %cst_59 [2] : vector<8x4x8xf32> to vector<8x4xf32>
    %156 = vector.shape_cast %155 : vector<8x4xf32> to vector<8x4x1xf32>
    %157 = vector.broadcast %156 : vector<8x4x1xf32> to vector<8x4x8xf32>
    %158 = arith.subf %154, %157 : vector<8x4x8xf32>
    %159 = math.exp %158 : vector<8x4x8xf32>
    %cst_60 = arith.constant dense<0.000000e+00> : vector<8x4xf32>
    %160 = vector.multi_reduction <add>, %159, %cst_60 [2] : vector<8x4x8xf32> to vector<8x4xf32>
    %161 = vector.shape_cast %160 : vector<8x4xf32> to vector<8x4x1xf32>
    %162 = vector.broadcast %161 : vector<8x4x1xf32> to vector<8x4x8xf32>
    %163 = arith.divf %159, %162 : vector<8x4x8xf32>
    %164 = vector.shape_cast %163 : vector<8x4x8xf32> to vector<8x32xf32>
    %165 = vector.shape_cast %152 : vector<1x32xf32> to vector<1x4x8xf32>
    %cst_61 = arith.constant dense<0xFF800000> : vector<1x4xf32>
    %166 = vector.multi_reduction <maximumf>, %165, %cst_61 [2] : vector<1x4x8xf32> to vector<1x4xf32>
    %167 = vector.shape_cast %166 : vector<1x4xf32> to vector<1x4x1xf32>
    %168 = vector.broadcast %167 : vector<1x4x1xf32> to vector<1x4x8xf32>
    %169 = arith.subf %165, %168 : vector<1x4x8xf32>
    %170 = math.exp %169 : vector<1x4x8xf32>
    %cst_62 = arith.constant dense<0.000000e+00> : vector<1x4xf32>
    %171 = vector.multi_reduction <add>, %170, %cst_62 [2] : vector<1x4x8xf32> to vector<1x4xf32>
    %172 = vector.shape_cast %171 : vector<1x4xf32> to vector<1x4x1xf32>
    %173 = vector.broadcast %172 : vector<1x4x1xf32> to vector<1x4x8xf32>
    %174 = arith.divf %170, %173 : vector<1x4x8xf32>
    %175 = vector.shape_cast %174 : vector<1x4x8xf32> to vector<1x32xf32>
    %c14 = arith.constant 14 : index
    %c0_63 = arith.constant 0 : index
    %176 = vector.load %arg5[%c14, %c0_63] : memref<40x128xf32, #tpu.memory_space<vmem>>, vector<1x64xf32>
    %c336 = arith.constant 336 : index
    %c0_64 = arith.constant 0 : index
    %177 = vector.load %arg4[%c336, %c0_64] : memref<768x128xf32, #tpu.memory_space<vmem>>, vector<16x64xf32>
    %cst_65 = arith.constant dense<0.000000e+00> : vector<8x64xf32>
    %178 = tpu.matmul %12, %177, %cst_65 {dimension_numbers = #tpu.dot_dimension_numbers<[1], [0], [0], [1], [0, 0, 1, 1], [], []>} : vector<8x16xf32>, vector<16x64xf32>, vector<8x64xf32> -> vector<8x64xf32>
    %179 = vector.broadcast %176 : vector<1x64xf32> to vector<8x64xf32>
    %180 = arith.addf %179, %178 : vector<8x64xf32>
    %c352 = arith.constant 352 : index
    %c0_66 = arith.constant 0 : index
    %181 = vector.load %arg4[%c352, %c0_66] : memref<768x128xf32, #tpu.memory_space<vmem>>, vector<32x64xf32>
    %cst_67 = arith.constant dense<0.000000e+00> : vector<8x64xf32>
    %182 = tpu.matmul %164, %181, %cst_67 {dimension_numbers = #tpu.dot_dimension_numbers<[1], [0], [0], [1], [0, 0, 1, 1], [], []>} : vector<8x32xf32>, vector<32x64xf32>, vector<8x64xf32> -> vector<8x64xf32>
    %183 = arith.addf %180, %182 : vector<8x64xf32>
    %184 = math.tanh %183 : vector<8x64xf32>
    %185 = vector.shape_cast %184 : vector<8x64xf32> to vector<8x2x32xf32>
    %cst_68 = arith.constant dense<0.000000e+00> : vector<8x2xf32>
    %186 = vector.multi_reduction <add>, %185, %cst_68 [2] : vector<8x2x32xf32> to vector<8x2xf32>
    %187 = vector.shape_cast %186 : vector<8x2xf32> to vector<8x2x1xf32>
    %cst_69 = arith.constant 3.200000e+01 : f32
    %188 = vector.broadcast %cst_69 : f32 to vector<8x2x1xf32>
    %189 = arith.divf %187, %188 : vector<8x2x1xf32>
    %190 = vector.broadcast %189 : vector<8x2x1xf32> to vector<8x2x32xf32>
    %191 = arith.subf %185, %190 : vector<8x2x32xf32>
    %192 = arith.mulf %191, %191 : vector<8x2x32xf32>
    %cst_70 = arith.constant dense<0.000000e+00> : vector<8x2xf32>
    %193 = vector.multi_reduction <add>, %192, %cst_70 [2] : vector<8x2x32xf32> to vector<8x2xf32>
    %194 = vector.shape_cast %193 : vector<8x2xf32> to vector<8x2x1xf32>
    %cst_71 = arith.constant 3.200000e+01 : f32
    %195 = vector.broadcast %cst_71 : f32 to vector<8x2x1xf32>
    %196 = arith.divf %194, %195 : vector<8x2x1xf32>
    %197 = vector.broadcast %189 : vector<8x2x1xf32> to vector<8x2x32xf32>
    %198 = arith.subf %185, %197 : vector<8x2x32xf32>
    %cst_72 = arith.constant 9.99999974E-6 : f32
    %199 = vector.broadcast %cst_72 : f32 to vector<8x2x1xf32>
    %200 = arith.addf %196, %199 : vector<8x2x1xf32>
    %201 = math.rsqrt %200 : vector<8x2x1xf32>
    %202 = vector.broadcast %201 : vector<8x2x1xf32> to vector<8x2x32xf32>
    %203 = arith.mulf %198, %202 : vector<8x2x32xf32>
    %204 = vector.shape_cast %203 : vector<8x2x32xf32> to vector<8x64xf32>
    %c15 = arith.constant 15 : index
    %c0_73 = arith.constant 0 : index
    %205 = vector.load %arg5[%c15, %c0_73] : memref<40x128xf32, #tpu.memory_space<vmem>>, vector<1x64xf32>
    %206 = vector.broadcast %205 : vector<1x64xf32> to vector<8x64xf32>
    %207 = arith.mulf %204, %206 : vector<8x64xf32>
    %c16_74 = arith.constant 16 : index
    %c0_75 = arith.constant 0 : index
    %208 = vector.load %arg5[%c16_74, %c0_75] : memref<40x128xf32, #tpu.memory_space<vmem>>, vector<1x64xf32>
    %209 = vector.broadcast %208 : vector<1x64xf32> to vector<8x64xf32>
    %210 = arith.addf %207, %209 : vector<8x64xf32>
    %c17 = arith.constant 17 : index
    %c0_76 = arith.constant 0 : index
    %211 = vector.load %arg5[%c17, %c0_76] : memref<40x128xf32, #tpu.memory_space<vmem>>, vector<1x64xf32>
    %c384 = arith.constant 384 : index
    %c0_77 = arith.constant 0 : index
    %212 = vector.load %arg4[%c384, %c0_77] : memref<768x128xf32, #tpu.memory_space<vmem>>, vector<64x64xf32>
    %cst_78 = arith.constant dense<0.000000e+00> : vector<8x64xf32>
    %213 = tpu.matmul %210, %212, %cst_78 {dimension_numbers = #tpu.dot_dimension_numbers<[1], [0], [0], [1], [0, 0, 1, 1], [], []>} : vector<8x64xf32>, vector<64x64xf32>, vector<8x64xf32> -> vector<8x64xf32>
    %214 = vector.broadcast %211 : vector<1x64xf32> to vector<8x64xf32>
    %215 = arith.addf %214, %213 : vector<8x64xf32>
    %216 = math.tanh %215 : vector<8x64xf32>
    %217 = vector.shape_cast %216 : vector<8x64xf32> to vector<8x2x32xf32>
    %cst_79 = arith.constant dense<0.000000e+00> : vector<8x2xf32>
    %218 = vector.multi_reduction <add>, %217, %cst_79 [2] : vector<8x2x32xf32> to vector<8x2xf32>
    %219 = vector.shape_cast %218 : vector<8x2xf32> to vector<8x2x1xf32>
    %cst_80 = arith.constant 3.200000e+01 : f32
    %220 = vector.broadcast %cst_80 : f32 to vector<8x2x1xf32>
    %221 = arith.divf %219, %220 : vector<8x2x1xf32>
    %222 = vector.broadcast %221 : vector<8x2x1xf32> to vector<8x2x32xf32>
    %223 = arith.subf %217, %222 : vector<8x2x32xf32>
    %224 = arith.mulf %223, %223 : vector<8x2x32xf32>
    %cst_81 = arith.constant dense<0.000000e+00> : vector<8x2xf32>
    %225 = vector.multi_reduction <add>, %224, %cst_81 [2] : vector<8x2x32xf32> to vector<8x2xf32>
    %226 = vector.shape_cast %225 : vector<8x2xf32> to vector<8x2x1xf32>
    %cst_82 = arith.constant 3.200000e+01 : f32
    %227 = vector.broadcast %cst_82 : f32 to vector<8x2x1xf32>
    %228 = arith.divf %226, %227 : vector<8x2x1xf32>
    %229 = vector.broadcast %221 : vector<8x2x1xf32> to vector<8x2x32xf32>
    %230 = arith.subf %217, %229 : vector<8x2x32xf32>
    %cst_83 = arith.constant 9.99999974E-6 : f32
    %231 = vector.broadcast %cst_83 : f32 to vector<8x2x1xf32>
    %232 = arith.addf %228, %231 : vector<8x2x1xf32>
    %233 = math.rsqrt %232 : vector<8x2x1xf32>
    %234 = vector.broadcast %233 : vector<8x2x1xf32> to vector<8x2x32xf32>
    %235 = arith.mulf %230, %234 : vector<8x2x32xf32>
    %236 = vector.shape_cast %235 : vector<8x2x32xf32> to vector<8x64xf32>
    %c18 = arith.constant 18 : index
    %c0_84 = arith.constant 0 : index
    %237 = vector.load %arg5[%c18, %c0_84] : memref<40x128xf32, #tpu.memory_space<vmem>>, vector<1x64xf32>
    %238 = vector.broadcast %237 : vector<1x64xf32> to vector<8x64xf32>
    %239 = arith.mulf %236, %238 : vector<8x64xf32>
    %c19 = arith.constant 19 : index
    %c0_85 = arith.constant 0 : index
    %240 = vector.load %arg5[%c19, %c0_85] : memref<40x128xf32, #tpu.memory_space<vmem>>, vector<1x64xf32>
    %241 = vector.broadcast %240 : vector<1x64xf32> to vector<8x64xf32>
    %242 = arith.addf %239, %241 : vector<8x64xf32>
    %c20 = arith.constant 20 : index
    %c0_86 = arith.constant 0 : index
    %243 = vector.load %arg5[%c20, %c0_86] : memref<40x128xf32, #tpu.memory_space<vmem>>, vector<1x9xf32>
    %c448 = arith.constant 448 : index
    %c0_87 = arith.constant 0 : index
    %244 = vector.load %arg4[%c448, %c0_87] : memref<768x128xf32, #tpu.memory_space<vmem>>, vector<64x9xf32>
    %cst_88 = arith.constant dense<0.000000e+00> : vector<8x9xf32>
    %245 = tpu.matmul %242, %244, %cst_88 {dimension_numbers = #tpu.dot_dimension_numbers<[1], [0], [0], [1], [0, 0, 1, 1], [], []>} : vector<8x64xf32>, vector<64x9xf32>, vector<8x9xf32> -> vector<8x9xf32>
    %246 = vector.broadcast %243 : vector<1x9xf32> to vector<8x9xf32>
    %247 = arith.addf %246, %245 : vector<8x9xf32>
    %248 = vector.extract_strided_slice %247 {offsets = [0, 0], sizes = [8, 8], strides = [1, 1]} : vector<8x9xf32> to vector<8x8xf32>
    %249 = vector.extract_strided_slice %247 {offsets = [0, 8], sizes = [8, 1], strides = [1, 1]} : vector<8x9xf32> to vector<8x1xf32>
    %c28 = arith.constant 28 : index
    %c0_89 = arith.constant 0 : index
    %250 = vector.load %arg5[%c28, %c0_89] : memref<40x128xf32, #tpu.memory_space<vmem>>, vector<1x48xf32>
    %c624 = arith.constant 624 : index
    %c0_90 = arith.constant 0 : index
    %251 = vector.load %arg4[%c624, %c0_90] : memref<768x128xf32, #tpu.memory_space<vmem>>, vector<32x48xf32>
    %cst_91 = arith.constant dense<0.000000e+00> : vector<1x48xf32>
    %252 = tpu.matmul %175, %251, %cst_91 {dimension_numbers = #tpu.dot_dimension_numbers<[1], [0], [0], [1], [0, 0, 1, 1], [], []>} : vector<1x32xf32>, vector<32x48xf32>, vector<1x48xf32> -> vector<1x48xf32>
    %253 = arith.addf %250, %252 : vector<1x48xf32>
    %c656 = arith.constant 656 : index
    %c0_92 = arith.constant 0 : index
    %254 = vector.load %arg4[%c656, %c0_92] : memref<768x128xf32, #tpu.memory_space<vmem>>, vector<16x48xf32>
    %cst_93 = arith.constant dense<0.000000e+00> : vector<1x48xf32>
    %255 = tpu.matmul %11, %254, %cst_93 {dimension_numbers = #tpu.dot_dimension_numbers<[1], [0], [0], [1], [0, 0, 1, 1], [], []>} : vector<1x16xf32>, vector<16x48xf32>, vector<1x48xf32> -> vector<1x48xf32>
    %c29 = arith.constant 29 : index
    %c0_94 = arith.constant 0 : index
    %256 = vector.load %arg5[%c29, %c0_94] : memref<40x128xf32, #tpu.memory_space<vmem>>, vector<1x48xf32>
    %257 = arith.addf %255, %256 : vector<1x48xf32>
    %258 = vector.extract_strided_slice %253 {offsets = [0, 0], sizes = [1, 16], strides = [1, 1]} : vector<1x48xf32> to vector<1x16xf32>
    %259 = vector.extract_strided_slice %257 {offsets = [0, 0], sizes = [1, 16], strides = [1, 1]} : vector<1x48xf32> to vector<1x16xf32>
    %260 = arith.addf %258, %259 : vector<1x16xf32>
    %261 = arith.negf %260 : vector<1x16xf32>
    %262 = math.exp %261 : vector<1x16xf32>
    %cst_95 = arith.constant 1.000000e+00 : f32
    %263 = vector.broadcast %cst_95 : f32 to vector<1x16xf32>
    %264 = arith.addf %263, %262 : vector<1x16xf32>
    %265 = arith.divf %263, %264 : vector<1x16xf32>
    %266 = vector.extract_strided_slice %253 {offsets = [0, 16], sizes = [1, 16], strides = [1, 1]} : vector<1x48xf32> to vector<1x16xf32>
    %267 = vector.extract_strided_slice %257 {offsets = [0, 16], sizes = [1, 16], strides = [1, 1]} : vector<1x48xf32> to vector<1x16xf32>
    %268 = arith.addf %266, %267 : vector<1x16xf32>
    %269 = arith.negf %268 : vector<1x16xf32>
    %270 = math.exp %269 : vector<1x16xf32>
    %cst_96 = arith.constant 1.000000e+00 : f32
    %271 = vector.broadcast %cst_96 : f32 to vector<1x16xf32>
    %272 = arith.addf %271, %270 : vector<1x16xf32>
    %273 = arith.divf %271, %272 : vector<1x16xf32>
    %274 = vector.extract_strided_slice %253 {offsets = [0, 32], sizes = [1, 16], strides = [1, 1]} : vector<1x48xf32> to vector<1x16xf32>
    %275 = vector.extract_strided_slice %257 {offsets = [0, 32], sizes = [1, 16], strides = [1, 1]} : vector<1x48xf32> to vector<1x16xf32>
    %276 = arith.mulf %265, %275 : vector<1x16xf32>
    %277 = arith.addf %274, %276 : vector<1x16xf32>
    %278 = math.tanh %277 : vector<1x16xf32>
    %cst_97 = arith.constant 1.000000e+00 : f32
    %279 = vector.broadcast %cst_97 : f32 to vector<1x16xf32>
    %280 = arith.subf %279, %273 : vector<1x16xf32>
    %281 = arith.mulf %280, %278 : vector<1x16xf32>
    %282 = arith.mulf %273, %11 : vector<1x16xf32>
    %283 = arith.addf %281, %282 : vector<1x16xf32>
    %c21 = arith.constant 21 : index
    %c0_98 = arith.constant 0 : index
    %284 = vector.load %arg5[%c21, %c0_98] : memref<40x128xf32, #tpu.memory_space<vmem>>, vector<1x32xf32>
    %c512 = arith.constant 512 : index
    %c0_99 = arith.constant 0 : index
    %285 = vector.load %arg4[%c512, %c0_99] : memref<768x128xf32, #tpu.memory_space<vmem>>, vector<16x32xf32>
    %cst_100 = arith.constant dense<0.000000e+00> : vector<1x32xf32>
    %286 = tpu.matmul %283, %285, %cst_100 {dimension_numbers = #tpu.dot_dimension_numbers<[1], [0], [0], [1], [0, 0, 1, 1], [], []>} : vector<1x16xf32>, vector<16x32xf32>, vector<1x32xf32> -> vector<1x32xf32>
    %287 = arith.addf %284, %286 : vector<1x32xf32>
    %c528 = arith.constant 528 : index
    %c0_101 = arith.constant 0 : index
    %288 = vector.load %arg4[%c528, %c0_101] : memref<768x128xf32, #tpu.memory_space<vmem>>, vector<32x32xf32>
    %cst_102 = arith.constant dense<0.000000e+00> : vector<1x32xf32>
    %289 = tpu.matmul %175, %288, %cst_102 {dimension_numbers = #tpu.dot_dimension_numbers<[1], [0], [0], [1], [0, 0, 1, 1], [], []>} : vector<1x32xf32>, vector<32x32xf32>, vector<1x32xf32> -> vector<1x32xf32>
    %290 = arith.addf %287, %289 : vector<1x32xf32>
    %291 = math.tanh %290 : vector<1x32xf32>
    %292 = vector.shape_cast %291 : vector<1x32xf32> to vector<1x1x32xf32>
    %cst_103 = arith.constant dense<0.000000e+00> : vector<1x1xf32>
    %293 = vector.multi_reduction <add>, %292, %cst_103 [2] : vector<1x1x32xf32> to vector<1x1xf32>
    %294 = vector.shape_cast %293 : vector<1x1xf32> to vector<1x1x1xf32>
    %cst_104 = arith.constant 3.200000e+01 : f32
    %295 = vector.broadcast %cst_104 : f32 to vector<1x1x1xf32>
    %296 = arith.divf %294, %295 : vector<1x1x1xf32>
    %297 = vector.broadcast %296 : vector<1x1x1xf32> to vector<1x1x32xf32>
    %298 = arith.subf %292, %297 : vector<1x1x32xf32>
    %299 = arith.mulf %298, %298 : vector<1x1x32xf32>
    %cst_105 = arith.constant dense<0.000000e+00> : vector<1x1xf32>
    %300 = vector.multi_reduction <add>, %299, %cst_105 [2] : vector<1x1x32xf32> to vector<1x1xf32>
    %301 = vector.shape_cast %300 : vector<1x1xf32> to vector<1x1x1xf32>
    %cst_106 = arith.constant 3.200000e+01 : f32
    %302 = vector.broadcast %cst_106 : f32 to vector<1x1x1xf32>
    %303 = arith.divf %301, %302 : vector<1x1x1xf32>
    %304 = vector.broadcast %296 : vector<1x1x1xf32> to vector<1x1x32xf32>
    %305 = arith.subf %292, %304 : vector<1x1x32xf32>
    %cst_107 = arith.constant 9.99999974E-6 : f32
    %306 = vector.broadcast %cst_107 : f32 to vector<1x1x1xf32>
    %307 = arith.addf %303, %306 : vector<1x1x1xf32>
    %308 = math.rsqrt %307 : vector<1x1x1xf32>
    %309 = vector.broadcast %308 : vector<1x1x1xf32> to vector<1x1x32xf32>
    %310 = arith.mulf %305, %309 : vector<1x1x32xf32>
    %311 = vector.shape_cast %310 : vector<1x1x32xf32> to vector<1x32xf32>
    %c22 = arith.constant 22 : index
    %c0_108 = arith.constant 0 : index
    %312 = vector.load %arg5[%c22, %c0_108] : memref<40x128xf32, #tpu.memory_space<vmem>>, vector<1x32xf32>
    %313 = arith.mulf %311, %312 : vector<1x32xf32>
    %c23 = arith.constant 23 : index
    %c0_109 = arith.constant 0 : index
    %314 = vector.load %arg5[%c23, %c0_109] : memref<40x128xf32, #tpu.memory_space<vmem>>, vector<1x32xf32>
    %315 = arith.addf %313, %314 : vector<1x32xf32>
    %c24 = arith.constant 24 : index
    %c0_110 = arith.constant 0 : index
    %316 = vector.load %arg5[%c24, %c0_110] : memref<40x128xf32, #tpu.memory_space<vmem>>, vector<1x32xf32>
    %c560 = arith.constant 560 : index
    %c0_111 = arith.constant 0 : index
    %317 = vector.load %arg4[%c560, %c0_111] : memref<768x128xf32, #tpu.memory_space<vmem>>, vector<32x32xf32>
    %cst_112 = arith.constant dense<0.000000e+00> : vector<1x32xf32>
    %318 = tpu.matmul %315, %317, %cst_112 {dimension_numbers = #tpu.dot_dimension_numbers<[1], [0], [0], [1], [0, 0, 1, 1], [], []>} : vector<1x32xf32>, vector<32x32xf32>, vector<1x32xf32> -> vector<1x32xf32>
    %319 = arith.addf %316, %318 : vector<1x32xf32>
    %320 = math.tanh %319 : vector<1x32xf32>
    %321 = vector.shape_cast %320 : vector<1x32xf32> to vector<1x1x32xf32>
    %cst_113 = arith.constant dense<0.000000e+00> : vector<1x1xf32>
    %322 = vector.multi_reduction <add>, %321, %cst_113 [2] : vector<1x1x32xf32> to vector<1x1xf32>
    %323 = vector.shape_cast %322 : vector<1x1xf32> to vector<1x1x1xf32>
    %cst_114 = arith.constant 3.200000e+01 : f32
    %324 = vector.broadcast %cst_114 : f32 to vector<1x1x1xf32>
    %325 = arith.divf %323, %324 : vector<1x1x1xf32>
    %326 = vector.broadcast %325 : vector<1x1x1xf32> to vector<1x1x32xf32>
    %327 = arith.subf %321, %326 : vector<1x1x32xf32>
    %328 = arith.mulf %327, %327 : vector<1x1x32xf32>
    %cst_115 = arith.constant dense<0.000000e+00> : vector<1x1xf32>
    %329 = vector.multi_reduction <add>, %328, %cst_115 [2] : vector<1x1x32xf32> to vector<1x1xf32>
    %330 = vector.shape_cast %329 : vector<1x1xf32> to vector<1x1x1xf32>
    %cst_116 = arith.constant 3.200000e+01 : f32
    %331 = vector.broadcast %cst_116 : f32 to vector<1x1x1xf32>
    %332 = arith.divf %330, %331 : vector<1x1x1xf32>
    %333 = vector.broadcast %325 : vector<1x1x1xf32> to vector<1x1x32xf32>
    %334 = arith.subf %321, %333 : vector<1x1x32xf32>
    %cst_117 = arith.constant 9.99999974E-6 : f32
    %335 = vector.broadcast %cst_117 : f32 to vector<1x1x1xf32>
    %336 = arith.addf %332, %335 : vector<1x1x1xf32>
    %337 = math.rsqrt %336 : vector<1x1x1xf32>
    %338 = vector.broadcast %337 : vector<1x1x1xf32> to vector<1x1x32xf32>
    %339 = arith.mulf %334, %338 : vector<1x1x32xf32>
    %340 = vector.shape_cast %339 : vector<1x1x32xf32> to vector<1x32xf32>
    %c25 = arith.constant 25 : index
    %c0_118 = arith.constant 0 : index
    %341 = vector.load %arg5[%c25, %c0_118] : memref<40x128xf32, #tpu.memory_space<vmem>>, vector<1x32xf32>
    %342 = arith.mulf %340, %341 : vector<1x32xf32>
    %c26 = arith.constant 26 : index
    %c0_119 = arith.constant 0 : index
    %343 = vector.load %arg5[%c26, %c0_119] : memref<40x128xf32, #tpu.memory_space<vmem>>, vector<1x32xf32>
    %344 = arith.addf %342, %343 : vector<1x32xf32>
    %c27 = arith.constant 27 : index
    %c0_120 = arith.constant 0 : index
    %345 = vector.load %arg5[%c27, %c0_120] : memref<40x128xf32, #tpu.memory_space<vmem>>, vector<1x8xf32>
    %c592 = arith.constant 592 : index
    %c0_121 = arith.constant 0 : index
    %346 = vector.load %arg4[%c592, %c0_121] : memref<768x128xf32, #tpu.memory_space<vmem>>, vector<32x8xf32>
    %cst_122 = arith.constant dense<0.000000e+00> : vector<1x8xf32>
    %347 = tpu.matmul %344, %346, %cst_122 {dimension_numbers = #tpu.dot_dimension_numbers<[1], [0], [0], [1], [0, 0, 1, 1], [], []>} : vector<1x32xf32>, vector<32x8xf32>, vector<1x8xf32> -> vector<1x8xf32>
    %348 = arith.addf %345, %347 : vector<1x8xf32>
    %c30 = arith.constant 30 : index
    %c0_123 = arith.constant 0 : index
    %349 = vector.load %arg5[%c30, %c0_123] : memref<40x128xf32, #tpu.memory_space<vmem>>, vector<1x48xf32>
    %c672 = arith.constant 672 : index
    %c0_124 = arith.constant 0 : index
    %350 = vector.load %arg4[%c672, %c0_124] : memref<768x128xf32, #tpu.memory_space<vmem>>, vector<16x48xf32>
    %cst_125 = arith.constant dense<0.000000e+00> : vector<1x48xf32>
    %351 = tpu.matmul %11, %350, %cst_125 {dimension_numbers = #tpu.dot_dimension_numbers<[1], [0], [0], [1], [0, 0, 1, 1], [], []>} : vector<1x16xf32>, vector<16x48xf32>, vector<1x48xf32> -> vector<1x48xf32>
    %352 = arith.addf %349, %351 : vector<1x48xf32>
    %c688 = arith.constant 688 : index
    %c0_126 = arith.constant 0 : index
    %353 = vector.load %arg4[%c688, %c0_126] : memref<768x128xf32, #tpu.memory_space<vmem>>, vector<32x48xf32>
    %cst_127 = arith.constant dense<0.000000e+00> : vector<1x48xf32>
    %354 = tpu.matmul %175, %353, %cst_127 {dimension_numbers = #tpu.dot_dimension_numbers<[1], [0], [0], [1], [0, 0, 1, 1], [], []>} : vector<1x32xf32>, vector<32x48xf32>, vector<1x48xf32> -> vector<1x48xf32>
    %355 = arith.addf %352, %354 : vector<1x48xf32>
    %c720 = arith.constant 720 : index
    %c0_128 = arith.constant 0 : index
    %356 = vector.load %arg4[%c720, %c0_128] : memref<768x128xf32, #tpu.memory_space<vmem>>, vector<32x48xf32>
    %cst_129 = arith.constant dense<0.000000e+00> : vector<8x48xf32>
    %357 = tpu.matmul %164, %356, %cst_129 {dimension_numbers = #tpu.dot_dimension_numbers<[1], [0], [0], [1], [0, 0, 1, 1], [], []>} : vector<8x32xf32>, vector<32x48xf32>, vector<8x48xf32> -> vector<8x48xf32>
    %358 = vector.broadcast %355 : vector<1x48xf32> to vector<8x48xf32>
    %359 = arith.addf %358, %357 : vector<8x48xf32>
    %c752 = arith.constant 752 : index
    %c0_130 = arith.constant 0 : index
    %360 = vector.load %arg4[%c752, %c0_130] : memref<768x128xf32, #tpu.memory_space<vmem>>, vector<16x48xf32>
    %cst_131 = arith.constant dense<0.000000e+00> : vector<8x48xf32>
    %361 = tpu.matmul %12, %360, %cst_131 {dimension_numbers = #tpu.dot_dimension_numbers<[1], [0], [0], [1], [0, 0, 1, 1], [], []>} : vector<8x16xf32>, vector<16x48xf32>, vector<8x48xf32> -> vector<8x48xf32>
    %c31 = arith.constant 31 : index
    %c0_132 = arith.constant 0 : index
    %362 = vector.load %arg5[%c31, %c0_132] : memref<40x128xf32, #tpu.memory_space<vmem>>, vector<1x48xf32>
    %363 = vector.broadcast %362 : vector<1x48xf32> to vector<8x48xf32>
    %364 = arith.addf %361, %363 : vector<8x48xf32>
    %365 = vector.extract_strided_slice %359 {offsets = [0, 0], sizes = [8, 16], strides = [1, 1]} : vector<8x48xf32> to vector<8x16xf32>
    %366 = vector.extract_strided_slice %364 {offsets = [0, 0], sizes = [8, 16], strides = [1, 1]} : vector<8x48xf32> to vector<8x16xf32>
    %367 = arith.addf %365, %366 : vector<8x16xf32>
    %368 = arith.negf %367 : vector<8x16xf32>
    %369 = math.exp %368 : vector<8x16xf32>
    %cst_133 = arith.constant 1.000000e+00 : f32
    %370 = vector.broadcast %cst_133 : f32 to vector<8x16xf32>
    %371 = arith.addf %370, %369 : vector<8x16xf32>
    %372 = arith.divf %370, %371 : vector<8x16xf32>
    %373 = vector.extract_strided_slice %359 {offsets = [0, 16], sizes = [8, 16], strides = [1, 1]} : vector<8x48xf32> to vector<8x16xf32>
    %374 = vector.extract_strided_slice %364 {offsets = [0, 16], sizes = [8, 16], strides = [1, 1]} : vector<8x48xf32> to vector<8x16xf32>
    %375 = arith.addf %373, %374 : vector<8x16xf32>
    %376 = arith.negf %375 : vector<8x16xf32>
    %377 = math.exp %376 : vector<8x16xf32>
    %cst_134 = arith.constant 1.000000e+00 : f32
    %378 = vector.broadcast %cst_134 : f32 to vector<8x16xf32>
    %379 = arith.addf %378, %377 : vector<8x16xf32>
    %380 = arith.divf %378, %379 : vector<8x16xf32>
    %381 = vector.extract_strided_slice %359 {offsets = [0, 32], sizes = [8, 16], strides = [1, 1]} : vector<8x48xf32> to vector<8x16xf32>
    %382 = vector.extract_strided_slice %364 {offsets = [0, 32], sizes = [8, 16], strides = [1, 1]} : vector<8x48xf32> to vector<8x16xf32>
    %383 = arith.mulf %372, %382 : vector<8x16xf32>
    %384 = arith.addf %381, %383 : vector<8x16xf32>
    %385 = math.tanh %384 : vector<8x16xf32>
    %cst_135 = arith.constant 1.000000e+00 : f32
    %386 = vector.broadcast %cst_135 : f32 to vector<8x16xf32>
    %387 = arith.subf %386, %380 : vector<8x16xf32>
    %388 = arith.mulf %387, %385 : vector<8x16xf32>
    %389 = arith.mulf %380, %12 : vector<8x16xf32>
    %390 = arith.addf %388, %389 : vector<8x16xf32>
    %c0_136 = arith.constant 0 : index
    %c0_137 = arith.constant 0 : index
    %391 = vector.load %arg8[%c0_136, %c0_137] : memref<1x16xf32, #tpu.memory_space<vmem>>, vector<1x16xf32>
    tpu.vector_store %arg8[%c0_136, %c0_137], %283 {strides = array<i32>} : memref<1x16xf32, #tpu.memory_space<vmem>>, vector<1x16xf32>,
    %c0_138 = arith.constant 0 : index
    %c0_139 = arith.constant 0 : index
    %392 = vector.load %arg9[%c0_138, %c0_139] : memref<8x16xf32, #tpu.memory_space<vmem>>, vector<8x16xf32>
    tpu.vector_store %arg9[%c0_138, %c0_139], %390 {strides = array<i32>} : memref<8x16xf32, #tpu.memory_space<vmem>>, vector<8x16xf32>,
    %cst_140 = arith.constant 0.000000e+00 : f32
    %393 = vector.broadcast %cst_140 : f32 to vector<8x7xf32>
    %394 = tpu.concatenate %86, %85, %164, %248, %249, %390, %393 in 1 : vector<8x32xf32>, vector<8x32xf32>, vector<8x32xf32>, vector<8x8xf32>, vector<8x1xf32>, vector<8x16xf32>, vector<8x7xf32> -> vector<8x128xf32>
    %c0_141 = arith.constant 0 : index
    %c0_142 = arith.constant 0 : index
    %c0_143 = arith.constant 0 : index
    %c0_144 = arith.constant 0 : index
    %395 = vector.load %arg6[%c0_141, %c0_142, %c0_143, %c0_144] : memref<1x1x8x128xf32, #tpu.memory_space<vmem>>, vector<1x1x8x128xf32>
    %396 = vector.shape_cast %395 : vector<1x1x8x128xf32> to vector<8x128xf32>
    %397 = vector.shape_cast %394 : vector<8x128xf32> to vector<1x1x8x128xf32>
    tpu.vector_store %arg6[%c0_141, %c0_142, %c0_143, %c0_144], %397 {strides = array<i32>} : memref<1x1x8x128xf32, #tpu.memory_space<vmem>>, vector<1x1x8x128xf32>,
    %cst_145 = arith.constant 0.000000e+00 : f32
    %398 = vector.broadcast %cst_145 : f32 to vector<1x8xf32>
    %399 = tpu.concatenate %153, %152, %175, %348, %283, %398 in 1 : vector<1x32xf32>, vector<1x32xf32>, vector<1x32xf32>, vector<1x8xf32>, vector<1x16xf32>, vector<1x8xf32> -> vector<1x128xf32>
    %c0_146 = arith.constant 0 : index
    %c0_147 = arith.constant 0 : index
    %c0_148 = arith.constant 0 : index
    %c0_149 = arith.constant 0 : index
    %400 = vector.load %arg7[%c0_146, %c0_147, %c0_148, %c0_149] : memref<1x1x1x128xf32, #tpu.memory_space<vmem>>, vector<1x1x1x128xf32>
    %401 = vector.shape_cast %400 : vector<1x1x1x128xf32> to vector<1x128xf32>
    %402 = vector.shape_cast %399 : vector<1x128xf32> to vector<1x1x1x128xf32>
    tpu.vector_store %arg7[%c0_146, %c0_147, %c0_148, %c0_149], %402 {strides = array<i32>} : memref<1x1x1x128xf32, #tpu.memory_space<vmem>>, vector<1x1x1x128xf32>,
    return
  }
  func.func @transform_0(%arg0: i32, %arg1: i32) -> (i32, i32, i32, i32) {
    %c0_i32 = arith.constant 0 : i32
    %c0_i32_0 = arith.constant 0 : i32
    %c0_i32_1 = arith.constant 0 : i32
    %c0_i32_2 = arith.constant 0 : i32
    %c0_i32_3 = arith.constant 0 : i32
    return %c0_i32, %c0_i32_0, %c0_i32_1, %c0_i32_2 : i32, i32, i32, i32
  }
  func.func @transform_1(%arg0: i32, %arg1: i32) -> (i32, i32, i32, i32) {
    %c0_i32 = arith.constant 0 : i32
    %c0_i32_0 = arith.constant 0 : i32
    %c0_i32_1 = arith.constant 0 : i32
    %c0_i32_2 = arith.constant 0 : i32
    %c0_i32_3 = arith.constant 0 : i32
    return %c0_i32, %c0_i32_0, %c0_i32_1, %c0_i32_2 : i32, i32, i32, i32
  }
  func.func @transform_2(%arg0: i32, %arg1: i32) -> (i32, i32) {
    %c0_i32 = arith.constant 0 : i32
    %c0_i32_0 = arith.constant 0 : i32
    %c0_i32_1 = arith.constant 0 : i32
    return %c0_i32, %c0_i32_0 : i32, i32
  }
  func.func @transform_3(%arg0: i32, %arg1: i32) -> (i32, i32) {
    %c0_i32 = arith.constant 0 : i32
    %c0_i32_0 = arith.constant 0 : i32
    %c0_i32_1 = arith.constant 0 : i32
    return %c0_i32, %c0_i32_0 : i32, i32
  }
  func.func @transform_4(%arg0: i32, %arg1: i32) -> (i32, i32, i32, i32) {
    %c0_i32 = arith.constant 0 : i32
    %c0_i32_0 = arith.constant 0 : i32
    %c0_i32_1 = arith.constant 0 : i32
    return %arg0, %arg1, %c0_i32, %c0_i32_0 : i32, i32, i32, i32
  }
  func.func @transform_5(%arg0: i32, %arg1: i32) -> (i32, i32, i32, i32) {
    %c0_i32 = arith.constant 0 : i32
    %c0_i32_0 = arith.constant 0 : i32
    %c0_i32_1 = arith.constant 0 : i32
    return %arg0, %arg1, %c0_i32, %c0_i32_0 : i32, i32, i32, i32
  }
}

module attributes {stable_mosaic.version = 11 : i64} {
  func.func @kernel(%arg0: i32, %arg1: i32, %arg2: memref<1x1x8x16xf32, #tpu.memory_space<vmem>>, %arg3: memref<1x1x8x1xf32, #tpu.memory_space<vmem>>, %arg4: memref<184x128xf32, #tpu.memory_space<vmem>>, %arg5: memref<16x128xf32, #tpu.memory_space<vmem>>, %arg6: memref<1x1x1x32xf32, #tpu.memory_space<vmem>>) attributes {dimension_semantics = [#tpu.dimension_semantics<parallel>, #tpu.dimension_semantics<parallel>], iteration_bounds = array<i64: 2, 3>, scalar_prefetch = 0 : i64, scratch_operands = 0 : i64, tpu.core_type = #tpu.core_type<tc>, window_params = [{transform_indices = @transform_0, window_bounds = array<i64: 1, 1, 8, 16>}, {transform_indices = @transform_1, window_bounds = array<i64: 1, 1, 8, 1>}, {pipeline_mode = #tpu.pipeline_mode<synchronous>, transform_indices = @transform_2, window_bounds = array<i64: 184, 128>}, {pipeline_mode = #tpu.pipeline_mode<synchronous>, transform_indices = @transform_3, window_bounds = array<i64: 16, 128>}, {transform_indices = @transform_4, window_bounds = array<i64: 1, 1, 1, 32>}]} {
    %c0 = arith.constant 0 : index
    %c0_0 = arith.constant 0 : index
    %c0_1 = arith.constant 0 : index
    %c0_2 = arith.constant 0 : index
    %0 = vector.load %arg2[%c0, %c0_0, %c0_1, %c0_2] : memref<1x1x8x16xf32, #tpu.memory_space<vmem>>, vector<1x1x8x16xf32>
    %1 = vector.shape_cast %0 : vector<1x1x8x16xf32> to vector<8x16xf32>
    %c0_3 = arith.constant 0 : index
    %c0_4 = arith.constant 0 : index
    %c0_5 = arith.constant 0 : index
    %c0_6 = arith.constant 0 : index
    %2 = vector.load %arg3[%c0_3, %c0_4, %c0_5, %c0_6] : memref<1x1x8x1xf32, #tpu.memory_space<vmem>>, vector<1x1x8x1xf32>
    %3 = vector.shape_cast %2 : vector<1x1x8x1xf32> to vector<8x1xf32>
    %c0_7 = arith.constant 0 : index
    %c0_8 = arith.constant 0 : index
    %4 = vector.load %arg5[%c0_7, %c0_8] : memref<16x128xf32, #tpu.memory_space<vmem>>, vector<1x32xf32>
    %c0_9 = arith.constant 0 : index
    %c0_10 = arith.constant 0 : index
    %5 = vector.load %arg4[%c0_9, %c0_10] : memref<184x128xf32, #tpu.memory_space<vmem>>, vector<16x32xf32>
    %cst = arith.constant dense<0.000000e+00> : vector<8x32xf32>
    %6 = tpu.matmul %1, %5, %cst {dimension_numbers = #tpu.dot_dimension_numbers<[1], [0], [0], [1], [0, 0, 1, 1], [], []>} : vector<8x16xf32>, vector<16x32xf32>, vector<8x32xf32> -> vector<8x32xf32>
    %7 = vector.broadcast %4 : vector<1x32xf32> to vector<8x32xf32>
    %8 = arith.addf %7, %6 : vector<8x32xf32>
    %c16 = arith.constant 16 : index
    %c0_11 = arith.constant 0 : index
    %9 = vector.load %arg4[%c16, %c0_11] : memref<184x128xf32, #tpu.memory_space<vmem>>, vector<1x32xf32>
    %10 = vector.broadcast %3 : vector<8x1xf32> to vector<8x32xf32>
    %11 = vector.broadcast %9 : vector<1x32xf32> to vector<8x32xf32>
    %12 = arith.mulf %10, %11 : vector<8x32xf32>
    %13 = arith.addf %8, %12 : vector<8x32xf32>
    %14 = math.tanh %13 : vector<8x32xf32>
    %15 = vector.shape_cast %14 : vector<8x32xf32> to vector<8x1x32xf32>
    %cst_12 = arith.constant dense<0.000000e+00> : vector<8x1xf32>
    %16 = vector.multi_reduction <add>, %15, %cst_12 [2] : vector<8x1x32xf32> to vector<8x1xf32>
    %17 = vector.shape_cast %16 : vector<8x1xf32> to vector<8x1x1xf32>
    %cst_13 = arith.constant 3.200000e+01 : f32
    %18 = vector.broadcast %cst_13 : f32 to vector<8x1x1xf32>
    %19 = arith.divf %17, %18 : vector<8x1x1xf32>
    %20 = vector.broadcast %19 : vector<8x1x1xf32> to vector<8x1x32xf32>
    %21 = arith.subf %15, %20 : vector<8x1x32xf32>
    %22 = arith.mulf %21, %21 : vector<8x1x32xf32>
    %cst_14 = arith.constant dense<0.000000e+00> : vector<8x1xf32>
    %23 = vector.multi_reduction <add>, %22, %cst_14 [2] : vector<8x1x32xf32> to vector<8x1xf32>
    %24 = vector.shape_cast %23 : vector<8x1xf32> to vector<8x1x1xf32>
    %cst_15 = arith.constant 3.200000e+01 : f32
    %25 = vector.broadcast %cst_15 : f32 to vector<8x1x1xf32>
    %26 = arith.divf %24, %25 : vector<8x1x1xf32>
    %27 = vector.broadcast %19 : vector<8x1x1xf32> to vector<8x1x32xf32>
    %28 = arith.subf %15, %27 : vector<8x1x32xf32>
    %cst_16 = arith.constant 9.99999974E-6 : f32
    %29 = vector.broadcast %cst_16 : f32 to vector<8x1x1xf32>
    %30 = arith.addf %26, %29 : vector<8x1x1xf32>
    %31 = math.rsqrt %30 : vector<8x1x1xf32>
    %32 = vector.broadcast %31 : vector<8x1x1xf32> to vector<8x1x32xf32>
    %33 = arith.mulf %28, %32 : vector<8x1x32xf32>
    %34 = vector.shape_cast %33 : vector<8x1x32xf32> to vector<8x32xf32>
    %c1 = arith.constant 1 : index
    %c0_17 = arith.constant 0 : index
    %35 = vector.load %arg5[%c1, %c0_17] : memref<16x128xf32, #tpu.memory_space<vmem>>, vector<1x32xf32>
    %36 = vector.broadcast %35 : vector<1x32xf32> to vector<8x32xf32>
    %37 = arith.mulf %34, %36 : vector<8x32xf32>
    %c2 = arith.constant 2 : index
    %c0_18 = arith.constant 0 : index
    %38 = vector.load %arg5[%c2, %c0_18] : memref<16x128xf32, #tpu.memory_space<vmem>>, vector<1x32xf32>
    %39 = vector.broadcast %38 : vector<1x32xf32> to vector<8x32xf32>
    %40 = arith.addf %37, %39 : vector<8x32xf32>
    %c3 = arith.constant 3 : index
    %c0_19 = arith.constant 0 : index
    %41 = vector.load %arg5[%c3, %c0_19] : memref<16x128xf32, #tpu.memory_space<vmem>>, vector<1x32xf32>
    %c24 = arith.constant 24 : index
    %c0_20 = arith.constant 0 : index
    %42 = vector.load %arg4[%c24, %c0_20] : memref<184x128xf32, #tpu.memory_space<vmem>>, vector<32x32xf32>
    %cst_21 = arith.constant dense<0.000000e+00> : vector<8x32xf32>
    %43 = tpu.matmul %40, %42, %cst_21 {dimension_numbers = #tpu.dot_dimension_numbers<[1], [0], [0], [1], [0, 0, 1, 1], [], []>} : vector<8x32xf32>, vector<32x32xf32>, vector<8x32xf32> -> vector<8x32xf32>
    %44 = vector.broadcast %41 : vector<1x32xf32> to vector<8x32xf32>
    %45 = arith.addf %44, %43 : vector<8x32xf32>
    %46 = math.tanh %45 : vector<8x32xf32>
    %47 = vector.shape_cast %46 : vector<8x32xf32> to vector<8x1x32xf32>
    %cst_22 = arith.constant dense<0.000000e+00> : vector<8x1xf32>
    %48 = vector.multi_reduction <add>, %47, %cst_22 [2] : vector<8x1x32xf32> to vector<8x1xf32>
    %49 = vector.shape_cast %48 : vector<8x1xf32> to vector<8x1x1xf32>
    %cst_23 = arith.constant 3.200000e+01 : f32
    %50 = vector.broadcast %cst_23 : f32 to vector<8x1x1xf32>
    %51 = arith.divf %49, %50 : vector<8x1x1xf32>
    %52 = vector.broadcast %51 : vector<8x1x1xf32> to vector<8x1x32xf32>
    %53 = arith.subf %47, %52 : vector<8x1x32xf32>
    %54 = arith.mulf %53, %53 : vector<8x1x32xf32>
    %cst_24 = arith.constant dense<0.000000e+00> : vector<8x1xf32>
    %55 = vector.multi_reduction <add>, %54, %cst_24 [2] : vector<8x1x32xf32> to vector<8x1xf32>
    %56 = vector.shape_cast %55 : vector<8x1xf32> to vector<8x1x1xf32>
    %cst_25 = arith.constant 3.200000e+01 : f32
    %57 = vector.broadcast %cst_25 : f32 to vector<8x1x1xf32>
    %58 = arith.divf %56, %57 : vector<8x1x1xf32>
    %59 = vector.broadcast %51 : vector<8x1x1xf32> to vector<8x1x32xf32>
    %60 = arith.subf %47, %59 : vector<8x1x32xf32>
    %cst_26 = arith.constant 9.99999974E-6 : f32
    %61 = vector.broadcast %cst_26 : f32 to vector<8x1x1xf32>
    %62 = arith.addf %58, %61 : vector<8x1x1xf32>
    %63 = math.rsqrt %62 : vector<8x1x1xf32>
    %64 = vector.broadcast %63 : vector<8x1x1xf32> to vector<8x1x32xf32>
    %65 = arith.mulf %60, %64 : vector<8x1x32xf32>
    %66 = vector.shape_cast %65 : vector<8x1x32xf32> to vector<8x32xf32>
    %c4 = arith.constant 4 : index
    %c0_27 = arith.constant 0 : index
    %67 = vector.load %arg5[%c4, %c0_27] : memref<16x128xf32, #tpu.memory_space<vmem>>, vector<1x32xf32>
    %68 = vector.broadcast %67 : vector<1x32xf32> to vector<8x32xf32>
    %69 = arith.mulf %66, %68 : vector<8x32xf32>
    %c5 = arith.constant 5 : index
    %c0_28 = arith.constant 0 : index
    %70 = vector.load %arg5[%c5, %c0_28] : memref<16x128xf32, #tpu.memory_space<vmem>>, vector<1x32xf32>
    %71 = vector.broadcast %70 : vector<1x32xf32> to vector<8x32xf32>
    %72 = arith.addf %69, %71 : vector<8x32xf32>
    %c6 = arith.constant 6 : index
    %c0_29 = arith.constant 0 : index
    %73 = vector.load %arg5[%c6, %c0_29] : memref<16x128xf32, #tpu.memory_space<vmem>>, vector<1x32xf32>
    %c56 = arith.constant 56 : index
    %c0_30 = arith.constant 0 : index
    %74 = vector.load %arg4[%c56, %c0_30] : memref<184x128xf32, #tpu.memory_space<vmem>>, vector<32x32xf32>
    %cst_31 = arith.constant dense<0.000000e+00> : vector<8x32xf32>
    %75 = tpu.matmul %72, %74, %cst_31 {dimension_numbers = #tpu.dot_dimension_numbers<[1], [0], [0], [1], [0, 0, 1, 1], [], []>} : vector<8x32xf32>, vector<32x32xf32>, vector<8x32xf32> -> vector<8x32xf32>
    %76 = vector.broadcast %73 : vector<1x32xf32> to vector<8x32xf32>
    %77 = arith.addf %76, %75 : vector<8x32xf32>
    %c7 = arith.constant 7 : index
    %c0_32 = arith.constant 0 : index
    %78 = vector.load %arg5[%c7, %c0_32] : memref<16x128xf32, #tpu.memory_space<vmem>>, vector<1x32xf32>
    %c88 = arith.constant 88 : index
    %c0_33 = arith.constant 0 : index
    %79 = vector.load %arg4[%c88, %c0_33] : memref<184x128xf32, #tpu.memory_space<vmem>>, vector<32x32xf32>
    %cst_34 = arith.constant dense<0.000000e+00> : vector<1x32xf32>
    %80 = tpu.matmul %78, %79, %cst_34 {dimension_numbers = #tpu.dot_dimension_numbers<[1], [0], [0], [1], [0, 0, 1, 1], [], []>} : vector<1x32xf32>, vector<32x32xf32>, vector<1x32xf32> -> vector<1x32xf32>
    %c8 = arith.constant 8 : index
    %c0_35 = arith.constant 0 : index
    %81 = vector.load %arg5[%c8, %c0_35] : memref<16x128xf32, #tpu.memory_space<vmem>>, vector<1x32xf32>
    %82 = arith.addf %80, %81 : vector<1x32xf32>
    %c120 = arith.constant 120 : index
    %c0_36 = arith.constant 0 : index
    %83 = vector.load %arg4[%c120, %c0_36] : memref<184x128xf32, #tpu.memory_space<vmem>>, vector<32x64xf32>
    %cst_37 = arith.constant dense<0.000000e+00> : vector<8x64xf32>
    %84 = tpu.matmul %77, %83, %cst_37 {dimension_numbers = #tpu.dot_dimension_numbers<[1], [0], [0], [1], [0, 0, 1, 1], [], []>} : vector<8x32xf32>, vector<32x64xf32>, vector<8x64xf32> -> vector<8x64xf32>
    %c9 = arith.constant 9 : index
    %c0_38 = arith.constant 0 : index
    %85 = vector.load %arg5[%c9, %c0_38] : memref<16x128xf32, #tpu.memory_space<vmem>>, vector<1x64xf32>
    %86 = vector.broadcast %85 : vector<1x64xf32> to vector<8x64xf32>
    %87 = arith.addf %84, %86 : vector<8x64xf32>
    %88 = vector.extract_strided_slice %87 {offsets = [0, 0], sizes = [8, 32], strides = [1, 1]} : vector<8x64xf32> to vector<8x32xf32>
    %89 = vector.extract_strided_slice %87 {offsets = [0, 32], sizes = [8, 32], strides = [1, 1]} : vector<8x64xf32> to vector<8x32xf32>
    %90 = vector.broadcast %82 : vector<1x32xf32> to vector<8x32xf32>
    %91 = arith.mulf %88, %90 : vector<8x32xf32>
    %cst_39 = arith.constant dense<0.000000e+00> : vector<8xf32>
    %92 = vector.multi_reduction <add>, %91, %cst_39 [1] : vector<8x32xf32> to vector<8xf32>
    %93 = vector.shape_cast %92 : vector<8xf32> to vector<8x1xf32>
    %cst_40 = arith.constant 0.176776692 : f32
    %94 = vector.broadcast %cst_40 : f32 to vector<8x1xf32>
    %95 = arith.mulf %93, %94 : vector<8x1xf32>
    %cst_41 = arith.constant dense<0xFF800000> : vector<1xf32>
    %96 = vector.multi_reduction <maximumf>, %95, %cst_41 [0] : vector<8x1xf32> to vector<1xf32>
    %97 = vector.shape_cast %96 : vector<1xf32> to vector<1x1xf32>
    %98 = vector.broadcast %97 : vector<1x1xf32> to vector<8x1xf32>
    %99 = arith.subf %95, %98 : vector<8x1xf32>
    %100 = math.exp %99 : vector<8x1xf32>
    %cst_42 = arith.constant dense<0.000000e+00> : vector<1xf32>
    %101 = vector.multi_reduction <add>, %100, %cst_42 [0] : vector<8x1xf32> to vector<1xf32>
    %102 = vector.shape_cast %101 : vector<1xf32> to vector<1x1xf32>
    %103 = vector.broadcast %102 : vector<1x1xf32> to vector<8x1xf32>
    %104 = arith.divf %100, %103 : vector<8x1xf32>
    %105 = vector.broadcast %104 : vector<8x1xf32> to vector<8x32xf32>
    %106 = arith.mulf %105, %89 : vector<8x32xf32>
    %cst_43 = arith.constant dense<0.000000e+00> : vector<32xf32>
    %107 = vector.multi_reduction <add>, %106, %cst_43 [0] : vector<8x32xf32> to vector<32xf32>
    %108 = vector.shape_cast %107 : vector<32xf32> to vector<1x32xf32>
    %c152 = arith.constant 152 : index
    %c0_44 = arith.constant 0 : index
    %109 = vector.load %arg4[%c152, %c0_44] : memref<184x128xf32, #tpu.memory_space<vmem>>, vector<32x32xf32>
    %cst_45 = arith.constant dense<0.000000e+00> : vector<1x32xf32>
    %110 = tpu.matmul %108, %109, %cst_45 {dimension_numbers = #tpu.dot_dimension_numbers<[1], [0], [0], [1], [0, 0, 1, 1], [], []>} : vector<1x32xf32>, vector<32x32xf32>, vector<1x32xf32> -> vector<1x32xf32>
    %c10 = arith.constant 10 : index
    %c0_46 = arith.constant 0 : index
    %111 = vector.load %arg5[%c10, %c0_46] : memref<16x128xf32, #tpu.memory_space<vmem>>, vector<1x32xf32>
    %112 = arith.addf %110, %111 : vector<1x32xf32>
    %c0_47 = arith.constant 0 : index
    %c0_48 = arith.constant 0 : index
    %c0_49 = arith.constant 0 : index
    %c0_50 = arith.constant 0 : index
    %113 = vector.load %arg6[%c0_47, %c0_48, %c0_49, %c0_50] : memref<1x1x1x32xf32, #tpu.memory_space<vmem>>, vector<1x1x1x32xf32>
    %114 = vector.shape_cast %113 : vector<1x1x1x32xf32> to vector<1x32xf32>
    %115 = vector.shape_cast %112 : vector<1x32xf32> to vector<1x1x1x32xf32>
    tpu.vector_store %arg6[%c0_47, %c0_48, %c0_49, %c0_50], %115 {strides = array<i32>} : memref<1x1x1x32xf32, #tpu.memory_space<vmem>>, vector<1x1x1x32xf32>,
    return
  }
  func.func @transform_0(%arg0: i32, %arg1: i32) -> (i32, i32, i32, i32) {
    %c0_i32 = arith.constant 0 : i32
    %c0_i32_0 = arith.constant 0 : i32
    %c0_i32_1 = arith.constant 0 : i32
    return %arg0, %arg1, %c0_i32, %c0_i32_0 : i32, i32, i32, i32
  }
  func.func @transform_1(%arg0: i32, %arg1: i32) -> (i32, i32, i32, i32) {
    %c0_i32 = arith.constant 0 : i32
    %c0_i32_0 = arith.constant 0 : i32
    %c0_i32_1 = arith.constant 0 : i32
    return %arg0, %arg1, %c0_i32, %c0_i32_0 : i32, i32, i32, i32
  }
  func.func @transform_2(%arg0: i32, %arg1: i32) -> (i32, i32) {
    %c0_i32 = arith.constant 0 : i32
    %c0_i32_0 = arith.constant 0 : i32
    %c0_i32_1 = arith.constant 0 : i32
    return %c0_i32, %c0_i32_0 : i32, i32
  }
  func.func @transform_3(%arg0: i32, %arg1: i32) -> (i32, i32) {
    %c0_i32 = arith.constant 0 : i32
    %c0_i32_0 = arith.constant 0 : i32
    %c0_i32_1 = arith.constant 0 : i32
    return %c0_i32, %c0_i32_0 : i32, i32
  }
  func.func @transform_4(%arg0: i32, %arg1: i32) -> (i32, i32, i32, i32) {
    %c0_i32 = arith.constant 0 : i32
    %c0_i32_0 = arith.constant 0 : i32
    %c0_i32_1 = arith.constant 0 : i32
    return %arg0, %arg1, %c0_i32, %c0_i32_0 : i32, i32, i32, i32
  }
}

</mosaic_0001>

<bundles_post_ra>
// kernel: _lambda_.2
= control target key start
LH: loop header
LB: loop body
LE: loop exit
PB: predicated region body
PF: predicated region fallthrough
CT: control target
= control target key end

     0   :  { %9 = vsyncpa [#allocation3], 0  ;;  %s2004_s15 = smov 0   ;;  %s2006_s16 = smov 0   ;;  %s2338_s0 = inlined_call_operand.vmem [shape: f32[2,3,8,16], index: 0, kind: input, shape index: {}]   ;;  %s2339_s1 = inlined_call_operand.vmem [shape: f32[2,3,8,1], index: 1, kind: input, shape index: {}]   ;;  %s2340_s2 = inlined_call_operand.hbm [shape: f32[184,128], index: 2, kind: input, shape index: {}]   ;;  %s2341_s3 = inlined_call_operand.vmem [shape: f32[16,128], index: 3, kind: input, shape index: {}]   ;;  %s2342_s4 = inlined_call_operand.vmem [shape: f32[2,3,1,32], index: 4, kind: output, shape index: {}]  }
   0x1   :  { %s2008_s17 = smov 0   ;;  %s2010_s18 = smov 0  }
   0x2   :  { %s2012_s19 = smov 0  }
   0x3 LB: > { %s1648_s20 = sadd.s32 4294967295, %s1968_s19   ;;  %s24_s21 = sadd.s32 1, %s1960_s17  ;;  %s1968_s19 = sphi %s2012_s19, %s15_s19   ;;  %s1964_s18 = sphi %s2010_s18, %s2354_s18   ;;  %s1960_s17 = sphi %s2008_s17, %s2353_s17   ;;  %s1956_s16 = sphi %s2006_s16, %s2352_s16   ;;  %s1952_s15 = sphi %s2004_s15, %s2351_s15  }
   0x4   : > { %p25_p0 = scmp.ge.s32.totalorder %s24_s21, 3  ;;  %s27_s22 = sadd.s32 1, %s1964_s18 }
   0x5   : > { %p1650_p1 = scmp.ge.s32.totalorder %s1968_s19, 1  ;;  %p158_p2 = scmp.lt.s32.totalorder %s1968_s19, 7 }
   0x6   : > { %s2356_s21 = smov (%p25_p0, %s24_s21), 0  ;;  %s2358_s22 = smov (!%p25_p0, %s27_s22), %s1964_s18 }
   0x7   : > { %p2037_p3 = pnand %p1650_p1, %p158_p2  ;;  %p29_p4 = scmp.ge.s32.totalorder %s2358_s22, 2 }
   0x8   : > { %p2041_p5 = scmp.eq.s32.totalorder %s1648_s20, 0  ;;  %s1970_s25 = smov [#allocation2]  }
   0x9   : > { %s2346_s23 = scalar_select %p2037_p3, 1, 0 }
   0xa   : > { %s2347_s24 = scalar_select %p2041_p5, 1, 0 }
   0xb   : > { %p1802_p6 = pneg %p2037_p3  ;;  %s2360_s22 = smov (%p29_p4, %s2358_s22), 0 }
   0xc   : > { %s170_s26 = sshll.u32 %s1970_s25, 4  ;;  %s1898_s30 = scalar_lea.hbm %s2340_s2, 2944  ;;  %s171_s26 = int_to_ptr.vmem [resolvable:$true] %s170_s26 }
   0xd   : > { %p2051_p7 = pnand %p2041_p5, %p1802_p6  ;;  %p1899_p8 = scmp.ne.s32.totalorder %s2340_s2, %s1898_s30 }
   0xe   : > { %p1905_p12 = scmp.lt.u32.totalorder %s1898_s30, %s2340_s2 }
   0xf   : > { %p1900_p9 = pneg %p2051_p7 }
  0x11   : > { %p1901_p10 = pnand %p1900_p9, %p1899_p8 }
  0x13   : > { %p1902_p11 = pneg %p1901_p10 }
  0x15   : > { %p1907_p13 = pnand %p1905_p12, %p1902_p11 }
  0x17   : > { %1910 = shalt.err (!%p1907_p13)
}
  0x18   : > { %s1911_s9 = scalar_lea.vmem %s171_s26, 2944  ;;  %p1919_p4 = scmp.lt.s32.totalorder %s171_s26, %s171_s26 }
  0x19   : > { %p1912_p0 = scmp.ne.s32.totalorder %s171_s26, %s1911_s9  ;;  %p1920_p6 = scmp.lt.s32.totalorder %s1911_s9, %s1911_s9 }
  0x1b   : > { %p1914_p1 = pnand %p1912_p0, %p1900_p9  ;;  %p1921_p5 = por %p1920_p6, %p1919_p4 }
  0x1d   : > { %p1915_p2 = pneg %p1914_p1 }
  0x1f   : > { %p1922_p3 = pnand %p1921_p5, %p1915_p2 }
  0x21   : > { %1925 = shalt.err (!%p1922_p3)
}
  0x22   : > { %s1971_s10 = smov 128   ;;  %s1972_s11 = smov 8  }
  0x23   : > { %1805 = dma.hbm_to_vmem [thread:$0]  (!%p2051_p7), %s2340_s2, 2944, %s171_s26, [#allocation3], %s1971_s10, %s1971_s10, %s1972_s11  }
  0x24   : > { %p2349_p8 = scmp.ne.s32.totalorder %s2346_s23, 0 }
  0x25   : > { %p2350_p10 = scmp.ne.s32.totalorder (!%p2349_p8), %s2347_s24, 0 }
  0x26   : > { %211 = sbr.rel (%p2349_p8) target bundleno = 2174 (0x87e), region = 36 }
  0x2d   : > { %1947 = dma.done.wait (%p2350_p10), [#allocation3], 2944  }
  0x2e   : > { %1949 = vsyncadd (%p2350_p10), [#allocation3], 4294964352  ;;  %p250_p3 = scmp.lt.s32.totalorder %s1956_s16, 1  ;;  %v1973_v0 = vmov 0.0|0.0   ;;  %vm1974_vm0 = vmmov 0   ;;  %v1975_v1 = vmov 0.0   ;;  %v375_v18 = vlaneseq }
  0x2f   : > { %1764 = vmatprep.subr.bf16.mxu0 %v1973_v0  ;;  %1706 = vmatprep.mubr.msk.f32.mxu0 %vm1974_vm0, %v1975_v1  ;;  %p252_p5 = scmp.lt.s32.totalorder %s1952_s15, 2  ;;  %v1976_v2 = vmov 0   ;;  %v276_v3 = vld [vmem:[#allocation2] sm:$0xff]  ;;  %v277_v4 = vld [vmem:[#allocation2 + $0x8] sm:$0xff]  ;;  %vm278_vm1 = vcmask 130048   ;;  %vm428_vm2 = vcmask 253952  }
  0x30   : > { %s2362_s16 = smov (!%p250_p3, %s1956_s16), 1  ;;  %1857 = vset.pattern.permute.xlu0 %v1976_v2  ;;  %1767 = vmatprep.subr.bf16.mxu1 %v1973_v0  ;;  %v1765_v5 = vpack.c.bf16 %v277_v4, %v276_v3  ;;  %v1659_v8 = vld [vmem:[#allocation2 + $0x10] ss:$0 sm:$0xff]  ;;  %v1658_v10 = vld [vmem:[%s2341_s3] ss:$0 sm:$0xff]  ;;  %v2102_v20 = vshrl.u32 %v375_v18, 7 }
  0x31   : > { %s2364_s15 = smov (!%p252_p5, %s1952_s15), 2  ;;  %1717 = vmatprep.mubr.msk.f32.mxu1 %vm1974_vm0, %v1975_v1  ;;  %s1797_s14 = smul.u32 3, %s2362_s16  ;;  %v1977_v16 = vmov 1966171168   ;;  %vm738_vm3 = vcmask 261120   ;;  %vm1448_vm4 = vcmask 523520  }
  0x32   : > { %1766 = vmatpush3.bf16.msra.mxu0 %v1765_v5  ;;  %v373_v17 = vunpack.c.l.s4 %v1977_v16 }
  0x33   : > { %s2087_s20 = sadd.s32 %s1797_s14, %s2364_s15  ;;  %1773 = vmatprep.subr.bf16.mxu0 %v1973_v0  ;;  %s1978_s15 = smov 96  }
  0x34   : > { %s1655_s23 = sshll.u32 %s2087_s20, 3  ;;  %v374_v19 = vunpack.c.0.s8 %v373_v17  ;;  %s272_s7 = scalar_lea.vmem %s2342_s4, %s2087_s20 }
  0x35   : > { %s257_s26 = scalar_lea.vmem %s2338_s0, %s1655_s23  ;;  %s265_s29 = scalar_lea.vmem %s2339_s1, %s1655_s23 }
  0x36   : > { %v274_v6 = vld [vmem:[%s265_s29] sm:$0xff]  ;;  %v2105_v21 = vsub.s32 %v374_v19, %v2102_v20 }
  0x37   : > { %v273_v7 = vld [vmem:[%s257_s26] sm:$0xff]  ;;  %360 = vperm.xlu0 %1857, %v274_v6  }
  0x38   : > { %1707 = vmatmul.mubr.msk.f32.vlgmr.msra.gmra.mrb[0].mxu0 %vm278_vm1, %v273_v7 }
  0x39   : > { %1728 = vmatprep.mubr.msk.f32.mxu0 %vm1974_vm0, %v1975_v1 }
  0xb6   : > { %v361_v9 = vpop.permute.xlu0 %360 }
  0xb7   : > { %v367_v11 = vmul.f32 %v1659_v8, %v361_v9 }
 0x10b   : > { %v348_v12 = vpop.f32.mrb[0].mxu0 }
 0x10c   : > { %v356_v13 = vadd.f32 %v1658_v10, %v348_v12  ;;  %v1708_v14 = vpop.f32.mrb[1].mxu0 }
 0x10e   : > { %v368_v15 = vadd.f32 %v367_v11, %v356_v13 }
 0x110   : > { %1858 = vtanh.f32 %v368_v15 }
 0x11a   : > { %v1859_v22 = vpop.eup %1858 }
 0x11b   : > { %v378_v23 = vrot.slane %v1859_v22, %v2105_v21  ;;  %v371_v26 = vcombine.high %v1859_v22, %v1859_v22 }
 0x11d   : > { %v394_v24 = vrot.slane %v378_v23, %v2105_v21  ;;  %v386_v25 = vcombine.high %v378_v23, %v378_v23  ;;  %v385_v31 = vrot.slane %v371_v26, %v2105_v21  ;;  %v679_v26 = vld [vmem:[#allocation2 + $0x28] sm:$0xff] }
 0x11f   : > { %v429_v27 = vsel %vm428_vm2, %v394_v24, 0.0  ;;  %v408_v28 = vrot.slane %v386_v25, %v2105_v21  ;;  %v416_v30 = vcombine.high %v394_v24, %v394_v24  ;;  %v401_v33 = vrot.slane %v385_v31, %v2105_v21  ;;  %v678_v25 = vld [vmem:[#allocation2 + $0x20] sm:$0xff] }
 0x120   : > { %430 = vadd.xlane.f32.xlu0 %v429_v27  ;;  %v387_v36 = vcombine.high %v385_v31, %v385_v31 }
 0x121   : > { %v432_v29 = vsel %vm428_vm2, %v408_v28, 0.0  ;;  %v435_v32 = vsel %vm428_vm2, %v416_v30, 0.0  ;;  %v441_v34 = vsel %vm428_vm2, %v401_v33, 0.0  ;;  %v418_v35 = vcombine.high %v408_v28, %v408_v28 }
 0x122   : > { %433 = vadd.xlane.f32.xlu1 %v432_v29  ;;  %v415_v38 = vrot.slane %v387_v36, %v2105_v21  ;;  %v417_v40 = vcombine.high %v401_v33, %v401_v33 }
 0x123   : > { %v438_v37 = vsel %vm428_vm2, %v418_v35, 0.0 }
 0x124   : > { %v444_v39 = vsel %vm428_vm2, %v415_v38, 0.0  ;;  %v447_v41 = vsel %vm428_vm2, %v417_v40, 0.0  ;;  %v419_v42 = vcombine.high %v415_v38, %v415_v38 }
 0x126   : > { %436 = vadd.xlane.f32.xlu1 %v435_v32  ;;  %v450_v43 = vsel %vm428_vm2, %v419_v42, 0.0 }
 0x12a   : > { %442 = vadd.xlane.f32.xlu1 %v441_v34 }
 0x12e   : > { %439 = vadd.xlane.f32.xlu1 %v438_v37 }
 0x132   : > { %445 = vadd.xlane.f32.xlu1 %v444_v39 }
 0x136   : > { %448 = vadd.xlane.f32.xlu1 %v447_v41 }
 0x13a   : > { %451 = vadd.xlane.f32.xlu1 %v450_v43 }
 0x1ad   : > { %v431_v44 = vpop.xlane.xlu0 %430 }
 0x1ae   : > { %v454_v45 = vmul.f32 0.03125, %v431_v44 }
 0x1af   : > { %v434_v46 = vpop.xlane.xlu1 %433 }
 0x1b0   : > { %v2121_v47 = vsub.f32 %v394_v24, %v454_v45  ;;  %v455_v48 = vmul.f32 0.03125, %v434_v46  ;;  %v677_v24 = vld [vmem:[#allocation2 + $0x18] sm:$0xff]  ;;  %v1660_v46 = vld [vmem:[%s2341_s3 + $0x1] ss:$0 sm:$0xff] }
 0x1b1   : > { %v1768_v27 = vpack.c.bf16 %v678_v25, %v677_v24 }
 0x1b2   : > { %v2123_v49 = vsub.f32 %v408_v28, %v455_v48  ;;  %v470_v50 = vmul.f32 %v2121_v47, %v2121_v47  ;;  %v680_v28 = vld [vmem:[#allocation2 + $0x30] sm:$0xff] }
 0x1b3   : > { %v437_v51 = vpop.xlane.xlu1 %436  ;;  %1769 = vmatpush3.bf16.msra.mxu1 %v1768_v27  ;;  %v1771_v29 = vpack.c.bf16 %v680_v28, %v679_v26 }
 0x1b4   : > { %v456_v52 = vmul.f32 0.03125, %v437_v51  ;;  %v478_v53 = vsel %vm428_vm2, %v470_v50, 0.0  ;;  %v471_v54 = vmul.f32 %v2123_v49, %v2123_v49  ;;  %1770 = vmatprep.subr.bf16.mxu1 %v1973_v0  ;;  %v547_v51 = vrot.slane %v1660_v46, %v2105_v21 }
 0x1b5   : > { %479 = vadd.xlane.f32.xlu1 %v478_v53  ;;  %v1661_v53 = vld [vmem:[%s2341_s3 + $0x2] ss:$0 sm:$0xff] }
 0x1b6   : > { %v2130_v55 = vsub.f32 %v416_v30, %v456_v52  ;;  %v481_v58 = vsel %vm428_vm2, %v471_v54, 0.0 }
 0x1b7   : > { %v443_v56 = vpop.xlane.xlu1 %442  ;;  %1772 = vmatpush3.bf16.msra.mxu1 %v1771_v29 }
 0x1b8   : > { %v458_v57 = vmul.f32 0.03125, %v443_v56  ;;  %v472_v59 = vmul.f32 %v2130_v55, %v2130_v55  ;;  %1779 = vmatprep.subr.bf16.mxu1 %v1973_v0  ;;  %v555_v56 = vcombine.high %v547_v51, %v547_v51 }
 0x1b9   : > { %482 = vadd.xlane.f32.xlu1 %v481_v58 }
 0x1ba   : > { %v2135_v60 = vsub.f32 %v401_v33, %v458_v57  ;;  %v484_v61 = vsel %vm428_vm2, %v472_v59, 0.0  ;;  %v540_v57 = vcombine.high %v1660_v46, %v1660_v46  ;;  %v618_v59 = vrot.slane %v1661_v53, %v2105_v21 }
 0x1bb   : > { %485 = vadd.xlane.f32.xlu0 %v484_v61  ;;  %v440_v62 = vpop.xlane.xlu1 %439 }
 0x1bc   : > { %v457_v63 = vmul.f32 0.03125, %v440_v62  ;;  %v474_v2 = vmul.f32 %v2135_v60, %v2135_v60  ;;  %v634_v27 = vrot.slane %v618_v59, %v2105_v21 }
 0x1be   : > { %v2140_v3 = vsub.f32 %v418_v35, %v457_v63  ;;  %v490_v4 = vsel %vm428_vm2, %v474_v2, 0.0  ;;  %v611_v63 = vcombine.high %v1661_v53, %v1661_v53 }
 0x1bf   : > { %491 = vadd.xlane.f32.xlu0 %v490_v4  ;;  %v446_v5 = vpop.xlane.xlu1 %445 }
 0x1c0   : > { %v459_v6 = vmul.f32 0.03125, %v446_v5  ;;  %v473_v7 = vmul.f32 %v2140_v3, %v2140_v3  ;;  %v577_v5 = vrot.slane %v555_v56, %v2105_v21 }
 0x1c2   : > { %v2145_v8 = vsub.f32 %v415_v38, %v459_v6  ;;  %v487_v9 = vsel %vm428_vm2, %v473_v7, 0.0  ;;  %v626_v6 = vcombine.high %v618_v59, %v618_v59  ;;  %v554_v7 = vrot.slane %v540_v57, %v2105_v21 }
 0x1c3   : > { %v449_v10 = vpop.xlane.xlu1 %448  ;;  %488 = vadd.xlane.f32.xlu1 %v487_v9 }
 0x1c4   : > { %v460_v11 = vmul.f32 0.03125, %v449_v10  ;;  %v475_v12 = vmul.f32 %v2145_v8, %v2145_v8 }
 0x1c6   : > { %v2150_v13 = vsub.f32 %v417_v40, %v460_v11  ;;  %v493_v14 = vsel %vm428_vm2, %v475_v12, 0.0  ;;  %v563_v12 = vrot.slane %v547_v51, %v2105_v21 }
 0x1c7   : > { %494 = vadd.xlane.f32.xlu1 %v493_v14  ;;  %v452_v15 = vpop.xlane.xlu1 %451  ;;  %v587_v14 = vcombine.high %v577_v5, %v577_v5 }
 0x1c8   : > { %v461_v16 = vmul.f32 0.03125, %v452_v15  ;;  %v476_v17 = vmul.f32 %v2150_v13, %v2150_v13  ;;  %v585_v24 = vcombine.high %v563_v12, %v563_v12 }
 0x1ca   : > { %v2155_v18 = vsub.f32 %v419_v42, %v461_v16  ;;  %v496_v19 = vsel %vm428_vm2, %v476_v17, 0.0  ;;  %v556_v16 = vcombine.high %v554_v7, %v554_v7  ;;  %v625_v17 = vrot.slane %v611_v63, %v2105_v21 }
 0x1cb   : > { %497 = vadd.xlane.f32.xlu0 %v496_v19 }
 0x1cc   : > { %v477_v22 = vmul.f32 %v2155_v18, %v2155_v18  ;;  %v627_v29 = vcombine.high %v625_v17, %v625_v17 }
 0x1ce   : > { %v499_v23 = vsel %vm428_vm2, %v477_v22, 0.0  ;;  %v648_v22 = vrot.slane %v626_v6, %v2105_v21 }
 0x1cf   : > { %500 = vadd.xlane.f32.xlu1 %v499_v23 }
 0x242   : > { %v480_v30 = vpop.xlane.xlu1 %479 }
 0x243   : > { %v502_v36 = vmul.f32 0.03125, %v480_v30  ;;  %v658_v30 = vcombine.high %v648_v22, %v648_v22 }
 0x245   : > { %v510_v42 = vadd.f32 1e-05, %v502_v36 }
 0x246   : > { %v483_v31 = vpop.xlane.xlu1 %482 }
 0x247   : > { %v503_v33 = vmul.f32 0.03125, %v483_v31  ;;  %v584_v31 = vrot.slane %v556_v16, %v2105_v21 }
 0x248   : > { %v486_v32 = vpop.xlane.xlu0 %485 }
 0x249   : > { %v504_v34 = vmul.f32 0.03125, %v486_v32  ;;  %v511_v37 = vadd.f32 1e-05, %v503_v33  ;;  %v656_v33 = vcombine.high %v634_v27, %v634_v27 }
 0x24b   : > { %v512_v38 = vadd.f32 1e-05, %v504_v34  ;;  %1860 = vrsqrt.f32 %v511_v37 }
 0x24c   : > { %v492_v35 = vpop.xlane.xlu0 %491 }
 0x24d   : > { %v506_v39 = vmul.f32 0.03125, %v492_v35  ;;  %1862 = vrsqrt.f32 %v512_v38  ;;  %v655_v38 = vrot.slane %v627_v29, %v2105_v21 }
 0x24f   : > { %v514_v44 = vadd.f32 1e-05, %v506_v39  ;;  %v659_v51 = vcombine.high %v655_v38, %v655_v38 }
 0x250   : > { %v489_v40 = vpop.xlane.xlu1 %488 }
 0x251   : > { %v505_v41 = vmul.f32 0.03125, %v489_v40 }
 0x253   : > { %v513_v43 = vadd.f32 1e-05, %v505_v41 }
 0x254   : > { %v495_v45 = vpop.xlane.xlu1 %494 }
 0x255   : > { %1864 = vrsqrt.f32 %v513_v43  ;;  %v507_v48 = vmul.f32 0.03125, %v495_v45  ;;  %v1861_v62 = vpop.eup %1860  ;;  %v588_v45 = vcombine.high %v584_v31, %v584_v31 }
 0x256   : > { %1866 = vrsqrt.f32 %v510_v42  ;;  %v527_v23 = vmul.f32 %v1861_v62, %v2123_v49  ;;  %v570_v49 = vrot.slane %v554_v7, %v2105_v21  ;;  %v641_v42 = vrot.slane %v625_v17, %v2105_v21 }
 0x257   : > { %v515_v50 = vadd.f32 1e-05, %v507_v48  ;;  %1868 = vrsqrt.f32 %v514_v44  ;;  %v1863_v4 = vpop.eup %1862 }
 0x258   : > { %v498_v52 = vpop.xlane.xlu0 %497  ;;  %v528_v25 = vmul.f32 %v1863_v4, %v2130_v55  ;;  %v598_v34 = vmul.f32 %v577_v5, %v527_v23  ;;  %v586_v40 = vcombine.high %v570_v49, %v570_v49 }
 0x259   : > { %1870 = vrsqrt.f32 %v515_v50  ;;  %v508_v54 = vmul.f32 0.03125, %v498_v52  ;;  %v657_v50 = vcombine.high %v641_v42, %v641_v42 }
 0x25a   : > { %v599_v35 = vmul.f32 %v585_v24, %v528_v25  ;;  %v669_v43 = vadd.f32 %v648_v22, %v598_v34 }
 0x25b   : > { %v516_v58 = vadd.f32 1e-05, %v508_v54 }
 0x25c   : > { %v501_v61 = vpop.xlane.xlu1 %500 }
 0x25d   : > { %1872 = vrsqrt.f32 %v516_v58  ;;  %v509_v2 = vmul.f32 0.03125, %v501_v61 }
 0x25f   : > { %v1865_v9 = vpop.eup %1864  ;;  %v517_v10 = vadd.f32 1e-05, %v509_v2 }
 0x260   : > { %v1867_v11 = vpop.eup %1866  ;;  %v529_v15 = vmul.f32 %v1865_v9, %v2140_v3 }
 0x261   : > { %1874 = vrsqrt.f32 %v517_v10  ;;  %v1869_v19 = vpop.eup %1868  ;;  %v526_v28 = vmul.f32 %v1867_v11, %v2121_v47  ;;  %v1663_v11 = vld [vmem:[%s2341_s3 + $0x3] ss:$0 sm:$0xff] }
 0x262   : > { %v600_v3 = vmul.f32 %v587_v14, %v529_v15  ;;  %v530_v36 = vmul.f32 %v1869_v19, %v2135_v60 }
 0x263   : > { %v1871_v26 = vpop.eup %1870  ;;  %v597_v37 = vmul.f32 %v563_v12, %v526_v28 }
 0x264   : > { %v531_v32 = vmul.f32 %v1871_v26, %v2145_v8  ;;  %v671_v39 = vadd.f32 %v658_v30, %v600_v3  ;;  %v670_v8 = vadd.f32 %v656_v33, %v599_v35  ;;  %v601_v44 = vmul.f32 %v570_v49, %v530_v36 }
 0x265   : > { %v668_v48 = vadd.f32 %v634_v27, %v597_v37 }
 0x266   : > { %v602_v47 = vmul.f32 %v584_v31, %v531_v32  ;;  %v690_v54 = vcombine.low %v670_v8, %v671_v39  ;;  %v672_v56 = vadd.f32 %v641_v42, %v601_v44 }
 0x267   : > { %v1873_v55 = vpop.eup %1872  ;;  %v689_v58 = vcombine.low %v668_v48, %v669_v43 }
 0x268   : > { %v532_v41 = vmul.f32 %v1873_v55, %v2150_v13  ;;  %v673_v60 = vadd.f32 %v655_v38, %v602_v47  ;;  %v706_v62 = vrot.slane %v690_v54, %v2105_v21 }
 0x269   : > { %v699_v2 = vrot.slane %v689_v58, %v2105_v21 }
 0x26a   : > { %v603_v52 = vmul.f32 %v586_v40, %v532_v41  ;;  %v691_v61 = vcombine.low %v672_v56, %v673_v60 }
 0x26b   : > { %v1875_v46 = vpop.eup %1874  ;;  %v721_v6 = vcombine.low %v699_v2, %v706_v62 }
 0x26c   : > { %v533_v53 = vmul.f32 %v1875_v46, %v2155_v18  ;;  %v674_v59 = vadd.f32 %v657_v50, %v603_v52  ;;  %v713_v4 = vrot.slane %v691_v61, %v2105_v21 }
 0x26d   : > { %v729_v18 = vrot.slane %v721_v6, %v2105_v21 }
 0x26e   : > { %v604_v57 = vmul.f32 %v588_v45, %v533_v53 }
 0x270   : > { %v675_v13 = vadd.f32 %v659_v51, %v604_v57 }
 0x272   : > { %v692_v63 = vcombine.low %v674_v59, %v675_v13 }
 0x274   : > { %v720_v5 = vrot.slane %v692_v63, %v2105_v21 }
 0x276   : > { %v722_v7 = vcombine.low %v713_v4, %v720_v5 }
 0x278   : > { %v736_v9 = vrot.slane %v722_v7, %v2105_v21 }
 0x27a   : > { %v737_v10 = vcombine.low %v729_v18, %v736_v9 }
 0x27c   : > { %1718 = vmatmul.mubr.msk.f32.vlgmr.msra.gmra.mrb[0].mxu1 %vm738_vm3, %v737_v10 }
 0x27d   : > { %1739 = vmatprep.mubr.msk.f32.mxu1 %vm1974_vm0, %v1975_v1 }
 0x34f   : > { %v807_v12 = vpop.f32.mrb[0].mxu1 }
 0x350   : > { %v815_v14 = vadd.f32 %v1663_v11, %v807_v12  ;;  %v1719_v15 = vpop.f32.mrb[1].mxu1 }
 0x352   : > { %1876 = vtanh.f32 %v815_v14 }
 0x35c   : > { %v1877_v16 = vpop.eup %1876 }
 0x35d   : > { %v825_v17 = vrot.slane %v1877_v16, %v2105_v21  ;;  %v818_v19 = vcombine.high %v1877_v16, %v1877_v16 }
 0x35f   : > { %v841_v22 = vrot.slane %v825_v17, %v2105_v21  ;;  %v833_v23 = vcombine.high %v825_v17, %v825_v17  ;;  %v832_v24 = vrot.slane %v818_v19, %v2105_v21  ;;  %v1122_v19 = vld [vmem:[#allocation2 + $0x38] sm:$0xff] }
 0x361   : > { %v875_v25 = vsel %vm428_vm2, %v841_v22, 0.0  ;;  %v855_v26 = vrot.slane %v833_v23, %v2105_v21  ;;  %v863_v27 = vcombine.high %v841_v22, %v841_v22  ;;  %v834_v30 = vcombine.high %v832_v24, %v832_v24  ;;  %v1124_v23 = vld [vmem:[#allocation2 + $0x48] sm:$0xff] }
 0x362   : > { %876 = vadd.xlane.f32.xlu0 %v875_v25  ;;  %v848_v31 = vrot.slane %v832_v24, %v2105_v21  ;;  %v1125_v25 = vld [vmem:[#allocation2 + $0x50] sm:$0xff] }
 0x363   : > { %v878_v28 = vsel %vm428_vm2, %v855_v26, 0.0  ;;  %v865_v29 = vcombine.high %v855_v26, %v855_v26  ;;  %v881_v3 = vsel %vm428_vm2, %v863_v27, 0.0  ;;  %v862_v33 = vrot.slane %v834_v30, %v2105_v21  ;;  %v1263_v30 = vld [vmem:[#allocation2 + $0x68] sm:$0xff] }
 0x364   : > { %879 = vadd.xlane.f32.xlu1 %v878_v28  ;;  %v887_v34 = vsel %vm428_vm2, %v848_v31, 0.0  ;;  %v864_v35 = vcombine.high %v848_v31, %v848_v31  ;;  %v1262_v28 = vld [vmem:[#allocation2 + $0x60] sm:$0xff] }
 0x365   : > { %v884_v32 = vsel %vm428_vm2, %v865_v29, 0.0  ;;  %v890_v49 = vsel %vm428_vm2, %v862_v33, 0.0  ;;  %v866_v36 = vcombine.high %v862_v33, %v862_v33 }
 0x366   : > { %882 = vadd.xlane.f32.xlu0 %v881_v3  ;;  %v893_v55 = vsel %vm428_vm2, %v864_v35, 0.0  ;;  %v1264_v3 = vld [vmem:[#allocation2 + $0x70] sm:$0xff] }
 0x367   : > { %v896_v37 = vsel %vm428_vm2, %v866_v36, 0.0 }
 0x368   : > { %885 = vadd.xlane.f32.xlu1 %v884_v32 }
 0x36a   : > { %888 = vadd.xlane.f32.xlu0 %v887_v34 }
 0x36c   : > { %891 = vadd.xlane.f32.xlu1 %v890_v49 }
 0x36e   : > { %894 = vadd.xlane.f32.xlu0 %v893_v55 }
 0x370   : > { %897 = vadd.xlane.f32.xlu1 %v896_v37 }
 0x3ef   : > { %v877_v38 = vpop.xlane.xlu0 %876 }
 0x3f0   : > { %v899_v39 = vmul.f32 0.03125, %v877_v38 }
 0x3f1   : > { %v880_v47 = vpop.xlane.xlu1 %879 }
 0x3f2   : > { %v2215_v40 = vsub.f32 %v841_v22, %v899_v39  ;;  %v900_v41 = vmul.f32 0.03125, %v880_v47  ;;  %v1123_v22 = vld [vmem:[#allocation2 + $0x40] sm:$0xff] }
 0x3f3   : > { %v883_v42 = vpop.xlane.xlu0 %882  ;;  %v1774_v24 = vpack.c.bf16 %v1123_v22, %v1122_v19  ;;  %v1664_v39 = vld [vmem:[%s2341_s3 + $0x4] ss:$0 sm:$0xff] }
 0x3f4   : > { %v2217_v43 = vsub.f32 %v855_v26, %v900_v41  ;;  %v901_v8 = vmul.f32 0.03125, %v883_v42  ;;  %v915_v44 = vmul.f32 %v2215_v40, %v2215_v40  ;;  %v1777_v26 = vpack.c.bf16 %v1125_v25, %v1124_v23  ;;  %v1665_v42 = vld [vmem:[%s2341_s3 + $0x5] ss:$0 sm:$0xff] }
 0x3f5   : > { %v886_v45 = vpop.xlane.xlu1 %885  ;;  %1775 = vmatpush3.bf16.msra.mxu0 %v1774_v24 }
 0x3f6   : > { %v2221_v46 = vsub.f32 %v863_v27, %v901_v8  ;;  %v902_v48 = vmul.f32 0.03125, %v886_v45  ;;  %v923_v50 = vsel %vm428_vm2, %v915_v44, 0.0  ;;  %v916_v51 = vmul.f32 %v2217_v43, %v2217_v43  ;;  %1776 = vmatprep.subr.bf16.mxu0 %v1973_v0  ;;  %v1261_v27 = vld [vmem:[#allocation2 + $0x58] sm:$0xff] }
 0x3f7   : > { %v889_v60 = vpop.xlane.xlu0 %888  ;;  %924 = vadd.xlane.f32.xlu0 %v923_v50 }
 0x3f8   : > { %v2226_v52 = vsub.f32 %v865_v29, %v902_v48  ;;  %v903_v53 = vmul.f32 0.03125, %v889_v60  ;;  %v926_v54 = vsel %vm428_vm2, %v916_v51, 0.0  ;;  %v917_v56 = vmul.f32 %v2221_v46, %v2221_v46 }
 0x3f9   : > { %v892_v57 = vpop.xlane.xlu1 %891  ;;  %927 = vadd.xlane.f32.xlu1 %v926_v54  ;;  %1778 = vmatpush3.bf16.msra.mxu0 %v1777_v26  ;;  %v1780_v29 = vpack.c.bf16 %v1262_v28, %v1261_v27  ;;  %v992_v48 = vrot.slane %v1664_v39, %v2105_v21  ;;  %v1063_v51 = vrot.slane %v1665_v42, %v2105_v21 }
 0x3fa   : > { %v2231_v58 = vsub.f32 %v848_v31, %v903_v53  ;;  %v904_v59 = vmul.f32 0.03125, %v892_v57  ;;  %v929_v13 = vsel %vm428_vm2, %v917_v56, 0.0  ;;  %v918_v61 = vmul.f32 %v2226_v52, %v2226_v52  ;;  %1785 = vmatprep.subr.bf16.mxu0 %v1973_v0 }
 0x3fb   : > { %930 = vadd.xlane.f32.xlu0 %v929_v13  ;;  %v895_v62 = vpop.xlane.xlu0 %894  ;;  %1781 = vmatpush3.bf16.msra.mxu1 %v1780_v29  ;;  %v1783_v31 = vpack.c.bf16 %v1264_v3, %v1263_v30  ;;  %v985_v54 = vcombine.high %v1664_v39, %v1664_v39  ;;  %v1000_v13 = vcombine.high %v992_v48, %v992_v48 }
 0x3fc   : > { %v2236_v63 = vsub.f32 %v862_v33, %v904_v59  ;;  %v905_v2 = vmul.f32 0.03125, %v895_v62  ;;  %v932_v4 = vsel %vm428_vm2, %v918_v61, 0.0  ;;  %v919_v5 = vmul.f32 %v2231_v58, %v2231_v58  ;;  %1782 = vmatprep.subr.bf16.mxu1 %v1973_v0 }
 0x3fd   : > { %933 = vadd.xlane.f32.xlu1 %v932_v4  ;;  %v898_v6 = vpop.xlane.xlu1 %897  ;;  %v1056_v61 = vcombine.high %v1665_v42, %v1665_v42  ;;  %v1079_v27 = vrot.slane %v1063_v51, %v2105_v21 }
 0x3fe   : > { %v2241_v7 = vsub.f32 %v864_v35, %v905_v2  ;;  %v906_v18 = vmul.f32 0.03125, %v898_v6  ;;  %v935_v9 = vsel %vm428_vm2, %v919_v5, 0.0  ;;  %v920_v10 = vmul.f32 %v2236_v63, %v2236_v63 }
 0x3ff   : > { %936 = vadd.xlane.f32.xlu0 %v935_v9  ;;  %1784 = vmatpush3.bf16.msra.mxu1 %v1783_v31  ;;  %v1071_v2 = vcombine.high %v1063_v51, %v1063_v51  ;;  %v999_v6 = vrot.slane %v985_v54, %v2105_v21 }
 0x400   : > { %v2246_v11 = vsub.f32 %v866_v36, %v906_v18  ;;  %v938_v12 = vsel %vm428_vm2, %v920_v10, 0.0  ;;  %v921_v14 = vmul.f32 %v2241_v7, %v2241_v7  ;;  %1791 = vmatprep.subr.bf16.mxu1 %v1973_v0 }
 0x401   : > { %939 = vadd.xlane.f32.xlu1 %v938_v12  ;;  %v1008_v12 = vrot.slane %v992_v48, %v2105_v21  ;;  %v1001_v25 = vcombine.high %v999_v6, %v999_v6 }
 0x402   : > { %v941_v15 = vsel %vm428_vm2, %v921_v14, 0.0  ;;  %v922_v16 = vmul.f32 %v2246_v11, %v2246_v11  ;;  %v1022_v14 = vrot.slane %v1000_v13, %v2105_v21 }
 0x403   : > { %942 = vadd.xlane.f32.xlu0 %v941_v15  ;;  %v1070_v15 = vrot.slane %v1056_v61, %v2105_v21  ;;  %v1030_v22 = vcombine.high %v1008_v12, %v1008_v12 }
 0x404   : > { %v944_v17 = vsel %vm428_vm2, %v922_v16, 0.0  ;;  %v1032_v24 = vcombine.high %v1022_v14, %v1022_v14 }
 0x405   : > { %945 = vadd.xlane.f32.xlu1 %v944_v17  ;;  %v1093_v17 = vrot.slane %v1071_v2, %v2105_v21  ;;  %v1072_v3 = vcombine.high %v1070_v15, %v1070_v15 }
 0x407   : > { %v1103_v29 = vcombine.high %v1093_v17, %v1093_v17 }
 0x484   : > { %v925_v32 = vpop.xlane.xlu0 %924 }
 0x485   : > { %v947_v33 = vmul.f32 0.03125, %v925_v32 }
 0x486   : > { %v928_v34 = vpop.xlane.xlu1 %927 }
 0x487   : > { %v948_v35 = vmul.f32 0.03125, %v928_v34  ;;  %v955_v49 = vadd.f32 1e-05, %v947_v33  ;;  %v1101_v33 = vcombine.high %v1079_v27, %v1079_v27 }
 0x488   : > { %v931_v36 = vpop.xlane.xlu0 %930 }
 0x489   : > { %v956_v55 = vadd.f32 1e-05, %v948_v35  ;;  %v949_v37 = vmul.f32 0.03125, %v931_v36 }
 0x48a   : > { %v934_v38 = vpop.xlane.xlu1 %933 }
 0x48b   : > { %1878 = vrsqrt.f32 %v956_v55  ;;  %v957_v47 = vadd.f32 1e-05, %v949_v37  ;;  %v950_v41 = vmul.f32 0.03125, %v934_v38 }
 0x48c   : > { %1880 = vrsqrt.f32 %v955_v49  ;;  %v937_v8 = vpop.xlane.xlu0 %936  ;;  %v1029_v49 = vrot.slane %v1001_v25, %v2105_v21 }
 0x48d   : > { %1882 = vrsqrt.f32 %v957_v47  ;;  %v958_v44 = vadd.f32 1e-05, %v950_v41  ;;  %v951_v45 = vmul.f32 0.03125, %v937_v8  ;;  %v1086_v41 = vrot.slane %v1070_v15, %v2105_v21 }
 0x48e   : > { %v940_v50 = vpop.xlane.xlu1 %939  ;;  %v1033_v42 = vcombine.high %v1029_v49, %v1029_v49 }
 0x48f   : > { %1884 = vrsqrt.f32 %v958_v44  ;;  %v959_v60 = vadd.f32 1e-05, %v951_v45  ;;  %v952_v53 = vmul.f32 0.03125, %v940_v50  ;;  %v1102_v51 = vcombine.high %v1086_v41, %v1086_v41 }
 0x490   : > { %v943_v56 = vpop.xlane.xlu0 %942 }
 0x491   : > { %1886 = vrsqrt.f32 %v959_v60  ;;  %v960_v57 = vadd.f32 1e-05, %v952_v53  ;;  %v953_v59 = vmul.f32 0.03125, %v943_v56 }
 0x492   : > { %v946_v62 = vpop.xlane.xlu1 %945 }
 0x493   : > { %1888 = vrsqrt.f32 %v960_v57  ;;  %v961_v4 = vadd.f32 1e-05, %v953_v59  ;;  %v954_v5 = vmul.f32 0.03125, %v946_v62 }
 0x495   : > { %v1879_v18 = vpop.eup %1878  ;;  %1890 = vrsqrt.f32 %v961_v4  ;;  %v962_v9 = vadd.f32 1e-05, %v954_v5 }
 0x496   : > { %v1881_v10 = vpop.eup %1880  ;;  %v972_v19 = vmul.f32 %v1879_v18, %v2217_v43  ;;  %v1015_v43 = vrot.slane %v999_v6, %v2105_v21 }
 0x497   : > { %v1883_v16 = vpop.eup %1882  ;;  %1892 = vrsqrt.f32 %v962_v9  ;;  %v971_v28 = vmul.f32 %v1881_v10, %v2215_v40  ;;  %v1100_v40 = vrot.slane %v1072_v3, %v2105_v21 }
 0x498   : > { %v973_v23 = vmul.f32 %v1883_v16, %v2221_v46  ;;  %v1043_v32 = vmul.f32 %v1022_v14, %v972_v19  ;;  %v1340_v14 = vld [vmem:[#allocation2 + $0x80] sm:$0xff]  ;;  %v1341_v19 = vld [vmem:[#allocation2 + $0x88] sm:$0xff] }
 0x499   : > { %v1885_v26 = vpop.eup %1884  ;;  %v1042_v55 = vmul.f32 %v1008_v12, %v971_v28  ;;  %v1104_v60 = vcombine.high %v1100_v40, %v1100_v40  ;;  %v1339_v12 = vld [vmem:[#allocation2 + $0x78] sm:$0xff] }
 0x49a   : > { %v974_v30 = vmul.f32 %v1885_v26, %v2226_v52  ;;  %v1044_v34 = vmul.f32 %v1030_v22, %v973_v23  ;;  %v1031_v52 = vcombine.high %v1015_v43, %v1015_v43  ;;  %v1114_v47 = vadd.f32 %v1093_v17, %v1043_v32  ;;  %v1342_v22 = vld [vmem:[#allocation2 + $0x90] sm:$0xff] }
 0x49b   : > { %v1887_v31 = vpop.eup %1886  ;;  %v1113_v50 = vadd.f32 %v1079_v27, %v1042_v55  ;;  %v1786_v16 = vpack.c.bf16 %v1340_v14, %v1339_v12  ;;  %v1789_v23 = vpack.c.bf16 %v1342_v22, %v1341_v19  ;;  %v1458_v55 = vld [vmem:[#allocation2 + $0xa8] sm:$0xff] }
 0x49c   : > { %v1045_v35 = vmul.f32 %v1032_v24, %v974_v30  ;;  %v975_v46 = vmul.f32 %v1887_v31, %v2231_v58  ;;  %v1115_v8 = vadd.f32 %v1101_v33, %v1044_v34  ;;  %v1260_v24 = vld [vmem:[%s2341_s3 + $0x7] sm:$0x1]  ;;  %v1265_v30 = vld [vmem:[%s2341_s3 + $0x8] sm:$0x1]  ;;  %v1423_v31 = vsub.s32 0, %v2102_v20 }
 0x49d   : > { %v1889_v36 = vpop.eup %1888  ;;  %v1134_v57 = vcombine.low %v1113_v50, %v1114_v47  ;;  %1740 = vmatmul.mubr.msk.f32.vlgmr.msra.gmra.mrb[2].mxu1 %vm738_vm3, %v1260_v24 }
 0x49e   : > { %v1116_v37 = vadd.f32 %v1103_v29, %v1045_v35  ;;  %v976_v38 = vmul.f32 %v1889_v36, %v2236_v63  ;;  %v1046_v44 = vmul.f32 %v1015_v43, %v975_v46  ;;  %1761 = vmatprep.mubr.msk.f32.mxu1 %vm1974_vm0, %v1975_v1  ;;  %v1457_v36 = vld [vmem:[#allocation2 + $0xa0] sm:$0xff] }
 0x49f   : > { %v1891_v39 = vpop.eup %1890 }
 0x4a0   : > { %v1047_v45 = vmul.f32 %v1029_v49, %v976_v38  ;;  %v977_v58 = vmul.f32 %v1891_v39, %v2241_v7  ;;  %v1135_v53 = vcombine.low %v1115_v8, %v1116_v37  ;;  %v1117_v59 = vadd.f32 %v1086_v41, %v1046_v44  ;;  %v1456_v49 = vld [vmem:[#allocation2 + $0x98] sm:$0xff] }
 0x4a1   : > { %v1893_v48 = vpop.eup %1892  ;;  %v1144_v7 = vrot.slane %v1134_v57, %v2105_v21  ;;  %v1792_v37 = vpack.c.bf16 %v1457_v36, %v1456_v49 }
 0x4a2   : > { %v1118_v54 = vadd.f32 %v1100_v40, %v1047_v45  ;;  %v1048_v56 = vmul.f32 %v1031_v52, %v977_v58  ;;  %v978_v63 = vmul.f32 %v1893_v48, %v2246_v11  ;;  %v1151_v4 = vrot.slane %v1135_v53, %v2105_v21  ;;  %v1459_v40 = vld [vmem:[#allocation2 + $0xb0] sm:$0xff] }
 0x4a3   : > { %1793 = vmatpush3.bf16.msra.mxu1 %v1792_v37  ;;  %v1795_v38 = vpack.c.bf16 %v1459_v40, %v1458_v55 }
 0x4a4   : > { %v1049_v13 = vmul.f32 %v1033_v42, %v978_v63  ;;  %v1136_v61 = vcombine.low %v1117_v59, %v1118_v54  ;;  %v1119_v62 = vadd.f32 %v1102_v51, %v1048_v56  ;;  %v1166_v9 = vcombine.low %v1144_v7, %v1151_v4  ;;  %1794 = vmatprep.subr.bf16.mxu1 %v1973_v0 }
 0x4a6   : > { %v1120_v2 = vadd.f32 %v1104_v60, %v1049_v13  ;;  %v1158_v6 = vrot.slane %v1136_v61, %v2105_v21  ;;  %v1174_v11 = vrot.slane %v1166_v9, %v2105_v21 }
 0x4a7   : > { %1796 = vmatpush3.bf16.msra.mxu1 %v1795_v38 }
 0x4a8   : > { %v1137_v5 = vcombine.low %v1119_v62, %v1120_v2 }
 0x4aa   : > { %v1165_v18 = vrot.slane %v1137_v5, %v2105_v21 }
 0x4ac   : > { %v1167_v10 = vcombine.low %v1158_v6, %v1165_v18  ;;  %v1460_v6 = vld [vmem:[%s2341_s3 + $0xa] sm:$0x1] }
 0x4ae   : > { %v1181_v15 = vrot.slane %v1167_v10, %v2105_v21  ;;  %v1667_v21 = vld [vmem:[%s2341_s3 + $0x6] ss:$0 sm:$0xff] }
 0x4b0   : > { %v1182_v17 = vcombine.low %v1174_v11, %v1181_v15 }
 0x4b2   : > { %1729 = vmatmul.mubr.msk.f32.vlgmr.msra.gmra.mrb[2].mxu0 %vm738_vm3, %v1182_v17 }
 0x4b3   : > { %1787 = vmatpush3.bf16.msra.mxu0 %v1786_v16  ;;  %1750 = vmatprep.mubr.msk.f32.mxu0 %vm1974_vm0, %v1975_v1  ;;  %v1669_v1 = vld [vmem:[%s2341_s3 + $0x9] ss:$0 sm:$0xff] }
 0x4b4   : > { %1788 = vmatprep.subr.bf16.mxu0 %v1973_v0 }
 0x4b7   : > { %1790 = vmatpush3.bf16.msra.mxu0 %v1789_v23 }
 0x570   : > { %v1335_v28 = vpop.f32.mrb[2].mxu1 }
 0x571   : > { %v1741_v29 = vpop.f32.mrb[3].mxu1  ;;  %v1336_v3 = vadd.f32 %v1335_v28, %v1265_v30 }
 0x573   : > { %v1424_v32 = vrot.slane %v1336_v3, %v1423_v31 }
 0x585   : > { %v1251_v25 = vpop.f32.mrb[2].mxu0 }
 0x586   : > { %v1259_v26 = vadd.f32 %v1667_v21, %v1251_v25  ;;  %v1730_v27 = vpop.f32.mrb[3].mxu0 }
 0x588   : > { %1751 = vmatmul.mubr.msk.f32.vlgmr.msra.gmra.mrb[4].mxu0 %vm738_vm3, %v1259_v26 }
 0x65b   : > { %v1417_v33 = vpop.f32.mrb[4].mxu0 }
 0x65c   : > { %v1418_v43 = vadd.f32 %v1669_v1, %v1417_v33  ;;  %v1752_v34 = vpop.f32.mrb[5].mxu0 }
 0x65e   : > { %v1425_v35 = vmul.f32 %v1424_v32, %v1418_v43 }
 0x660   : > { %v1426_v46 = vsel %vm738_vm3, %v1425_v35, 0.0 }
 0x661   : > { %1427 = vadd.xlane.f32.xlu0 %v1426_v46 }
 0x6ee   : > { %v1428_v20 = vpop.xlane.xlu0 %1427 }
 0x6ef   : > { %v1429_v52 = vmul.f32 0.17677669, %v1428_v20 }
 0x6f1   : > { %v1430_v39 = vrot.slane %v1429_v52, 4 }
 0x6f3   : > { %v1431_v47 = vmax.f32 %v1429_v52, %v1430_v39 }
 0x6f5   : > { %v1432_v41 = vrot.slane %v1431_v47, 2 }
 0x6f7   : > { %v1433_v42 = vmax.f32 %v1431_v47, %v1432_v41 }
 0x6f9   : > { %v1434_v8 = vrot.slane %v1433_v42, 1 }
 0x6fb   : > { %v1435_v44 = vmax.f32 %v1433_v42, %v1434_v8 }
 0x6fd   : > { %v1436_v45 = vsub.f32 %v1429_v52, %v1435_v44 }
 0x6ff   : > { %v1437_v58 = vmul.f32 1.442695, %v1436_v45 }
 0x701   : > { %1894 = vpow2.f32 %v1437_v58 }
 0x70b   : > { %v1895_v48 = vpop.eup %1894 }
 0x70c   : > { %v1439_v50 = vrot.slane %v1895_v48, 4 }
 0x70e   : > { %v1440_v51 = vadd.f32 %v1895_v48, %v1439_v50 }
 0x710   : > { %v1441_v60 = vrot.slane %v1440_v51, 2 }
 0x712   : > { %v1442_v53 = vadd.f32 %v1441_v60, %v1440_v51 }
 0x714   : > { %v1443_v54 = vrot.slane %v1442_v53, 1 }
 0x716   : > { %v1444_v56 = vadd.f32 %v1443_v54, %v1442_v53 }
 0x718   : > { %1896 = vrcp.f32 %v1444_v56 }
 0x722   : > { %v1897_v0 = vpop.eup %1896 }
 0x723   : > { %v1446_v63 = vmul.f32 %v1897_v0, %v1895_v48 }
 0x725   : > { %v1447_v57 = vmul.f32 %v1446_v63, %v1418_v43 }
 0x727   : > { %v1449_v59 = vsel %vm1448_vm4, %v1447_v57, 0.0 }
 0x728   : > { %v1450_v13 = vrot.slane %v1449_v59, 4 }
 0x72a   : > { %v1451_v61 = vadd.f32 %v1450_v13, %v1449_v59 }
 0x72c   : > { %v1452_v62 = vrot.slane %v1451_v61, 2 }
 0x72e   : > { %v1453_v2 = vadd.f32 %v1452_v62, %v1451_v61 }
 0x730   : > { %v1454_v4 = vrot.slane %v1453_v2, 1 }
 0x732   : > { %v1455_v5 = vadd.f32 %v1454_v4, %v1453_v2 }
 0x734   : > { %1462 = vrot.lane.b32.xlu1 %v1455_v5, %s1978_s15 }
 0x7a6   : > { %v1463_v7 = vpop.permute.xlu1 %1462 }
 0x7a7   : > { %1762 = vmatmul.mubr.msk.f32.vlgmr.msra.gmra.mrb[4].mxu1 %vm738_vm3, %v1463_v7 }
 0x87a   : > { %v1532_v18 = vpop.f32.mrb[4].mxu1 }
 0x87b   : > { %v1533_v9 = vadd.f32 %v1532_v18, %v1460_v6  ;;  %v1763_v10 = vpop.f32.mrb[5].mxu1 }
 0x87d   : > { %1536 = vst.msk [vmem:[%s272_s7] sm:$0x1] %vm428_vm2, %v1533_v9 }
 0x87e PF: > { %s15_s19 = sadd.s32 1, %s1968_s19   ;;  %s2351_s15 = smov %s1960_s17 }
 0x87f   : > { %p12_p7 = scmp.ge.s32.totalorder %s15_s19, 8   ;;  %s2352_s16 = smov %s1964_s18 }
 0x880   : > { %s2353_s17 = smov %s2356_s21  ;;  %s2354_s18 = smov %s2360_s22 }
 0x881   :  { %14 = sbr.rel (!%p12_p7) target bundleno = 3 (0x3), region = 74 }
 0x888   :  { %1562 = vsyncpa [#allocation3], 1 }
 0x889   :  { %1564 = vsyncpa [#allocation3 + $0x1], 1 }

// kernel: _lambda_.3
= control target key start
LH: loop header
LB: loop body
LE: loop exit
PB: predicated region body
PF: predicated region fallthrough
CT: control target
= control target key end

     0   :  { %11 = vsyncpa [#allocation5], 0  ;;  %s4632_s18 = smov 0   ;;  %s4634_s19 = smov 0   ;;  %s5503_s0 = inlined_call_operand.vmem [shape: f32[2,3,8,16], index: 0, kind: input, shape index: {}]   ;;  %s5504_s1 = inlined_call_operand.vmem [shape: f32[2,3,1,32], index: 1, kind: input, shape index: {}]   ;;  %s5505_s2 = inlined_call_operand.hbm [shape: f32[768,128], index: 2, kind: input, shape index: {}]   ;;  %s5506_s3 = inlined_call_operand.vmem [shape: f32[40,128], index: 3, kind: input, shape index: {}]   ;;  %s5507_s4 = inlined_call_operand.vmem [shape: f32[2,3,8,128], index: 4, kind: output, shape index: {0}]   ;;  %s5508_s5 = inlined_call_operand.vmem [shape: f32[2,3,1,128], index: 5, kind: output, shape index: {1}]  }
   0x1   :  { %s4636_s20 = smov 0   ;;  %s4638_s21 = smov 0  }
   0x2   :  { %s4640_s22 = smov 0  }
   0x3 LB: > { %s3716_s23 = sadd.s32 4294967295, %s4581_s22   ;;  %s26_s24 = sadd.s32 1, %s4573_s20  ;;  %s4581_s22 = sphi %s4640_s22, %s17_s22   ;;  %s4577_s21 = sphi %s4638_s21, %s5520_s21   ;;  %s4573_s20 = sphi %s4636_s20, %s5519_s20   ;;  %s4569_s19 = sphi %s4634_s19, %s5518_s19   ;;  %s4565_s18 = sphi %s4632_s18, %s5517_s18  }
   0x4   : > { %p27_p0 = scmp.ge.s32.totalorder %s26_s24, 3  ;;  %s29_s25 = sadd.s32 1, %s4577_s21 }
   0x5   : > { %p3718_p1 = scmp.ge.s32.totalorder %s4581_s22, 1  ;;  %p174_p2 = scmp.lt.s32.totalorder %s4581_s22, 7 }
   0x6   : > { %s5522_s24 = smov (%p27_p0, %s26_s24), 0  ;;  %s5524_s25 = smov (!%p27_p0, %s29_s25), %s4577_s21 }
   0x7   : > { %p4665_p3 = pnand %p3718_p1, %p174_p2  ;;  %p31_p4 = scmp.ge.s32.totalorder %s5524_s25, 2 }
   0x8   : > { %p4669_p5 = scmp.eq.s32.totalorder %s3716_s23, 0  ;;  %s4583_s28 = smov [#allocation4]  }
   0x9   : > { %s5512_s26 = scalar_select %p4665_p3, 1, 0 }
   0xa   : > { %s5513_s27 = scalar_select %p4669_p5, 1, 0 }
   0xb   : > { %p4307_p6 = pneg %p4665_p3  ;;  %s5526_s25 = smov (%p31_p4, %s5524_s25), 0 }
   0xc   : > { %s192_s29 = sshll.u32 %s4583_s28, 4  ;;  %s4511_s8 = scalar_lea.hbm %s5505_s2, 12288  ;;  %s193_s29 = int_to_ptr.vmem [resolvable:$true] %s192_s29 }
   0xd   : > { %p4679_p7 = pnand %p4669_p5, %p4307_p6  ;;  %p4512_p8 = scmp.ne.s32.totalorder %s5505_s2, %s4511_s8 }
   0xe   : > { %p4518_p12 = scmp.lt.u32.totalorder %s4511_s8, %s5505_s2 }
   0xf   : > { %p4513_p9 = pneg %p4679_p7 }
  0x11   : > { %p4514_p10 = pnand %p4513_p9, %p4512_p8 }
  0x13   : > { %p4515_p11 = pneg %p4514_p10 }
  0x15   : > { %p4520_p13 = pnand %p4518_p12, %p4515_p11 }
  0x17   : > { %4523 = shalt.err (!%p4520_p13)
}
  0x18   : > { %s4524_s13 = scalar_lea.vmem %s193_s29, 12288  ;;  %p4532_p4 = scmp.lt.s32.totalorder %s193_s29, %s193_s29 }
  0x19   : > { %p4525_p0 = scmp.ne.s32.totalorder %s193_s29, %s4524_s13  ;;  %p4533_p6 = scmp.lt.s32.totalorder %s4524_s13, %s4524_s13 }
  0x1b   : > { %p4527_p1 = pnand %p4525_p0, %p4513_p9  ;;  %p4534_p5 = por %p4533_p6, %p4532_p4 }
  0x1d   : > { %p4528_p2 = pneg %p4527_p1 }
  0x1f   : > { %p4535_p3 = pnand %p4534_p5, %p4528_p2 }
  0x21   : > { %4538 = shalt.err (!%p4535_p3)
}
  0x22   : > { %s4584_s14 = smov 128   ;;  %s4585_s15 = smov 8  }
  0x23   : > { %4310 = dma.hbm_to_vmem [thread:$0]  (!%p4679_p7), %s5505_s2, 12288, %s193_s29, [#allocation5], %s4584_s14, %s4584_s14, %s4585_s15  }
  0x24   : > { %p5515_p8 = scmp.ne.s32.totalorder %s5512_s26, 0 }
  0x25   : > { %p5516_p10 = scmp.ne.s32.totalorder (!%p5515_p8), %s5513_s27, 0 }
  0x26   : > { %211 = sbr.rel (%p5515_p8) target bundleno = 6496 (0x1960), region = 36 }
  0x2d   : > { %4560 = dma.done.wait (%p5516_p10), [#allocation5], 12288  }
  0x2e   : > { %4562 = vsyncadd (%p5516_p10), [#allocation5], 4294955008  ;;  %p244_p3 = scmp.lt.s32.totalorder %s4569_s19, 1  ;;  %p246_p5 = scmp.lt.s32.totalorder %s4565_s18, 2 }
  0x2f   : > { %p3723_p7 = scmp.ne.s32.totalorder %s4565_s18, 0 }
  0x30   : > { %s245_s23 = scalar_select %p244_p3, %s4569_s19, 1 }
  0x31   : > { %s247_s28 = scalar_select %p246_p5, %s4565_s18, 2 }
  0x32   : > { %s4302_s30 = smul.u32 3, %s245_s23  ;;  %v263_v0 = vld [vmem:[%s5506_s3 + $0x20] sm:$0x1] (!%p3723_p7)  ;;  %vm264_vm0 = vcmask (!%p3723_p7), 122880   ;;  %v3724_v1 = vld [vmem:[%s5506_s3 + $0x21] ss:$0 sm:$0xff] (!%p3723_p7) }
  0x33   : > { %262 = sbr.rel (%p3723_p7) target bundleno = 58 (0x3a), region = 44  ;;  %vm271_vm1 = vcmask (!%p3723_p7), 130048   ;;  %265 = vst.msk [vmem:[#allocation2] sm:$0x1] (!%p3723_p7), %vm264_vm0, %v263_v0 }
  0x34   : > { %s4709_s6 = sadd.s32 %s4302_s30, %s247_s28  ;;  %272 = vst.msk [vmem:[#allocation3] sm:$0xff] (!%p3723_p7), %vm271_vm1, %v3724_v1 }
  0x35   : > { %s3722_s26 = sshll.u32 %s4709_s6, 3  ;;  %s258_s8 = scalar_lea.vmem %s5508_s5, %s4709_s6 }
  0x36   : > { %s4719_s10 = scalar_lea.vmem %s5507_s4, %s3722_s26 }
  0x3a PF: > { %v285_v2 = vld [vmem:[#allocation4] sm:$0xff]  ;;  %v286_v3 = vld [vmem:[#allocation4 + $0x8] sm:$0xff]  ;;  %s3725_s15 = sshll.u32 %s4565_s18, 3  ;;  %v4586_v4 = vmov 0.0|0.0   ;;  %vm4587_vm2 = vmmov 0   ;;  %v4588_v6 = vmov 0.0   ;;  %v451_v19 = vlaneseq }
  0x3b   : > { %4143 = vmatprep.subr.bf16.mxu0 %v4586_v4  ;;  %v4144_v5 = vpack.c.bf16 %v286_v3, %v285_v2  ;;  %3889 = vmatprep.mubr.msk.f32.mxu0 %vm4587_vm2, %v4588_v6  ;;  %s274_s16 = smul.u32 24, %s4569_s19  ;;  %v366_v7 = vld [vmem:[#allocation4 + $0x10] sm:$0xff]  ;;  %v367_v8 = vld [vmem:[#allocation4 + $0x18] sm:$0xff]  ;;  %vm287_vm3 = vcmask 130048   ;;  %s4589_s7 = smov 96   ;;  %vm513_vm4 = vcmask 254976  }
  0x3c   : > { %4149 = vmatprep.subr.bf16.mxu1 %v4586_v4  ;;  %3915 = vmatprep.mubr.msk.f32.mxu1 %vm4587_vm2, %v4588_v6  ;;  %v4147_v9 = vpack.c.bf16 %v367_v8, %v366_v7  ;;  %v283_v11 = vld [vmem:[#allocation3] sm:$0xff]  ;;  %v3727_v12 = vld [vmem:[%s5506_s3] ss:$0 sm:$0xff]  ;;  %v4590_v17 = vmov 1983009808   ;;  %v4751_v21 = vshrl.u32 %v451_v19, 7 }
  0x3d   : > { %4145 = vmatpush3.bf16.msra.mxu0 %v4144_v5  ;;  %s275_s17 = sadd.s32 %s3725_s15, %s274_s16  ;;  %v449_v18 = vunpack.c.l.s4 %v4590_v17  ;;  %v4591_v22 = vmov 1934713408   ;;  %s4592_s27 = smov 32   ;;  %vm673_vm5 = vcmask 261120   ;;  %vm696_vm6 = vcmask 523264  }
  0x3e   : > { %s276_s30 = scalar_lea.vmem %s5503_s0, %s275_s17  ;;  %4146 = vmatprep.subr.bf16.mxu0 %v4586_v4  ;;  %v480_v23 = vunpack.c.l.s4 %v4591_v22  ;;  %s278_s16 = smul.u32 3, %s4569_s19  ;;  %vm1589_vm7 = vcmask 60416   ;;  %vm1758_vm8 = vcmask 64512   ;;  %vm1761_vm9 = vcmask 195584  }
  0x3f   : > { %v277_v10 = vld [vmem:[%s276_s30] sm:$0xff]  ;;  %v450_v20 = vunpack.c.0.s8 %v449_v18  ;;  %s4593_s14 = smov 104   ;;  %s4594_s15 = smov 120   ;;  %vm3530_vm10 = vcmask 122880   ;;  %vm3001_vm11 = vcmask 253952   ;;  %vm3555_vm12 = vcmask 785408  }
  0x40   : > { %3890 = vmatmul.mubr.msk.f32.vlgmr.msra.gmra.mrb[0].mxu0 %vm287_vm3, %v277_v10  ;;  %v481_v25 = vunpack.c.0.s8 %v480_v23  ;;  %s279_s17 = sadd.s32 %s4565_s18, %s278_s16  ;;  %s4595_s16 = smov 112   ;;  %vm3557_vm13 = vcmask 850944   ;;  %vm3559_vm14 = vcmask 859136   ;;  %vm3561_vm15 = vcmask 990208  }
  0x41   : > { %4148 = vmatpush3.bf16.msra.mxu0 %v4147_v9  ;;  %3896 = vmatprep.mubr.msk.f32.mxu0 %vm4587_vm2, %v4588_v6  ;;  %v4754_v24 = vsub.s32 %v450_v20, %v4751_v21  ;;  %s280_s30 = scalar_lea.vmem %s5504_s1, %s279_s17  ;;  %s4596_s17 = smov 16   ;;  %vm3584_vm0 = vcmask 982016  }
  0x42   : > { %4161 = vmatprep.subr.bf16.mxu0 %v4586_v4  ;;  %v4759_v29 = vsub.s32 %v481_v25, %v4751_v21  ;;  %s4597_s23 = smov 8   ;;  %s4598_s28 = smov 24  }
  0x43   : > { %s4601_s19 = smov 88  }
  0x48   : > { %3897 = vmatmul.mubr.msk.f32.vlgmr.msra.gmra.mrb[0].mxu0 %vm287_vm3, %v283_v11 }
  0x49   : > { %3934 = vmatprep.mubr.msk.f32.mxu0 %vm4587_vm2, %v4588_v6 }
 0x11b   : > { %v437_v13 = vpop.f32.mrb[0].mxu0 }
 0x11c   : > { %v4287_v14 = vadd.f32 %v3727_v12, %v437_v13  ;;  %v3898_v15 = vpop.f32.mrb[1].mxu0 }
 0x11e   : > { %4372 = vtanh.f32 %v4287_v14 }
 0x128   : > { %v4373_v16 = vpop.eup %4372 }
 0x129   : > { %444 = vrot.lane.b32.xlu0 %v4373_v16, %s4589_s7  ;;  %v454_v27 = vrot.slane %v4373_v16, %v4754_v24  ;;  %v447_v35 = vcombine.high %v4373_v16, %v4588_v6 }
 0x12b   : > { %v461_v40 = vrot.slane %v447_v35, %v4754_v24  ;;  %v688_v35 = vld [vmem:[#allocation4 + $0x20] sm:$0xff] }
 0x19b   : > { %v445_v26 = vpop.permute.xlu0 %444 }
 0x19c   : > { %v469_v28 = vrot.slane %v445_v26, %v4754_v24  ;;  %v462_v30 = vcombine.high %v445_v26, %v4588_v6 }
 0x19e   : > { %v477_v31 = vcombine.low %v454_v27, %v469_v28  ;;  %v478_v32 = vcombine.high %v454_v27, %v469_v28  ;;  %v476_v36 = vrot.slane %v462_v30, %v4754_v24 }
 0x1a0   : > { %v492_v33 = vrot.slane %v478_v32, %v4759_v29  ;;  %v485_v34 = vrot.slane %v477_v31, %v4759_v29  ;;  %v493_v43 = vcombine.low %v461_v40, %v476_v36  ;;  %v494_v46 = vcombine.high %v461_v40, %v476_v36  ;;  %v689_v36 = vld [vmem:[#allocation4 + $0x28] sm:$0xff] }
 0x1a2   : > { %v520_v37 = vsel %vm513_vm4, %v492_v33, 0.0  ;;  %v514_v38 = vsel %vm513_vm4, %v485_v34, 0.0  ;;  %v509_v39 = vcombine.high %v485_v34, %v4588_v6  ;;  %v510_v42 = vcombine.high %v492_v33, %v4588_v6 }
 0x1a3   : > { %521 = vadd.xlane.f32.xlu1 %v520_v37  ;;  %515 = vadd.xlane.f32.xlu0 %v514_v38  ;;  %v501_v45 = vrot.slane %v493_v43, %v4759_v29  ;;  %v508_v48 = vrot.slane %v494_v46, %v4759_v29  ;;  %v690_v37 = vld [vmem:[#allocation4 + $0x30] sm:$0xff]  ;;  %v4150_v38 = vpack.c.bf16 %v689_v36, %v688_v35 }
 0x1a4   : > { %v517_v41 = vsel %vm513_vm4, %v509_v39, 0.0  ;;  %v523_v44 = vsel %vm513_vm4, %v510_v42, 0.0 }
 0x1a5   : > { %v526_v47 = vsel %vm513_vm4, %v501_v45, 0.0  ;;  %v532_v49 = vsel %vm513_vm4, %v508_v48, 0.0  ;;  %v511_v50 = vcombine.high %v501_v45, %v4588_v6  ;;  %v512_v52 = vcombine.high %v508_v48, %v4588_v6  ;;  %4151 = vmatpush3.bf16.msra.mxu1 %v4150_v38 }
 0x1a6   : > { %4152 = vmatprep.subr.bf16.mxu1 %v4586_v4 }
 0x1a7   : > { %518 = vadd.xlane.f32.xlu1 %v517_v41  ;;  %v529_v51 = vsel %vm513_vm4, %v511_v50, 0.0  ;;  %v535_v53 = vsel %vm513_vm4, %v512_v52, 0.0  ;;  %v692_v41 = vld [vmem:[#allocation4 + $0x40] sm:$0xff] }
 0x1ab   : > { %524 = vadd.xlane.f32.xlu1 %v523_v44 }
 0x1af   : > { %527 = vadd.xlane.f32.xlu1 %v526_v47 }
 0x1b3   : > { %533 = vadd.xlane.f32.xlu1 %v532_v49 }
 0x1b7   : > { %530 = vadd.xlane.f32.xlu1 %v529_v51 }
 0x1bb   : > { %536 = vadd.xlane.f32.xlu1 %v535_v53 }
 0x230   : > { %v522_v54 = vpop.xlane.xlu1 %521  ;;  %v516_v55 = vpop.xlane.xlu0 %515 }
 0x231   : > { %v541_v56 = vmul.f32 0.03125, %v522_v54  ;;  %v539_v57 = vmul.f32 0.03125, %v516_v55 }
 0x233   : > { %v4781_v58 = vsub.f32 %v492_v33, %v541_v56  ;;  %v4783_v59 = vsub.f32 %v485_v34, %v539_v57 }
 0x234   : > { %v519_v60 = vpop.xlane.xlu1 %518 }
 0x235   : > { %v540_v61 = vmul.f32 0.03125, %v519_v60  ;;  %v557_v62 = vmul.f32 %v4781_v58, %v4781_v58  ;;  %v555_v63 = vmul.f32 %v4783_v59, %v4783_v59 }
 0x237   : > { %v4789_v0 = vsub.f32 %v509_v39, %v540_v61  ;;  %v569_v1 = vsel %vm513_vm4, %v557_v62, 0.0  ;;  %v563_v2 = vsel %vm513_vm4, %v555_v63, 0.0  ;;  %v691_v39 = vld [vmem:[#allocation4 + $0x38] sm:$0xff] }
 0x238   : > { %570 = vadd.xlane.f32.xlu0 %v569_v1  ;;  %v525_v3 = vpop.xlane.xlu1 %524  ;;  %564 = vadd.xlane.f32.xlu1 %v563_v2  ;;  %v4153_v40 = vpack.c.bf16 %v691_v39, %v690_v37 }
 0x239   : > { %v542_v5 = vmul.f32 0.03125, %v525_v3  ;;  %v556_v7 = vmul.f32 %v4789_v0, %v4789_v0 }
 0x23a   : > { %4154 = vmatpush3.bf16.msra.mxu1 %v4153_v40 }
 0x23b   : > { %v4795_v8 = vsub.f32 %v510_v42, %v542_v5  ;;  %v566_v9 = vsel %vm513_vm4, %v556_v7, 0.0  ;;  %v693_v42 = vld [vmem:[#allocation4 + $0x48] sm:$0xff]  ;;  %4155 = vmatprep.subr.bf16.mxu1 %v4586_v4 }
 0x23c   : > { %v528_v10 = vpop.xlane.xlu1 %527  ;;  %567 = vadd.xlane.f32.xlu1 %v566_v9  ;;  %v4156_v43 = vpack.c.bf16 %v693_v42, %v692_v41  ;;  %v3729_v42 = vld [vmem:[%s5506_s3 + $0x1] ss:$0 sm:$0xff] }
 0x23d   : > { %v543_v11 = vmul.f32 0.03125, %v528_v10  ;;  %v558_v12 = vmul.f32 %v4795_v8, %v4795_v8 }
 0x23e   : > { %4157 = vmatpush3.bf16.msra.mxu1 %v4156_v43 }
 0x23f   : > { %v4800_v13 = vsub.f32 %v501_v45, %v543_v11  ;;  %v572_v14 = vsel %vm513_vm4, %v558_v12, 0.0  ;;  %4158 = vmatprep.subr.bf16.mxu1 %v4586_v4 }
 0x240   : > { %v534_v15 = vpop.xlane.xlu1 %533  ;;  %573 = vadd.xlane.f32.xlu1 %v572_v14 }
 0x241   : > { %v545_v16 = vmul.f32 0.03125, %v534_v15  ;;  %v559_v17 = vmul.f32 %v4800_v13, %v4800_v13 }
 0x243   : > { %v4805_v18 = vsub.f32 %v508_v48, %v545_v16  ;;  %v575_v19 = vsel %vm513_vm4, %v559_v17, 0.0 }
 0x244   : > { %576 = vadd.xlane.f32.xlu0 %v575_v19  ;;  %v531_v20 = vpop.xlane.xlu1 %530 }
 0x245   : > { %v544_v22 = vmul.f32 0.03125, %v531_v20  ;;  %v561_v23 = vmul.f32 %v4805_v18, %v4805_v18 }
 0x247   : > { %v4810_v25 = vsub.f32 %v511_v50, %v544_v22  ;;  %v581_v26 = vsel %vm513_vm4, %v561_v23, 0.0 }
 0x248   : > { %582 = vadd.xlane.f32.xlu0 %v581_v26  ;;  %v537_v27 = vpop.xlane.xlu1 %536 }
 0x249   : > { %v546_v28 = vmul.f32 0.03125, %v537_v27  ;;  %v560_v30 = vmul.f32 %v4810_v25, %v4810_v25 }
 0x24b   : > { %v4815_v31 = vsub.f32 %v512_v52, %v546_v28  ;;  %v578_v32 = vsel %vm513_vm4, %v560_v30, 0.0 }
 0x24c   : > { %579 = vadd.xlane.f32.xlu1 %v578_v32 }
 0x24d   : > { %v562_v33 = vmul.f32 %v4815_v31, %v4815_v31 }
 0x24f   : > { %v584_v34 = vsel %vm513_vm4, %v562_v33, 0.0 }
 0x250   : > { %585 = vadd.xlane.f32.xlu1 %v584_v34  ;;  %v694_v34 = vld [vmem:[#allocation4 + $0x50] sm:$0xff] }
 0x2c5   : > { %v565_v44 = vpop.xlane.xlu1 %564  ;;  %v571_v46 = vpop.xlane.xlu0 %570 }
 0x2c6   : > { %v589_v49 = vmul.f32 0.03125, %v571_v46  ;;  %v587_v52 = vmul.f32 0.03125, %v565_v44  ;;  %v3730_v44 = vld [vmem:[%s5506_s3 + $0x2] ss:$0 sm:$0xff] }
 0x2c8   : > { %v597_v54 = vadd.f32 1e-05, %v589_v49  ;;  %v595_v57 = vadd.f32 1e-05, %v587_v52 }
 0x2c9   : > { %v568_v45 = vpop.xlane.xlu1 %567 }
 0x2ca   : > { %v588_v50 = vmul.f32 0.03125, %v568_v45 }
 0x2cc   : > { %v596_v55 = vadd.f32 1e-05, %v588_v50 }
 0x2cd   : > { %v574_v47 = vpop.xlane.xlu1 %573 }
 0x2ce   : > { %v590_v48 = vmul.f32 0.03125, %v574_v47 }
 0x2d0   : > { %v598_v53 = vadd.f32 1e-05, %v590_v48  ;;  %v3732_v48 = vld [vmem:[%s5506_s3 + $0x3] ss:$0 sm:$0xff] }
 0x2d1   : > { %v577_v51 = vpop.xlane.xlu0 %576 }
 0x2d2   : > { %v591_v60 = vmul.f32 0.03125, %v577_v51  ;;  %4374 = vrsqrt.f32 %v598_v53 }
 0x2d3   : > { %4376 = vrsqrt.f32 %v597_v54 }
 0x2d4   : > { %4378 = vrsqrt.f32 %v596_v55  ;;  %v599_v1 = vadd.f32 1e-05, %v591_v60 }
 0x2d5   : > { %v583_v56 = vpop.xlane.xlu0 %582  ;;  %4380 = vrsqrt.f32 %v595_v57 }
 0x2d6   : > { %v593_v61 = vmul.f32 0.03125, %v583_v56 }
 0x2d8   : > { %v601_v62 = vadd.f32 1e-05, %v593_v61 }
 0x2d9   : > { %v580_v63 = vpop.xlane.xlu1 %579 }
 0x2da   : > { %v592_v2 = vmul.f32 0.03125, %v580_v63  ;;  %4382 = vrsqrt.f32 %v601_v62 }
 0x2db   : > { %4384 = vrsqrt.f32 %v599_v1 }
 0x2dc   : > { %v600_v3 = vadd.f32 1e-05, %v592_v2  ;;  %v4375_v10 = vpop.eup %4374 }
 0x2dd   : > { %v586_v5 = vpop.xlane.xlu1 %585  ;;  %v4377_v11 = vpop.eup %4376  ;;  %v614_v15 = vmul.f32 %v4375_v10, %v4795_v8  ;;  %v695_v8 = vld [vmem:[#allocation4 + $0x58] sm:$0xff] }
 0x2de   : > { %v594_v7 = vmul.f32 0.03125, %v586_v5  ;;  %4386 = vrsqrt.f32 %v600_v3  ;;  %v4379_v12 = vpop.eup %4378  ;;  %v613_v19 = vmul.f32 %v4377_v11, %v4781_v58  ;;  %v4159_v36 = vpack.c.bf16 %v695_v8, %v694_v34 }
 0x2df   : > { %v4381_v14 = vpop.eup %4380  ;;  %v612_v17 = vmul.f32 %v4379_v12, %v4789_v0 }
 0x2e0   : > { %v602_v9 = vadd.f32 1e-05, %v594_v7  ;;  %v611_v20 = vmul.f32 %v4381_v14, %v4783_v59  ;;  %4160 = vmatpush3.bf16.msra.mxu1 %v4159_v36 }
 0x2e1   : > { %v627_v23 = vcombine.low %v612_v17, %v614_v15  ;;  %4173 = vmatprep.subr.bf16.mxu1 %v4586_v4 }
 0x2e2   : > { %4388 = vrsqrt.f32 %v602_v9  ;;  %v619_v30 = vcombine.low %v611_v20, %v613_v19 }
 0x2e3   : > { %v634_v33 = vrot.slane %v627_v23, %v4754_v24 }
 0x2e4   : > { %v4383_v16 = vpop.eup %4382  ;;  %v626_v59 = vrot.slane %v619_v30, %v4754_v24 }
 0x2e5   : > { %v4385_v22 = vpop.eup %4384  ;;  %v617_v26 = vmul.f32 %v4383_v16, %v4805_v18 }
 0x2e6   : > { %v615_v28 = vmul.f32 %v4385_v22, %v4800_v13  ;;  %v651_v38 = vcombine.low %v626_v59, %v634_v33 }
 0x2e8   : > { %v4387_v27 = vpop.eup %4386  ;;  %v635_v58 = vcombine.low %v615_v28, %v617_v26  ;;  %v658_v40 = vrot.slane %v651_v38, %v4759_v29 }
 0x2e9   : > { %v616_v35 = vmul.f32 %v4387_v27, %v4810_v25 }
 0x2ea   : > { %v642_v13 = vrot.slane %v635_v58, %v4754_v24 }
 0x2ec   : > { %v4389_v32 = vpop.eup %4388 }
 0x2ed   : > { %v618_v0 = vmul.f32 %v4389_v32, %v4815_v31 }
 0x2ef   : > { %v643_v37 = vcombine.low %v616_v35, %v618_v0 }
 0x2f1   : > { %v650_v18 = vrot.slane %v643_v37, %v4754_v24 }
 0x2f3   : > { %v659_v39 = vcombine.low %v642_v13, %v650_v18 }
 0x2f5   : > { %v666_v25 = vrot.slane %v659_v39, %v4759_v29 }
 0x2f7   : > { %v668_v41 = vcombine.high %v658_v40, %v666_v25  ;;  %v667_v31 = vcombine.low %v658_v40, %v666_v25 }
 0x2f9   : > { %670 = vrot.lane.b32.xlu0 %v668_v41, %s4592_s27 }
 0x36b   : > { %v671_v43 = vpop.permute.xlu0 %670 }
 0x36c   : > { %v674_v45 = vsel %vm673_vm5, %v667_v31, %v671_v43 }
 0x36d   : > { %v680_v46 = vmul.f32 %v3729_v42, %v674_v45 }
 0x36f   : > { %v686_v47 = vadd.f32 %v3730_v44, %v680_v46 }
 0x371   : > { %3916 = vmatmul.mubr.msk.f32.vlgmr.msra.gmra.mrb[0].mxu1 %vm696_vm6, %v686_v47 }
 0x372   : > { %3945 = vmatprep.mubr.msk.f32.mxu1 %vm4587_vm2, %v4588_v6 }
 0x444   : > { %v766_v49 = vpop.f32.mrb[0].mxu1 }
 0x445   : > { %v774_v50 = vadd.f32 %v3732_v48, %v766_v49  ;;  %v3917_v51 = vpop.f32.mrb[1].mxu1 }
 0x447   : > { %4390 = vtanh.f32 %v774_v50 }
 0x451   : > { %v4391_v52 = vpop.eup %4390 }
 0x452   : > { %777 = vrot.lane.b32.xlu1 %v4391_v52, %s4589_s7  ;;  %v780_v53 = vcombine.high %v4391_v52, %v4588_v6  ;;  %v787_v55 = vrot.slane %v4391_v52, %v4754_v24 }
 0x454   : > { %v794_v63 = vrot.slane %v780_v53, %v4754_v24 }
 0x4c4   : > { %v778_v54 = vpop.permute.xlu1 %777 }
 0x4c5   : > { %v795_v56 = vcombine.high %v778_v54, %v4588_v6  ;;  %v802_v57 = vrot.slane %v778_v54, %v4754_v24 }
 0x4c7   : > { %v809_v60 = vrot.slane %v795_v56, %v4754_v24  ;;  %v810_v61 = vcombine.low %v787_v55, %v802_v57  ;;  %v811_v62 = vcombine.high %v787_v55, %v802_v57 }
 0x4c9   : > { %v825_v1 = vrot.slane %v811_v62, %v4759_v29  ;;  %v818_v2 = vrot.slane %v810_v61, %v4759_v29  ;;  %v826_v3 = vcombine.low %v794_v63, %v809_v60  ;;  %v827_v5 = vcombine.high %v794_v63, %v809_v60  ;;  %v1105_v63 = vld [vmem:[#allocation4 + $0xa0] sm:$0xff] }
 0x4cb   : > { %v852_v7 = vsel %vm513_vm4, %v825_v1, 0.0  ;;  %v846_v9 = vsel %vm513_vm4, %v818_v2, 0.0  ;;  %v843_v10 = vcombine.high %v825_v1, %v4588_v6  ;;  %v842_v11 = vcombine.high %v818_v2, %v4588_v6 }
 0x4cc   : > { %853 = vadd.xlane.f32.xlu0 %v852_v7  ;;  %847 = vadd.xlane.f32.xlu1 %v846_v9  ;;  %v834_v12 = vrot.slane %v826_v3, %v4759_v29  ;;  %v841_v17 = vrot.slane %v827_v5, %v4759_v29  ;;  %v1108_v5 = vld [vmem:[#allocation4 + $0xb8] sm:$0xff]  ;;  %v1018_v7 = vld [vmem:[#allocation4 + $0x60] sm:$0xff]  ;;  %v1019_v9 = vld [vmem:[#allocation4 + $0x68] sm:$0xff] }
 0x4cd   : > { %v855_v14 = vsel %vm513_vm4, %v843_v10, 0.0  ;;  %v849_v15 = vsel %vm513_vm4, %v842_v11, 0.0 }
 0x4ce   : > { %v844_v16 = vcombine.high %v834_v12, %v4588_v6  ;;  %v858_v19 = vsel %vm513_vm4, %v834_v12, 0.0  ;;  %v845_v22 = vcombine.high %v841_v17, %v4588_v6  ;;  %v864_v23 = vsel %vm513_vm4, %v841_v17, 0.0 }
 0x4d0   : > { %856 = vadd.xlane.f32.xlu1 %v855_v14  ;;  %850 = vadd.xlane.f32.xlu0 %v849_v15  ;;  %v861_v20 = vsel %vm513_vm4, %v844_v16, 0.0  ;;  %v867_v26 = vsel %vm513_vm4, %v845_v22, 0.0  ;;  %v1021_v14 = vld [vmem:[#allocation4 + $0x78] sm:$0xff]  ;;  %v1183_v15 = vld [vmem:[#allocation4 + $0xc0] sm:$0xff] }
 0x4d4   : > { %859 = vadd.xlane.f32.xlu0 %v858_v19  ;;  %862 = vadd.xlane.f32.xlu1 %v861_v20  ;;  %v1022_v19 = vld [vmem:[#allocation4 + $0x80] sm:$0xff]  ;;  %v1023_v20 = vld [vmem:[#allocation4 + $0x88] sm:$0xff] }
 0x4d8   : > { %865 = vadd.xlane.f32.xlu0 %v864_v23  ;;  %868 = vadd.xlane.f32.xlu1 %v867_v26  ;;  %v4168_v26 = vpack.c.bf16 %v1023_v20, %v1022_v19 }
 0x559   : > { %v854_v27 = vpop.xlane.xlu0 %853  ;;  %v848_v28 = vpop.xlane.xlu1 %847 }
 0x55a   : > { %v872_v30 = vmul.f32 0.03125, %v854_v27  ;;  %v870_v32 = vmul.f32 0.03125, %v848_v28  ;;  %v282_v27 = vld [vmem:[#allocation2] sm:$0x1] }
 0x55c   : > { %v4876_v33 = vsub.f32 %v825_v1, %v872_v30  ;;  %v4878_v34 = vsub.f32 %v818_v2, %v870_v32  ;;  %v1106_v1 = vld [vmem:[#allocation4 + $0xa8] sm:$0xff]  ;;  %v1107_v2 = vld [vmem:[#allocation4 + $0xb0] sm:$0xff] }
 0x55d   : > { %v857_v8 = vpop.xlane.xlu1 %856  ;;  %v851_v35 = vpop.xlane.xlu0 %850  ;;  %v4174_v3 = vpack.c.bf16 %v1106_v1, %v1105_v63 }
 0x55e   : > { %v873_v0 = vmul.f32 0.03125, %v857_v8  ;;  %v871_v58 = vmul.f32 0.03125, %v851_v35  ;;  %v886_v36 = vmul.f32 %v4878_v34, %v4878_v34  ;;  %v888_v18 = vmul.f32 %v4876_v33, %v4876_v33 }
 0x55f   : > { %4175 = vmatpush3.bf16.msra.mxu1 %v4174_v3 }
 0x560   : > { %v4882_v59 = vsub.f32 %v843_v10, %v873_v0  ;;  %v4884_v37 = vsub.f32 %v842_v11, %v871_v58  ;;  %v894_v13 = vsel %vm513_vm4, %v886_v36, 0.0  ;;  %v900_v44 = vsel %vm513_vm4, %v888_v18, 0.0  ;;  %v1020_v11 = vld [vmem:[#allocation4 + $0x70] sm:$0xff]  ;;  %4176 = vmatprep.subr.bf16.mxu1 %v4586_v4 }
 0x561   : > { %895 = vadd.xlane.f32.xlu0 %v894_v13  ;;  %v860_v38 = vpop.xlane.xlu0 %859  ;;  %v863_v39 = vpop.xlane.xlu1 %862  ;;  %v4162_v10 = vpack.c.bf16 %v1019_v9, %v1018_v7 }
 0x562   : > { %v874_v40 = vmul.f32 0.03125, %v860_v38  ;;  %v875_v25 = vmul.f32 0.03125, %v863_v39  ;;  %v887_v41 = vmul.f32 %v4884_v37, %v4884_v37  ;;  %v889_v31 = vmul.f32 %v4882_v59, %v4882_v59 }
 0x563   : > { %4163 = vmatpush3.bf16.msra.mxu0 %v4162_v10 }
 0x564   : > { %v4893_v42 = vsub.f32 %v834_v12, %v874_v40  ;;  %v4895_v43 = vsub.f32 %v844_v16, %v875_v25  ;;  %v897_v45 = vsel %vm513_vm4, %v887_v41, 0.0  ;;  %v903_v51 = vsel %vm513_vm4, %v889_v31, 0.0  ;;  %v1184_v16 = vld [vmem:[#allocation4 + $0xc8] sm:$0xff]  ;;  %4164 = vmatprep.subr.bf16.mxu0 %v4586_v4 }
 0x565   : > { %901 = vadd.xlane.f32.xlu0 %v900_v44  ;;  %v866_v46 = vpop.xlane.xlu0 %865  ;;  %898 = vadd.xlane.f32.xlu1 %v897_v45  ;;  %v869_v47 = vpop.xlane.xlu1 %868  ;;  %v4177_v12 = vpack.c.bf16 %v1108_v5, %v1107_v2  ;;  %v4180_v23 = vpack.c.bf16 %v1184_v16, %v1183_v15 }
 0x566   : > { %v876_v48 = vmul.f32 0.03125, %v866_v46  ;;  %v877_v49 = vmul.f32 0.03125, %v869_v47  ;;  %v890_v50 = vmul.f32 %v4893_v42, %v4893_v42  ;;  %v891_v55 = vmul.f32 %v4895_v43, %v4895_v43 }
 0x567   : > { %4178 = vmatpush3.bf16.msra.mxu1 %v4177_v12 }
 0x568   : > { %v4902_v52 = vsub.f32 %v841_v17, %v876_v48  ;;  %v4904_v53 = vsub.f32 %v845_v22, %v877_v49  ;;  %v906_v54 = vsel %vm513_vm4, %v890_v50, 0.0  ;;  %v909_v60 = vsel %vm513_vm4, %v891_v55, 0.0  ;;  %v281_v22 = vld [vmem:[%s280_s30] sm:$0x1]  ;;  %4179 = vmatprep.subr.bf16.mxu1 %v4586_v4 }
 0x569   : > { %907 = vadd.xlane.f32.xlu0 %v906_v54  ;;  %904 = vadd.xlane.f32.xlu1 %v903_v51  ;;  %v4165_v17 = vpack.c.bf16 %v1021_v14, %v1020_v11  ;;  %v1024_v14 = vld [vmem:[#allocation4 + $0x90] sm:$0xff] }
 0x56a   : > { %v892_v56 = vmul.f32 %v4902_v52, %v4902_v52  ;;  %v893_v61 = vmul.f32 %v4904_v53, %v4904_v53  ;;  %3946 = vmatmul.mubr.msk.f32.vlgmr.msra.gmra.mrb[2].mxu1 %vm673_vm5, %v281_v22 }
 0x56b   : > { %4166 = vmatpush3.bf16.msra.mxu0 %v4165_v17  ;;  %4181 = vmatpush3.bf16.msra.mxu1 %v4180_v23 }
 0x56c   : > { %v912_v57 = vsel %vm513_vm4, %v892_v56, 0.0  ;;  %v915_v62 = vsel %vm513_vm4, %v893_v61, 0.0  ;;  %4167 = vmatprep.subr.bf16.mxu0 %v4586_v4  ;;  %3952 = vmatprep.mubr.msk.f32.mxu1 %vm4587_vm2, %v4588_v6 }
 0x56d   : > { %913 = vadd.xlane.f32.xlu0 %v912_v57  ;;  %910 = vadd.xlane.f32.xlu1 %v909_v60 }
 0x56e   : > { %4194 = vmatprep.subr.bf16.mxu1 %v4586_v4 }
 0x56f   : > { %4169 = vmatpush3.bf16.msra.mxu0 %v4168_v26 }
 0x570   : > { %4170 = vmatprep.subr.bf16.mxu0 %v4586_v4 }
 0x571   : > { %916 = vadd.xlane.f32.xlu1 %v915_v62 }
 0x572   : > { %3953 = vmatmul.mubr.msk.f32.vlgmr.msra.gmra.mrb[2].mxu1 %vm287_vm3, %v282_v27 }
 0x573   : > { %3990 = vmatprep.mubr.msk.f32.mxu1 %vm4587_vm2, %v4588_v6 }
 0x5ee   : > { %v896_v28 = vpop.xlane.xlu0 %895 }
 0x5ef   : > { %v918_v0 = vmul.f32 0.03125, %v896_v28  ;;  %v3733_v28 = vld [vmem:[%s5506_s3 + $0x4] ss:$0 sm:$0xff] }
 0x5f1   : > { %v926_v40 = vadd.f32 1e-05, %v918_v0 }
 0x5f2   : > { %v902_v30 = vpop.xlane.xlu0 %901  ;;  %v899_v32 = vpop.xlane.xlu1 %898 }
 0x5f3   : > { %v920_v8 = vmul.f32 0.03125, %v902_v30  ;;  %v919_v35 = vmul.f32 0.03125, %v899_v32  ;;  %v3734_v32 = vld [vmem:[%s5506_s3 + $0x5] ss:$0 sm:$0xff] }
 0x5f5   : > { %v928_v58 = vadd.f32 1e-05, %v920_v8  ;;  %v927_v18 = vadd.f32 1e-05, %v919_v35 }
 0x5f6   : > { %v908_v36 = vpop.xlane.xlu0 %907  ;;  %v905_v13 = vpop.xlane.xlu1 %904 }
 0x5f7   : > { %v922_v38 = vmul.f32 0.03125, %v908_v36  ;;  %v921_v39 = vmul.f32 0.03125, %v905_v13  ;;  %4392 = vrsqrt.f32 %v928_v58  ;;  %v1104_v58 = vld [vmem:[%s5506_s3 + $0x7] sm:$0x1]  ;;  %v3736_v13 = vld [vmem:[%s5506_s3 + $0x6] ss:$0 sm:$0xff] }
 0x5f8   : > { %4394 = vrsqrt.f32 %v927_v18 }
 0x5f9   : > { %v929_v25 = vadd.f32 1e-05, %v921_v39  ;;  %v930_v41 = vadd.f32 1e-05, %v922_v38 }
 0x5fa   : > { %v914_v31 = vpop.xlane.xlu0 %913  ;;  %v911_v44 = vpop.xlane.xlu1 %910 }
 0x5fb   : > { %v924_v45 = vmul.f32 0.03125, %v914_v31  ;;  %v923_v46 = vmul.f32 0.03125, %v911_v44  ;;  %4396 = vrsqrt.f32 %v929_v25 }
 0x5fc   : > { %4398 = vrsqrt.f32 %v926_v40 }
 0x5fd   : > { %v932_v47 = vadd.f32 1e-05, %v924_v45  ;;  %v931_v48 = vadd.f32 1e-05, %v923_v46  ;;  %4400 = vrsqrt.f32 %v930_v41 }
 0x5fe   : > { %v917_v49 = vpop.xlane.xlu1 %916 }
 0x5ff   : > { %4402 = vrsqrt.f32 %v932_v47  ;;  %v925_v50 = vmul.f32 0.03125, %v917_v49 }
 0x600   : > { %4404 = vrsqrt.f32 %v931_v48 }
 0x601   : > { %v933_v51 = vadd.f32 1e-05, %v925_v50  ;;  %v4393_v54 = vpop.eup %4392 }
 0x602   : > { %v4395_v55 = vpop.eup %4394  ;;  %v944_v62 = vmul.f32 %v4393_v54, %v4876_v33 }
 0x603   : > { %4406 = vrsqrt.f32 %v933_v51  ;;  %v943_v63 = vmul.f32 %v4395_v55, %v4884_v37 }
 0x605   : > { %v4397_v56 = vpop.eup %4396 }
 0x606   : > { %v4399_v57 = vpop.eup %4398  ;;  %v945_v60 = vmul.f32 %v4397_v56, %v4882_v59  ;;  %v1025_v59 = vld [vmem:[#allocation4 + $0x98] sm:$0xff] }
 0x607   : > { %v4401_v61 = vpop.eup %4400  ;;  %v942_v3 = vmul.f32 %v4399_v57, %v4878_v34  ;;  %v4171_v16 = vpack.c.bf16 %v1025_v59, %v1024_v14 }
 0x608   : > { %v958_v7 = vcombine.low %v943_v63, %v945_v60  ;;  %v946_v9 = vmul.f32 %v4401_v61, %v4893_v42 }
 0x609   : > { %v4403_v1 = vpop.eup %4402  ;;  %v950_v10 = vcombine.low %v942_v3, %v944_v62  ;;  %4172 = vmatpush3.bf16.msra.mxu0 %v4171_v16 }
 0x60a   : > { %v4405_v2 = vpop.eup %4404  ;;  %v948_v5 = vmul.f32 %v4403_v1, %v4902_v52  ;;  %v965_v33 = vrot.slane %v958_v7, %v4754_v24  ;;  %4182 = vmatprep.subr.bf16.mxu0 %v4586_v4 }
 0x60b   : > { %v947_v12 = vmul.f32 %v4405_v2, %v4895_v43  ;;  %v957_v17 = vrot.slane %v950_v10, %v4754_v24 }
 0x60c   : > { %v966_v37 = vcombine.low %v946_v9, %v948_v5 }
 0x60d   : > { %v4407_v11 = vpop.eup %4406  ;;  %v982_v19 = vcombine.low %v957_v17, %v965_v33 }
 0x60e   : > { %v949_v15 = vmul.f32 %v4407_v11, %v4904_v53  ;;  %v973_v42 = vrot.slane %v966_v37, %v4754_v24 }
 0x60f   : > { %v989_v20 = vrot.slane %v982_v19, %v4759_v29 }
 0x610   : > { %v974_v34 = vcombine.low %v947_v12, %v949_v15 }
 0x612   : > { %v981_v52 = vrot.slane %v974_v34, %v4754_v24 }
 0x614   : > { %v990_v43 = vcombine.low %v973_v42, %v981_v52 }
 0x616   : > { %v997_v53 = vrot.slane %v990_v43, %v4759_v29 }
 0x618   : > { %v999_v22 = vcombine.high %v989_v20, %v997_v53  ;;  %v998_v23 = vcombine.low %v989_v20, %v997_v53 }
 0x61a   : > { %1001 = vrot.lane.b32.xlu0 %v999_v22, %s4592_s27 }
 0x645   : > { %v1254_v26 = vpop.f32.mrb[2].mxu1 }
 0x646   : > { %v3954_v27 = vpop.f32.mrb[3].mxu1  ;;  %v4288_v36 = vadd.f32 %v1254_v26, %v1104_v58 }
 0x648   : > { %4408 = vtanh.f32 %v4288_v36 }
 0x652   : > { %v4409_v40 = vpop.eup %4408 }
 0x68c   : > { %v1002_v30 = vpop.permute.xlu0 %1001 }
 0x68d   : > { %v1004_v8 = vsel %vm673_vm5, %v998_v23, %v1002_v30 }
 0x68e   : > { %v1010_v35 = vmul.f32 %v3733_v28, %v1004_v8 }
 0x690   : > { %v1016_v0 = vadd.f32 %v3734_v32, %v1010_v35 }
 0x692   : > { %3935 = vmatmul.mubr.msk.f32.vlgmr.msra.gmra.mrb[2].mxu0 %vm696_vm6, %v1016_v0 }
 0x693   : > { %3971 = vmatprep.mubr.msk.f32.mxu0 %vm4587_vm2, %v4588_v6 }
 0x765   : > { %v1095_v18 = vpop.f32.mrb[2].mxu0 }
 0x766   : > { %v4965_v38 = vadd.f32 %v3736_v13, %v1095_v18  ;;  %v3936_v39 = vpop.f32.mrb[3].mxu0 }
 0x768   : > { %1518 = vrot.lane.b32.xlu0 %v4965_v38, %s4593_s14  ;;  %1512 = vrot.lane.b32.xlu1 %v4965_v38, %s4594_s15 }
 0x76c   : > { %1515 = vrot.lane.b32.xlu1 %v4965_v38, %s4595_s16 }
 0x770   : > { %1261 = vrot.lane.b32.xlu1 %v4409_v40, %s4589_s7 }
 0x7da   : > { %v1519_v25 = vpop.permute.xlu0 %1518  ;;  %v1513_v41 = vpop.permute.xlu1 %1512 }
 0x7db   : > { %v1537_v31 = vcombine.low %v1513_v41, %v1519_v25  ;;  %v1538_v44 = vcombine.high %v1513_v41, %v1519_v25 }
 0x7dd   : > { %v1545_v48 = vrot.slane %v1537_v31, %v4754_v24  ;;  %v1552_v49 = vrot.slane %v1538_v44, %v4754_v24 }
 0x7de   : > { %v1516_v45 = vpop.permute.xlu1 %1515 }
 0x7df   : > { %v1521_v46 = vcombine.low %v4965_v38, %v1516_v45  ;;  %v1522_v47 = vcombine.high %v4965_v38, %v1516_v45 }
 0x7e1   : > { %v1529_v50 = vrot.slane %v1521_v46, %v4754_v24  ;;  %v1536_v51 = vrot.slane %v1522_v47, %v4754_v24 }
 0x7e2   : > { %v1262_v54 = vpop.permute.xlu1 %1261 }
 0x7e3   : > { %v1553_v55 = vcombine.low %v1529_v50, %v1545_v48  ;;  %v1554_v56 = vcombine.high %v1529_v50, %v1545_v48  ;;  %v1569_v57 = vcombine.low %v1536_v51, %v1552_v49  ;;  %v1264_v60 = vcombine.low %v4409_v40, %v1262_v54 }
 0x7e4   : > { %v1570_v1 = vcombine.high %v1536_v51, %v1552_v49 }
 0x7e5   : > { %v1561_v61 = vrot.slane %v1553_v55, %v4759_v29  ;;  %v1568_v62 = vrot.slane %v1554_v56, %v4759_v29  ;;  %v1271_v63 = vrot.slane %v1264_v60, %v4759_v29  ;;  %v1577_v5 = vrot.slane %v1569_v57, %v4759_v29 }
 0x7e6   : > { %v1584_v11 = vrot.slane %v1570_v1, %v4759_v29 }
 0x7e7   : > { %v1590_v2 = vsel %vm1589_vm7, %v1561_v61, -inf  ;;  %v1586_v3 = vcombine.high %v1568_v62, %v4588_v6  ;;  %v1272_v7 = vsel %vm513_vm4, %v1271_v63, 0.0  ;;  %v1587_v10 = vcombine.high %v1577_v5, %v4588_v6 }
 0x7e8   : > { %1591 = vmax.xlane.f32.xlu1 %v1590_v2  ;;  %1273 = vadd.xlane.f32.xlu0 %v1272_v7  ;;  %v1596_v12 = vsel %vm1589_vm7, %v1568_v62, -inf  ;;  %v1588_v59 = vcombine.high %v1584_v11, %v4588_v6  ;;  %v1602_v15 = vsel %vm1589_vm7, %v1577_v5, -inf  ;;  %v1585_v33 = vcombine.high %v1561_v61, %v4588_v6  ;;  %v1304_v7 = vld [vmem:[#allocation4 + $0xd8] sm:$0xff] }
 0x7e9   : > { %v1599_v9 = vsel %vm1589_vm7, %v1586_v3, -inf  ;;  %v1605_v14 = vsel %vm1589_vm7, %v1587_v10, -inf  ;;  %v1608_v17 = vsel %vm1589_vm7, %v1584_v11, -inf }
 0x7ea   : > { %v1611_v37 = vsel %vm1589_vm7, %v1588_v59, -inf  ;;  %v1593_v16 = vsel %vm1589_vm7, %v1585_v33, -inf }
 0x7ec   : > { %1600 = vmax.xlane.f32.xlu1 %v1599_v9  ;;  %1597 = vmax.xlane.f32.xlu0 %v1596_v12  ;;  %v1305_v9 = vld [vmem:[#allocation4 + $0xe0] sm:$0xff] }
 0x7f0   : > { %1606 = vmax.xlane.f32.xlu1 %v1605_v14  ;;  %1603 = vmax.xlane.f32.xlu0 %v1602_v15  ;;  %v1307_v14 = vld [vmem:[#allocation4 + $0xf0] sm:$0xff] }
 0x7f4   : > { %1612 = vmax.xlane.f32.xlu1 %v1611_v37  ;;  %1594 = vmax.xlane.f32.xlu0 %v1593_v16 }
 0x7f8   : > { %1609 = vmax.xlane.f32.xlu0 %v1608_v17 }
 0x875   : > { %v1592_v34 = vpop.xlane.xlu1 %1591  ;;  %v1274_v42 = vpop.xlane.xlu0 %1273 }
 0x876   : > { %v1614_v52 = vsub.f32 %v1561_v61, %v1592_v34  ;;  %v1275_v19 = vmul.f32 0.03125, %v1274_v42  ;;  %v1309_v34 = vld [vmem:[#allocation4 + $0x100] sm:$0xff]  ;;  %v1310_v42 = vld [vmem:[#allocation4 + $0x108] sm:$0xff] }
 0x878   : > { %v1622_v43 = vmul.f32 1.442695, %v1614_v52  ;;  %v4998_v20 = vsub.f32 %v1271_v63, %v1275_v19  ;;  %v4192_v52 = vpack.c.bf16 %v1310_v42, %v1309_v34  ;;  %v1925_v42 = vld [vmem:[#allocation4 + $0x160] sm:$0xff] }
 0x879   : > { %v1598_v53 = vpop.xlane.xlu0 %1597  ;;  %v1601_v22 = vpop.xlane.xlu1 %1600 }
 0x87a   : > { %4410 = vpow2.f32 %v1622_v43  ;;  %v1616_v23 = vsub.f32 %v1568_v62, %v1598_v53  ;;  %v1277_v26 = vmul.f32 %v4998_v20, %v4998_v20  ;;  %v1617_v35 = vsub.f32 %v1586_v3, %v1601_v22 }
 0x87c   : > { %v1626_v27 = vmul.f32 1.442695, %v1616_v23  ;;  %v1278_v28 = vsel %vm513_vm4, %v1277_v26, 0.0  ;;  %v1628_v18 = vmul.f32 1.442695, %v1617_v35 }
 0x87d   : > { %1279 = vadd.xlane.f32.xlu0 %v1278_v28  ;;  %v1604_v30 = vpop.xlane.xlu0 %1603  ;;  %v1607_v8 = vpop.xlane.xlu1 %1606 }
 0x87e   : > { %4412 = vpow2.f32 %v1626_v27  ;;  %v1618_v32 = vsub.f32 %v1577_v5, %v1604_v30  ;;  %v1619_v39 = vsub.f32 %v1587_v10, %v1607_v8  ;;  %v1303_v5 = vld [vmem:[#allocation4 + $0xd0] sm:$0xff] }
 0x87f   : > { %v4183_v10 = vpack.c.bf16 %v1304_v7, %v1303_v5 }
 0x880   : > { %v1630_v0 = vmul.f32 1.442695, %v1618_v32  ;;  %v1632_v46 = vmul.f32 1.442695, %v1619_v39 }
 0x881   : > { %v1595_v58 = vpop.xlane.xlu0 %1594  ;;  %v1613_v41 = vpop.xlane.xlu1 %1612  ;;  %4184 = vmatpush3.bf16.msra.mxu0 %v4183_v10 }
 0x882   : > { %4414 = vpow2.f32 %v1630_v0  ;;  %v1615_v36 = vsub.f32 %v1585_v33, %v1595_v58  ;;  %v1621_v47 = vsub.f32 %v1588_v59, %v1613_v41  ;;  %4185 = vmatprep.subr.bf16.mxu0 %v4586_v4  ;;  %v1308_v59 = vld [vmem:[#allocation4 + $0xf8] sm:$0xff] }
 0x883   : > { %v4189_v15 = vpack.c.bf16 %v1308_v59, %v1307_v14  ;;  %v1848_v59 = vld [vmem:[#allocation4 + $0x150] sm:$0xff] }
 0x884   : > { %v5003_v13 = vpop.eup %4410  ;;  %v1624_v40 = vmul.f32 1.442695, %v1615_v36  ;;  %v1636_v51 = vmul.f32 1.442695, %v1621_v47 }
 0x885   : > { %v1638_v25 = vsel %vm1589_vm7, %v5003_v13, 0.0  ;;  %v1610_v31 = vpop.xlane.xlu0 %1609 }
 0x886   : > { %1639 = vadd.xlane.f32.xlu1 %v1638_v25  ;;  %4416 = vpow2.f32 %v1624_v40  ;;  %v1620_v44 = vsub.f32 %v1584_v11, %v1610_v31  ;;  %v1306_v11 = vld [vmem:[#allocation4 + $0xe8] sm:$0xff] }
 0x887   : > { %4418 = vpow2.f32 %v1628_v18  ;;  %v4186_v12 = vpack.c.bf16 %v1306_v11, %v1305_v9 }
 0x888   : > { %v5007_v45 = vpop.eup %4412  ;;  %v1634_v48 = vmul.f32 1.442695, %v1620_v44 }
 0x889   : > { %v1644_v49 = vsel %vm1589_vm7, %v5007_v45, 0.0  ;;  %4187 = vmatpush3.bf16.msra.mxu0 %v4186_v12  ;;  %v1298_v12 = vld [vmem:[%s5506_s3 + $0x8] sm:$0x1] }
 0x88a   : > { %4420 = vpow2.f32 %v1634_v48  ;;  %1645 = vadd.xlane.f32.xlu1 %v1644_v49  ;;  %4188 = vmatprep.subr.bf16.mxu0 %v4586_v4 }
 0x88b   : > { %4422 = vpow2.f32 %v1632_v46 }
 0x88c   : > { %v5011_v50 = vpop.eup %4414  ;;  %4424 = vpow2.f32 %v1636_v51 }
 0x88d   : > { %v1650_v54 = vsel %vm1589_vm7, %v5011_v50, 0.0  ;;  %4190 = vmatpush3.bf16.msra.mxu0 %v4189_v15  ;;  %v1849_v15 = vld [vmem:[#allocation4 + $0x158] sm:$0xff] }
 0x88e   : > { %1651 = vadd.xlane.f32.xlu1 %v1650_v54  ;;  %4191 = vmatprep.subr.bf16.mxu0 %v4586_v4 }
 0x890   : > { %v5015_v55 = vpop.eup %4416 }
 0x891   : > { %v1641_v56 = vsel %vm1589_vm7, %v5015_v55, 0.0  ;;  %v4419_v57 = vpop.eup %4418  ;;  %4193 = vmatpush3.bf16.msra.mxu0 %v4192_v52  ;;  %v1926_v52 = vld [vmem:[#allocation4 + $0x168] sm:$0xff] }
 0x892   : > { %1642 = vadd.xlane.f32.xlu0 %v1641_v56  ;;  %v1647_v62 = vsel %vm1589_vm7, %v4419_v57, 0.0  ;;  %4206 = vmatprep.subr.bf16.mxu0 %v4586_v4 }
 0x894   : > { %v5019_v60 = vpop.eup %4420 }
 0x895   : > { %v1656_v61 = vsel %vm1589_vm7, %v5019_v60, 0.0  ;;  %v5024_v63 = vpop.eup %4422 }
 0x896   : > { %1657 = vadd.xlane.f32.xlu1 %v1656_v61  ;;  %1648 = vadd.xlane.f32.xlu0 %v1647_v62  ;;  %v1653_v1 = vsel %vm1589_vm7, %v5024_v63, 0.0  ;;  %v5028_v2 = vpop.eup %4424 }
 0x897   : > { %v1659_v3 = vsel %vm1589_vm7, %v5028_v2, 0.0 }
 0x89a   : > { %1654 = vadd.xlane.f32.xlu0 %v1653_v1 }
 0x89e   : > { %1660 = vadd.xlane.f32.xlu0 %v1659_v3 }
 0x90a   : > { %v1280_v33 = vpop.xlane.xlu0 %1279 }
 0x90b   : > { %v1281_v37 = vmul.f32 0.03125, %v1280_v33  ;;  %v1300_v33 = vld [vmem:[%s5506_s3 + $0x9] sm:$0x1] }
 0x90d   : > { %v1282_v16 = vadd.f32 1e-05, %v1281_v37 }
 0x90f   : > { %4426 = vrsqrt.f32 %v1282_v16 }
 0x913   : > { %v1640_v17 = vpop.xlane.xlu1 %1639 }
 0x917   : > { %v1646_v43 = vpop.xlane.xlu1 %1645 }
 0x918   : > { %4428 = vrcp.f32 %v1646_v43  ;;  %v1927_v43 = vld [vmem:[#allocation4 + $0x170] sm:$0xff] }
 0x919   : > { %v4427_v19 = vpop.eup %4426 }
 0x91a   : > { %v1284_v53 = vmul.f32 %v4427_v19, %v4998_v20  ;;  %v4210_v19 = vpack.c.bf16 %v1926_v52, %v1925_v42 }
 0x91b   : > { %v1652_v26 = vpop.xlane.xlu1 %1651 }
 0x91c   : > { %v5038_v22 = vrot.slane %v1284_v53, %v4759_v29  ;;  %v1928_v53 = vld [vmem:[#allocation4 + $0x178] sm:$0xff] }
 0x91e   : > { %v1292_v23 = vcombine.high %v5038_v22, %v4588_v6 }
 0x91f   : > { %v1643_v27 = vpop.xlane.xlu0 %1642 }
 0x920   : > { %1294 = vrot.lane.b32.xlu1 %v1292_v23, %s4592_s27  ;;  %4430 = vrcp.f32 %v1643_v27  ;;  %v4508_v23 = vld [vmem:[#allocation3] sm:$0xff] }
 0x922   : > { %v4429_v8 = vpop.eup %4428 }
 0x923   : > { %v1649_v28 = vpop.xlane.xlu0 %1648  ;;  %v1658_v30 = vpop.xlane.xlu1 %1657  ;;  %v1667_v39 = vmul.f32 %v4429_v8, %v5007_v45  ;;  %v1302_v8 = vld [vmem:[%s5506_s3 + $0xa] sm:$0x1] }
 0x924   : > { %4432 = vrcp.f32 %v1649_v28 }
 0x925   : > { %4434 = vrcp.f32 %v1640_v17  ;;  %v4207_v17 = vpack.c.bf16 %v1849_v15, %v1848_v59 }
 0x926   : > { %4436 = vrcp.f32 %v1658_v30 }
 0x927   : > { %v1655_v32 = vpop.xlane.xlu0 %1654  ;;  %4438 = vrcp.f32 %v1652_v26 }
 0x928   : > { %4440 = vrcp.f32 %v1655_v32 }
 0x92a   : > { %v4431_v35 = vpop.eup %4430 }
 0x92b   : > { %v1661_v20 = vpop.xlane.xlu0 %1660  ;;  %v1665_v40 = vmul.f32 %v4431_v35, %v5015_v55 }
 0x92c   : > { %4442 = vrcp.f32 %v1661_v20 }
 0x92e   : > { %v4433_v0 = vpop.eup %4432 }
 0x92f   : > { %v4435_v58 = vpop.eup %4434  ;;  %v1669_v36 = vmul.f32 %v4433_v0, %v4419_v57 }
 0x930   : > { %v4437_v18 = vpop.eup %4436  ;;  %v1663_v41 = vmul.f32 %v4435_v58, %v5003_v13 }
 0x931   : > { %v4439_v25 = vpop.eup %4438  ;;  %v1675_v31 = vmul.f32 %v4437_v18, %v5019_v60  ;;  %v1686_v44 = vcombine.low %v1665_v40, %v1669_v36  ;;  %v3742_v18 = vld [vmem:[%s5506_s3 + $0xe] ss:$0 sm:$0xff] }
 0x932   : > { %v4441_v46 = vpop.eup %4440  ;;  %v1671_v47 = vmul.f32 %v4439_v25, %v5011_v50  ;;  %v1678_v48 = vcombine.low %v1663_v41, %v1667_v39 }
 0x933   : > { %v1673_v51 = vmul.f32 %v4441_v46, %v5024_v63  ;;  %v1693_v56 = vrot.slane %v1686_v44, %v4754_v24 }
 0x934   : > { %v1694_v45 = vcombine.low %v1671_v47, %v1675_v31  ;;  %v1685_v55 = vrot.slane %v1678_v48, %v4754_v24 }
 0x936   : > { %v4443_v49 = vpop.eup %4442  ;;  %v1701_v13 = vrot.slane %v1694_v45, %v4754_v24  ;;  %v1711_v61 = vcombine.high %v1685_v55, %v1693_v56  ;;  %v1710_v62 = vcombine.low %v1685_v55, %v1693_v56 }
 0x937   : > { %v1677_v54 = vmul.f32 %v4443_v49, %v5028_v2 }
 0x938   : > { %v1725_v3 = vrot.slane %v1711_v61, %v4759_v29  ;;  %v1718_v2 = vrot.slane %v1710_v62, %v4759_v29 }
 0x939   : > { %v1702_v57 = vcombine.low %v1673_v51, %v1677_v54 }
 0x93b   : > { %v1709_v60 = vrot.slane %v1702_v57, %v4754_v24 }
 0x93d   : > { %v1727_v1 = vcombine.high %v1701_v13, %v1709_v60  ;;  %v1726_v50 = vcombine.low %v1701_v13, %v1709_v60 }
 0x93f   : > { %v1741_v63 = vrot.slane %v1727_v1, %v4759_v29  ;;  %v1734_v5 = vrot.slane %v1726_v50, %v4759_v29 }
 0x941   : > { %v1744_v7 = vcombine.low %v1725_v3, %v1741_v63  ;;  %v1743_v9 = vcombine.high %v1718_v2, %v1734_v5  ;;  %v1742_v10 = vcombine.low %v1718_v2, %v1734_v5  ;;  %v1745_v11 = vcombine.high %v1725_v3, %v1741_v63 }
 0x943   : > { %1751 = vrot.lane.b32.xlu1 %v1744_v7, %s4596_s17  ;;  %1747 = vrot.lane.b32.xlu0 %v1743_v9, %s4597_s23 }
 0x947   : > { %1755 = vrot.lane.b32.xlu1 %v1745_v11, %s4598_s28 }
 0x992   : > { %v1295_v14 = vpop.permute.xlu1 %1294 }
 0x993   : > { %v1297_v37 = vsel %vm673_vm5, %v5038_v22, %v1295_v14  ;;  %v4213_v22 = vpack.c.bf16 %v1928_v53, %v1927_v43 }
 0x994   : > { %v1299_v16 = vmul.f32 %v1298_v12, %v1297_v37 }
 0x996   : > { %v1301_v34 = vadd.f32 %v1300_v33, %v1299_v16 }
 0x998   : > { %3972 = vmatmul.mubr.msk.f32.vlgmr.msra.gmra.mrb[4].mxu0 %vm696_vm6, %v1301_v34 }
 0x999   : > { %4208 = vmatpush3.bf16.msra.mxu0 %v4207_v17  ;;  %3997 = vmatprep.mubr.msk.f32.mxu0 %vm4587_vm2, %v4588_v6 }
 0x99a   : > { %4209 = vmatprep.subr.bf16.mxu0 %v4586_v4 }
 0x99c   : > { %3998 = vmatmul.mubr.msk.f32.vlgmr.msra.gmra.mrb[6].mxu0 %vm287_vm3, %v4508_v23 }
 0x99d   : > { %4211 = vmatpush3.bf16.msra.mxu0 %v4210_v19  ;;  %4008 = vmatprep.mubr.msk.f32.mxu0 %vm4587_vm2, %v4588_v6 }
 0x99e   : > { %4212 = vmatprep.subr.bf16.mxu0 %v4586_v4 }
 0x9a1   : > { %4214 = vmatpush3.bf16.msra.mxu0 %v4213_v22 }
 0x9a2   : > { %4227 = vmatprep.subr.bf16.mxu0 %v4586_v4 }
 0x9b5   : > { %v1748_v26 = vpop.permute.xlu0 %1747  ;;  %v1752_v27 = vpop.permute.xlu1 %1751 }
 0x9b6   : > { %v1759_v28 = vsel %vm1758_vm8, %v1742_v10, %v1748_v26 }
 0x9b7   : > { %v1760_v30 = vsel %vm287_vm3, %v1759_v28, %v1752_v27 }
 0x9b9   : > { %v1756_v32 = vpop.permute.xlu1 %1755 }
 0x9ba   : > { %v5081_v20 = vsel %vm1761_vm9, %v1760_v30, %v1756_v32 }
 0x9bb   : > { %4009 = vmatmul.mubr.msk.f32.vlgmr.msra.gmra.mrb[6].mxu0 %vm673_vm5, %v5081_v20 }
 0x9bc   : > { %4046 = vmatprep.mubr.msk.f32.mxu0 %vm4587_vm2, %v4588_v6 }
 0xa6b   : > { %v1380_v35 = vpop.f32.mrb[4].mxu0 }
 0xa6c   : > { %v1384_v0 = vadd.f32 %v1380_v35, %v1302_v8  ;;  %v3973_v58 = vpop.f32.mrb[5].mxu0 }
 0xa6e   : > { %4444 = vtanh.f32 %v1384_v0 }
 0xa78   : > { %v4445_v36 = vpop.eup %4444 }
 0xa79   : > { %1387 = vrot.lane.b32.xlu0 %v4445_v36, %s4589_s7 }
 0xa8e   : > { %v1998_v39 = vpop.f32.mrb[6].mxu0 }
 0xa8f   : > { %v4289_v40 = vadd.f32 %v3742_v18, %v1998_v39  ;;  %v4010_v25 = vpop.f32.mrb[7].mxu0 }
 0xa91   : > { %4446 = vtanh.f32 %v4289_v40 }
 0xa9b   : > { %v4447_v41 = vpop.eup %4446 }
 0xa9c   : > { %2005 = vrot.lane.b32.xlu1 %v4447_v41, %s4589_s7  ;;  %v2008_v48 = vcombine.high %v4447_v41, %v4588_v6  ;;  %v2015_v51 = vrot.slane %v4447_v41, %v4754_v24 }
 0xa9e   : > { %v2022_v45 = vrot.slane %v2008_v48, %v4754_v24 }
 0xaeb   : > { %v1388_v31 = vpop.permute.xlu0 %1387 }
 0xaec   : > { %v1390_v44 = vcombine.low %v4445_v36, %v1388_v31 }
 0xaee   : > { %v1397_v46 = vrot.slane %v1390_v44, %v4759_v29 }
 0xaf0   : > { %v1398_v47 = vsel %vm513_vm4, %v1397_v46, 0.0 }
 0xaf1   : > { %1399 = vadd.xlane.f32.xlu0 %v1398_v47 }
 0xb0e   : > { %v2006_v49 = vpop.permute.xlu1 %2005 }
 0xb0f   : > { %v2023_v54 = vcombine.high %v2006_v49, %v4588_v6  ;;  %v2030_v56 = vrot.slane %v2006_v49, %v4754_v24 }
 0xb11   : > { %v2037_v55 = vrot.slane %v2023_v54, %v4754_v24  ;;  %v2038_v57 = vcombine.low %v2015_v51, %v2030_v56  ;;  %v2039_v13 = vcombine.high %v2015_v51, %v2030_v56 }
 0xb13   : > { %v2054_v60 = vcombine.low %v2022_v45, %v2037_v55  ;;  %v2053_v61 = vrot.slane %v2039_v13, %v4759_v29  ;;  %v2046_v62 = vrot.slane %v2038_v57, %v4759_v29  ;;  %v2055_v1 = vcombine.high %v2022_v45, %v2037_v55 }
 0xb15   : > { %v2080_v50 = vsel %vm513_vm4, %v2053_v61, 0.0  ;;  %v2074_v3 = vsel %vm513_vm4, %v2046_v62, 0.0  ;;  %v2071_v63 = vcombine.high %v2053_v61, %v4588_v6  ;;  %v2070_v2 = vcombine.high %v2046_v62, %v4588_v6 }
 0xb16   : > { %2081 = vadd.xlane.f32.xlu0 %v2080_v50  ;;  %2075 = vadd.xlane.f32.xlu1 %v2074_v3  ;;  %v2062_v5 = vrot.slane %v2054_v60, %v4759_v29  ;;  %v2069_v11 = vrot.slane %v2055_v1, %v4759_v29 }
 0xb17   : > { %v2083_v7 = vsel %vm513_vm4, %v2071_v63, 0.0  ;;  %v2077_v9 = vsel %vm513_vm4, %v2070_v2, 0.0 }
 0xb18   : > { %v2072_v10 = vcombine.high %v2062_v5, %v4588_v6  ;;  %v2086_v12 = vsel %vm513_vm4, %v2062_v5, 0.0  ;;  %v2073_v59 = vcombine.high %v2069_v11, %v4588_v6  ;;  %v2092_v15 = vsel %vm513_vm4, %v2069_v11, 0.0 }
 0xb1a   : > { %2084 = vadd.xlane.f32.xlu1 %v2083_v7  ;;  %2078 = vadd.xlane.f32.xlu0 %v2077_v9  ;;  %v2089_v14 = vsel %vm513_vm4, %v2072_v10, 0.0  ;;  %v2095_v33 = vsel %vm513_vm4, %v2073_v59, 0.0  ;;  %v1432_v9 = vld [vmem:[#allocation4 + $0x128] sm:$0xff] }
 0xb1e   : > { %2087 = vadd.xlane.f32.xlu0 %v2086_v12  ;;  %2090 = vadd.xlane.f32.xlu1 %v2089_v14  ;;  %v1434_v12 = vld [vmem:[#allocation4 + $0x138] sm:$0xff] }
 0xb22   : > { %2093 = vadd.xlane.f32.xlu0 %v2092_v15  ;;  %2096 = vadd.xlane.f32.xlu1 %v2095_v33 }
 0xb7e   : > { %v1400_v37 = vpop.xlane.xlu0 %1399 }
 0xb7f   : > { %v1401_v16 = vmul.f32 0.03125, %v1400_v37  ;;  %v1435_v37 = vld [vmem:[#allocation4 + $0x140] sm:$0xff] }
 0xb81   : > { %v5119_v17 = vsub.f32 %v1397_v46, %v1401_v16  ;;  %v1436_v16 = vld [vmem:[#allocation4 + $0x148] sm:$0xff] }
 0xb83   : > { %v1403_v34 = vmul.f32 %v5119_v17, %v5119_v17 }
 0xb85   : > { %v1404_v42 = vsel %vm513_vm4, %v1403_v34, 0.0  ;;  %v4204_v34 = vpack.c.bf16 %v1436_v16, %v1435_v37 }
 0xb86   : > { %1405 = vadd.xlane.f32.xlu0 %v1404_v42 }
 0xba3   : > { %v2082_v52 = vpop.xlane.xlu0 %2081  ;;  %v2076_v19 = vpop.xlane.xlu1 %2075 }
 0xba4   : > { %v2100_v43 = vmul.f32 0.03125, %v2082_v52  ;;  %v2098_v53 = vmul.f32 0.03125, %v2076_v19 }
 0xba6   : > { %v5124_v23 = vsub.f32 %v2053_v61, %v2100_v43  ;;  %v5126_v22 = vsub.f32 %v2046_v62, %v2098_v53 }
 0xba7   : > { %v2085_v26 = vpop.xlane.xlu1 %2084  ;;  %v2079_v27 = vpop.xlane.xlu0 %2078 }
 0xba8   : > { %v2101_v28 = vmul.f32 0.03125, %v2085_v26  ;;  %v2099_v30 = vmul.f32 0.03125, %v2079_v27  ;;  %v2114_v32 = vmul.f32 %v5126_v22, %v5126_v22  ;;  %v2116_v58 = vmul.f32 %v5124_v23, %v5124_v23 }
 0xbaa   : > { %v5130_v8 = vsub.f32 %v2071_v63, %v2101_v28  ;;  %v5132_v35 = vsub.f32 %v2070_v2, %v2099_v30  ;;  %v2122_v0 = vsel %vm513_vm4, %v2114_v32, 0.0  ;;  %v2128_v47 = vsel %vm513_vm4, %v2116_v58, 0.0  ;;  %v1429_v63 = vld [vmem:[#allocation4 + $0x110] sm:$0xff]  ;;  %v1430_v2 = vld [vmem:[#allocation4 + $0x118] sm:$0xff] }
 0xbab   : > { %v2088_v36 = vpop.xlane.xlu0 %2087  ;;  %2123 = vadd.xlane.f32.xlu1 %v2122_v0  ;;  %v2091_v18 = vpop.xlane.xlu1 %2090  ;;  %v4195_v7 = vpack.c.bf16 %v1430_v2, %v1429_v63 }
 0xbac   : > { %v2102_v39 = vmul.f32 0.03125, %v2088_v36  ;;  %v2103_v40 = vmul.f32 0.03125, %v2091_v18  ;;  %v2115_v25 = vmul.f32 %v5132_v35, %v5132_v35  ;;  %v2117_v41 = vmul.f32 %v5130_v8, %v5130_v8 }
 0xbad   : > { %4196 = vmatpush3.bf16.msra.mxu1 %v4195_v7 }
 0xbae   : > { %v5141_v31 = vsub.f32 %v2062_v5, %v2102_v39  ;;  %v5143_v44 = vsub.f32 %v2072_v10, %v2103_v40  ;;  %v2125_v46 = vsel %vm513_vm4, %v2115_v25, 0.0  ;;  %v2131_v45 = vsel %vm513_vm4, %v2117_v41, 0.0  ;;  %v1431_v5 = vld [vmem:[#allocation4 + $0x120] sm:$0xff]  ;;  %4197 = vmatprep.subr.bf16.mxu1 %v4586_v4 }
 0xbaf   : > { %2126 = vadd.xlane.f32.xlu0 %v2125_v46  ;;  %v2094_v48 = vpop.xlane.xlu0 %2093  ;;  %2129 = vadd.xlane.f32.xlu1 %v2128_v47  ;;  %v2097_v49 = vpop.xlane.xlu1 %2096  ;;  %v4198_v10 = vpack.c.bf16 %v1432_v9, %v1431_v5 }
 0xbb0   : > { %v2104_v51 = vmul.f32 0.03125, %v2094_v48  ;;  %v2105_v54 = vmul.f32 0.03125, %v2097_v49  ;;  %v2118_v56 = vmul.f32 %v5141_v31, %v5141_v31  ;;  %v2119_v60 = vmul.f32 %v5143_v44, %v5143_v44 }
 0xbb1   : > { %4199 = vmatpush3.bf16.msra.mxu1 %v4198_v10 }
 0xbb2   : > { %v5150_v55 = vsub.f32 %v2069_v11, %v2104_v51  ;;  %v5152_v57 = vsub.f32 %v2073_v59, %v2105_v54  ;;  %v2134_v13 = vsel %vm513_vm4, %v2118_v56, 0.0  ;;  %v2137_v1 = vsel %vm513_vm4, %v2119_v60, 0.0  ;;  %v1433_v11 = vld [vmem:[#allocation4 + $0x130] sm:$0xff]  ;;  %4200 = vmatprep.subr.bf16.mxu1 %v4586_v4 }
 0xbb3   : > { %2132 = vadd.xlane.f32.xlu0 %v2131_v45  ;;  %2135 = vadd.xlane.f32.xlu1 %v2134_v13  ;;  %v4201_v14 = vpack.c.bf16 %v1434_v12, %v1433_v11 }
 0xbb4   : > { %v2120_v61 = vmul.f32 %v5150_v55, %v5150_v55  ;;  %v2121_v50 = vmul.f32 %v5152_v57, %v5152_v57 }
 0xbb5   : > { %4202 = vmatpush3.bf16.msra.mxu1 %v4201_v14 }
 0xbb6   : > { %v2140_v62 = vsel %vm513_vm4, %v2120_v61, 0.0  ;;  %v2143_v3 = vsel %vm513_vm4, %v2121_v50, 0.0  ;;  %4203 = vmatprep.subr.bf16.mxu1 %v4586_v4 }
 0xbb7   : > { %2141 = vadd.xlane.f32.xlu1 %v2140_v62  ;;  %2138 = vadd.xlane.f32.xlu0 %v2137_v1 }
 0xbb9   : > { %4205 = vmatpush3.bf16.msra.mxu1 %v4204_v34 }
 0xbba   : > { %4215 = vmatprep.subr.bf16.mxu1 %v4586_v4 }
 0xbbb   : > { %2144 = vadd.xlane.f32.xlu0 %v2143_v3 }
 0xc13   : > { %v1406_v59 = vpop.xlane.xlu0 %1405 }
 0xc14   : > { %v1407_v15 = vmul.f32 0.03125, %v1406_v59 }
 0xc16   : > { %v1408_v33 = vadd.f32 1e-05, %v1407_v15 }
 0xc18   : > { %4448 = vrsqrt.f32 %v1408_v33 }
 0xc22   : > { %v4449_v42 = vpop.eup %4448 }
 0xc23   : > { %v1410_v52 = vmul.f32 %v4449_v42, %v5119_v17 }
 0xc25   : > { %v5170_v19 = vrot.slane %v1410_v52, %v4759_v29 }
 0xc27   : > { %v1418_v43 = vcombine.high %v5170_v19, %v4588_v6 }
 0xc29   : > { %1420 = vrot.lane.b32.xlu1 %v1418_v43, %s4592_s27 }
 0xc38   : > { %v2124_v53 = vpop.xlane.xlu1 %2123 }
 0xc39   : > { %v2146_v32 = vmul.f32 0.03125, %v2124_v53  ;;  %v2246_v53 = vld [vmem:[#allocation4 + $0x180] sm:$0xff] }
 0xc3b   : > { %v2154_v40 = vadd.f32 1e-05, %v2146_v32 }
 0xc3c   : > { %v2127_v26 = vpop.xlane.xlu0 %2126  ;;  %v2130_v27 = vpop.xlane.xlu1 %2129 }
 0xc3d   : > { %v2147_v28 = vmul.f32 0.03125, %v2127_v26  ;;  %v2148_v30 = vmul.f32 0.03125, %v2130_v27  ;;  %v2247_v26 = vld [vmem:[#allocation4 + $0x188] sm:$0xff]  ;;  %v1426_v27 = vld [vmem:[%s5506_s3 + $0xc] sm:$0x1] }
 0xc3e   : > { %v4216_v32 = vpack.c.bf16 %v2247_v26, %v2246_v53 }
 0xc3f   : > { %v2155_v0 = vadd.f32 1e-05, %v2147_v28  ;;  %v2156_v58 = vadd.f32 1e-05, %v2148_v30 }
 0xc40   : > { %v2133_v36 = vpop.xlane.xlu0 %2132  ;;  %v2136_v18 = vpop.xlane.xlu1 %2135 }
 0xc41   : > { %v2149_v39 = vmul.f32 0.03125, %v2133_v36  ;;  %v2150_v17 = vmul.f32 0.03125, %v2136_v18  ;;  %4450 = vrsqrt.f32 %v2155_v0  ;;  %v2249_v36 = vld [vmem:[#allocation4 + $0x198] sm:$0xff] }
 0xc42   : > { %4452 = vrsqrt.f32 %v2156_v58  ;;  %v2248_v58 = vld [vmem:[#allocation4 + $0x190] sm:$0xff] }
 0xc43   : > { %v2157_v25 = vadd.f32 1e-05, %v2149_v39  ;;  %v2158_v47 = vadd.f32 1e-05, %v2150_v17  ;;  %v4219_v18 = vpack.c.bf16 %v2249_v36, %v2248_v58  ;;  %v2250_v39 = vld [vmem:[#allocation4 + $0x1a0] sm:$0xff]  ;;  %v2251_v17 = vld [vmem:[#allocation4 + $0x1a8] sm:$0xff] }
 0xc44   : > { %v2139_v41 = vpop.xlane.xlu0 %2138  ;;  %v2142_v46 = vpop.xlane.xlu1 %2141 }
 0xc45   : > { %4454 = vrsqrt.f32 %v2157_v25  ;;  %v2151_v48 = vmul.f32 0.03125, %v2139_v41  ;;  %v2152_v49 = vmul.f32 0.03125, %v2142_v46  ;;  %v2253_v25 = vld [vmem:[#allocation4 + $0x1b8] sm:$0xff]  ;;  %v3744_v46 = vld [vmem:[%s5506_s3 + $0xf] ss:$0 sm:$0xff] }
 0xc46   : > { %4456 = vrsqrt.f32 %v2154_v40  ;;  %v4222_v40 = vpack.c.bf16 %v2251_v17, %v2250_v39 }
 0xc47   : > { %v2159_v51 = vadd.f32 1e-05, %v2151_v48  ;;  %v2160_v54 = vadd.f32 1e-05, %v2152_v49  ;;  %4458 = vrsqrt.f32 %v2158_v47  ;;  %v3745_v48 = vld [vmem:[%s5506_s3 + $0x10] ss:$0 sm:$0xff] }
 0xc48   : > { %v2145_v56 = vpop.xlane.xlu0 %2144 }
 0xc49   : > { %v2153_v45 = vmul.f32 0.03125, %v2145_v56  ;;  %4460 = vrsqrt.f32 %v2160_v54  ;;  %v1428_v56 = vld [vmem:[%s5506_s3 + $0xd] sm:$0x1] }
 0xc4a   : > { %4462 = vrsqrt.f32 %v2159_v51 }
 0xc4b   : > { %v2161_v13 = vadd.f32 1e-05, %v2153_v45  ;;  %v4451_v60 = vpop.eup %4450 }
 0xc4c   : > { %v4453_v61 = vpop.eup %4452  ;;  %v2171_v3 = vmul.f32 %v4451_v60, %v5132_v35 }
 0xc4d   : > { %4464 = vrsqrt.f32 %v2161_v13  ;;  %v2172_v63 = vmul.f32 %v4453_v61, %v5124_v23  ;;  %v3747_v61 = vld [vmem:[%s5506_s3 + $0x11] ss:$0 sm:$0xff] }
 0xc4f   : > { %v4455_v62 = vpop.eup %4454 }
 0xc50   : > { %v2173_v1 = vmul.f32 %v4455_v62, %v5130_v8  ;;  %v4457_v50 = vpop.eup %4456 }
 0xc51   : > { %v4459_v2 = vpop.eup %4458  ;;  %v2170_v7 = vmul.f32 %v4457_v50, %v5126_v22 }
 0xc52   : > { %v2186_v9 = vcombine.low %v2171_v3, %v2173_v1  ;;  %v2174_v12 = vmul.f32 %v4459_v2, %v5141_v31 }
 0xc53   : > { %v4461_v5 = vpop.eup %4460  ;;  %v2178_v14 = vcombine.low %v2170_v7, %v2172_v63 }
 0xc54   : > { %v4463_v10 = vpop.eup %4462  ;;  %v2176_v11 = vmul.f32 %v4461_v5, %v5150_v55  ;;  %v2193_v35 = vrot.slane %v2186_v9, %v4754_v24 }
 0xc55   : > { %v2175_v15 = vmul.f32 %v4463_v10, %v5143_v44  ;;  %v2185_v23 = vrot.slane %v2178_v14, %v4754_v24 }
 0xc56   : > { %v2194_v33 = vcombine.low %v2174_v12, %v2176_v11 }
 0xc57   : > { %v4465_v59 = vpop.eup %4464  ;;  %v2210_v34 = vcombine.low %v2185_v23, %v2193_v35 }
 0xc58   : > { %v2177_v8 = vmul.f32 %v4465_v59, %v5152_v57  ;;  %v2201_v22 = vrot.slane %v2194_v33, %v4754_v24  ;;  %v1424_v57 = vld [vmem:[%s5506_s3 + $0xb] sm:$0x1] }
 0xc59   : > { %v2217_v31 = vrot.slane %v2210_v34, %v4759_v29 }
 0xc5a   : > { %v2202_v37 = vcombine.low %v2175_v15, %v2177_v8 }
 0xc5c   : > { %v2209_v16 = vrot.slane %v2202_v37, %v4754_v24 }
 0xc5e   : > { %v2218_v55 = vcombine.low %v2201_v22, %v2209_v16 }
 0xc60   : > { %v2225_v42 = vrot.slane %v2218_v55, %v4759_v29 }
 0xc62   : > { %v2227_v52 = vcombine.high %v2217_v31, %v2225_v42  ;;  %v2226_v44 = vcombine.low %v2217_v31, %v2225_v42 }
 0xc64   : > { %2229 = vrot.lane.b32.xlu0 %v2227_v52, %s4592_s27 }
 0xc9b   : > { %v1421_v43 = vpop.permute.xlu1 %1420 }
 0xc9c   : > { %v1423_v28 = vsel %vm673_vm5, %v5170_v19, %v1421_v43  ;;  %v2252_v19 = vld [vmem:[#allocation4 + $0x1b0] sm:$0xff] }
 0xc9d   : > { %v1425_v30 = vmul.f32 %v1424_v57, %v1423_v28  ;;  %v4225_v41 = vpack.c.bf16 %v2253_v25, %v2252_v19 }
 0xc9f   : > { %v1427_v0 = vadd.f32 %v1426_v27, %v1425_v30 }
 0xca1   : > { %3991 = vmatmul.mubr.msk.f32.vlgmr.msra.gmra.mrb[4].mxu1 %vm696_vm6, %v1427_v0 }
 0xca2   : > { %4217 = vmatpush3.bf16.msra.mxu1 %v4216_v32  ;;  %4027 = vmatprep.mubr.msk.f32.mxu1 %vm4587_vm2, %v4588_v6 }
 0xca3   : > { %4218 = vmatprep.subr.bf16.mxu1 %v4586_v4 }
 0xca6   : > { %4220 = vmatpush3.bf16.msra.mxu1 %v4219_v18 }
 0xca7   : > { %4221 = vmatprep.subr.bf16.mxu1 %v4586_v4 }
 0xcaa   : > { %4223 = vmatpush3.bf16.msra.mxu1 %v4222_v40 }
 0xcab   : > { %4224 = vmatprep.subr.bf16.mxu1 %v4586_v4 }
 0xcae   : > { %4226 = vmatpush3.bf16.msra.mxu1 %v4225_v41 }
 0xcaf   : > { %4239 = vmatprep.subr.bf16.mxu1 %v4586_v4 }
 0xcd6   : > { %v2230_v47 = vpop.permute.xlu0 %2229 }
 0xcd7   : > { %v2232_v49 = vsel %vm673_vm5, %v2226_v44, %v2230_v47 }
 0xcd8   : > { %v2238_v51 = vmul.f32 %v3744_v46, %v2232_v49 }
 0xcda   : > { %v2244_v54 = vadd.f32 %v3745_v48, %v2238_v51 }
 0xcdc   : > { %4028 = vmatmul.mubr.msk.f32.vlgmr.msra.gmra.mrb[6].mxu1 %vm696_vm6, %v2244_v54 }
 0xcdd   : > { %4057 = vmatprep.mubr.msk.f32.mxu1 %vm4587_vm2, %v4588_v6 }
 0xd74   : > { %v1506_v45 = vpop.f32.mrb[4].mxu1 }
 0xd75   : > { %v5218_v13 = vadd.f32 %v1506_v45, %v1428_v56  ;;  %v3992_v60 = vpop.f32.mrb[5].mxu1 }
 0xd77   : > { %1767 = vrot.lane.b32.xlu0 %v5218_v13, %s4595_s16 }
 0xdaf   : > { %v2323_v62 = vpop.f32.mrb[6].mxu1 }
 0xdb0   : > { %v2331_v1 = vadd.f32 %v3747_v61, %v2323_v62  ;;  %v4029_v50 = vpop.f32.mrb[7].mxu1 }
 0xdb2   : > { %4466 = vtanh.f32 %v2331_v1 }
 0xdbc   : > { %v4467_v3 = vpop.eup %4466 }
 0xdbd   : > { %2334 = vrot.lane.b32.xlu1 %v4467_v3, %s4589_s7  ;;  %v2337_v63 = vcombine.high %v4467_v3, %v4588_v6  ;;  %v2344_v5 = vrot.slane %v4467_v3, %v4754_v24 }
 0xdbf   : > { %v2351_v10 = vrot.slane %v2337_v63, %v4754_v24 }
 0xdc1   : > { %1764 = vrot.lane.b32.xlu1 %v5218_v13, %s4594_s15 }
 0xdc5   : > { %1770 = vrot.lane.b32.xlu1 %v5218_v13, %s4593_s14 }
 0xde9   : > { %v1768_v59 = vpop.permute.xlu0 %1767 }
 0xdea   : > { %v1773_v33 = vcombine.low %v5218_v13, %v1768_v59 }
 0xdec   : > { %v1780_v52 = vrot.slane %v1773_v33, %v4754_v24 }
 0xe2f   : > { %v2335_v2 = vpop.permute.xlu1 %2334 }
 0xe30   : > { %v2352_v7 = vcombine.high %v2335_v2, %v4588_v6  ;;  %v2359_v9 = vrot.slane %v2335_v2, %v4754_v24 }
 0xe32   : > { %v2366_v11 = vrot.slane %v2352_v7, %v4754_v24  ;;  %v2367_v12 = vcombine.low %v2344_v5, %v2359_v9  ;;  %v2368_v14 = vcombine.high %v2344_v5, %v2359_v9 }
 0xe33   : > { %v1765_v15 = vpop.permute.xlu1 %1764 }
 0xe34   : > { %v2383_v8 = vcombine.low %v2351_v10, %v2366_v11  ;;  %v2375_v35 = vrot.slane %v2367_v12, %v4759_v29  ;;  %v2382_v22 = vrot.slane %v2368_v14, %v4759_v29  ;;  %v2384_v34 = vcombine.high %v2351_v10, %v2366_v11 }
 0xe36   : > { %v2403_v23 = vsel %vm513_vm4, %v2375_v35, 0.0  ;;  %v2399_v37 = vcombine.high %v2375_v35, %v4588_v6  ;;  %v2391_v42 = vrot.slane %v2383_v8, %v4759_v29  ;;  %v2409_v57 = vsel %vm513_vm4, %v2382_v22, 0.0 }
 0xe37   : > { %v1771_v16 = vpop.permute.xlu1 %1770  ;;  %2404 = vadd.xlane.f32.xlu0 %v2403_v23  ;;  %v2400_v43 = vcombine.high %v2382_v22, %v4588_v6  ;;  %v2398_v27 = vrot.slane %v2384_v34, %v4759_v29 }
 0xe38   : > { %v1781_v55 = vcombine.low %v1765_v15, %v1771_v16  ;;  %v2406_v31 = vsel %vm513_vm4, %v2399_v37, 0.0  ;;  %v2415_v26 = vsel %vm513_vm4, %v2391_v42, 0.0  ;;  %v2401_v30 = vcombine.high %v2391_v42, %v4588_v6 }
 0xe39   : > { %2407 = vadd.xlane.f32.xlu1 %v2406_v31  ;;  %v2412_v28 = vsel %vm513_vm4, %v2400_v43, 0.0  ;;  %v2421_v32 = vsel %vm513_vm4, %v2398_v27, 0.0  ;;  %v2402_v36 = vcombine.high %v2398_v27, %v4588_v6 }
 0xe3a   : > { %v1788_v44 = vrot.slane %v1781_v55, %v4754_v24  ;;  %v2418_v58 = vsel %vm513_vm4, %v2401_v30, 0.0 }
 0xe3b   : > { %2410 = vadd.xlane.f32.xlu0 %v2409_v57  ;;  %v2424_v39 = vsel %vm513_vm4, %v2402_v36, 0.0 }
 0xe3c   : > { %v1789_v53 = vcombine.low %v1780_v52, %v1788_v44 }
 0xe3d   : > { %2416 = vadd.xlane.f32.xlu1 %v2415_v26  ;;  %v2576_v26 = vld [vmem:[#allocation4 + $0x1c8] sm:$0xff] }
 0xe3e   : > { %v1796_v0 = vrot.slane %v1789_v53, %v4759_v29  ;;  %v2575_v53 = vld [vmem:[#allocation4 + $0x1c0] sm:$0xff] }
 0xe3f   : > { %2413 = vadd.xlane.f32.xlu0 %v2412_v28  ;;  %v4228_v28 = vpack.c.bf16 %v2576_v26, %v2575_v53 }
 0xe40   : > { %v1797_v18 = vsel %vm1589_vm7, %v1796_v0, -inf }
 0xe41   : > { %2422 = vadd.xlane.f32.xlu1 %v2421_v32  ;;  %4229 = vmatpush3.bf16.msra.mxu0 %v4228_v28  ;;  %v2581_v28 = vld [vmem:[#allocation4 + $0x1f0] sm:$0xff] }
 0xe42   : > { %4230 = vmatprep.subr.bf16.mxu0 %v4586_v4 }
 0xe43   : > { %2419 = vadd.xlane.f32.xlu0 %v2418_v58  ;;  %v2580_v58 = vld [vmem:[#allocation4 + $0x1e8] sm:$0xff] }
 0xe45   : > { %1798 = vmax.xlane.f32.xlu1 %v1797_v18 }
 0xe47   : > { %2425 = vadd.xlane.f32.xlu0 %v2424_v39 }
 0xec4   : > { %v2405_v17 = vpop.xlane.xlu0 %2404 }
 0xec5   : > { %v2427_v40 = vmul.f32 0.03125, %v2405_v17 }
 0xec6   : > { %v2408_v19 = vpop.xlane.xlu1 %2407 }
 0xec7   : > { %v5257_v25 = vsub.f32 %v2375_v35, %v2427_v40  ;;  %v2428_v41 = vmul.f32 0.03125, %v2408_v19 }
 0xec8   : > { %v2411_v46 = vpop.xlane.xlu0 %2410 }
 0xec9   : > { %v5259_v47 = vsub.f32 %v2399_v37, %v2428_v41  ;;  %v2429_v48 = vmul.f32 0.03125, %v2411_v46  ;;  %v2443_v49 = vmul.f32 %v5257_v25, %v5257_v25 }
 0xeca   : > { %v2417_v51 = vpop.xlane.xlu1 %2416 }
 0xecb   : > { %v5263_v54 = vsub.f32 %v2382_v22, %v2429_v48  ;;  %v2431_v56 = vmul.f32 0.03125, %v2417_v51  ;;  %v2451_v45 = vsel %vm513_vm4, %v2443_v49, 0.0  ;;  %v2444_v60 = vmul.f32 %v5259_v47, %v5259_v47 }
 0xecc   : > { %v2414_v61 = vpop.xlane.xlu0 %2413  ;;  %2452 = vadd.xlane.f32.xlu0 %v2451_v45 }
 0xecd   : > { %v5268_v62 = vsub.f32 %v2391_v42, %v2431_v56  ;;  %v2430_v1 = vmul.f32 0.03125, %v2414_v61  ;;  %v2454_v50 = vsel %vm513_vm4, %v2444_v60, 0.0  ;;  %v2445_v3 = vmul.f32 %v5263_v54, %v5263_v54 }
 0xece   : > { %2455 = vadd.xlane.f32.xlu1 %v2454_v50  ;;  %v2423_v63 = vpop.xlane.xlu1 %2422 }
 0xecf   : > { %v5273_v2 = vsub.f32 %v2400_v43, %v2430_v1  ;;  %v2433_v5 = vmul.f32 0.03125, %v2423_v63  ;;  %v2457_v7 = vsel %vm513_vm4, %v2445_v3, 0.0  ;;  %v2447_v9 = vmul.f32 %v5268_v62, %v5268_v62 }
 0xed0   : > { %2458 = vadd.xlane.f32.xlu0 %v2457_v7  ;;  %v2420_v10 = vpop.xlane.xlu0 %2419 }
 0xed1   : > { %v5278_v11 = vsub.f32 %v2398_v27, %v2433_v5  ;;  %v2432_v12 = vmul.f32 0.03125, %v2420_v10  ;;  %v2446_v14 = vmul.f32 %v5273_v2, %v5273_v2  ;;  %v2463_v15 = vsel %vm513_vm4, %v2447_v9, 0.0  ;;  %v2577_v27 = vld [vmem:[#allocation4 + $0x1d0] sm:$0xff] }
 0xed2   : > { %v1799_v59 = vpop.xlane.xlu1 %1798 }
 0xed3   : > { %v5283_v8 = vsub.f32 %v2401_v30, %v2432_v12  ;;  %v1800_v35 = vsub.f32 %v1796_v0, %v1799_v59  ;;  %v2460_v33 = vsel %vm513_vm4, %v2446_v14, 0.0  ;;  %v2449_v23 = vmul.f32 %v5278_v11, %v5278_v11  ;;  %v2578_v30 = vld [vmem:[#allocation4 + $0x1d8] sm:$0xff]  ;;  %v2579_v0 = vld [vmem:[#allocation4 + $0x1e0] sm:$0xff] }
 0xed4   : > { %2461 = vadd.xlane.f32.xlu1 %v2460_v33  ;;  %2464 = vadd.xlane.f32.xlu0 %v2463_v15  ;;  %v2426_v37 = vpop.xlane.xlu0 %2425  ;;  %v4231_v32 = vpack.c.bf16 %v2578_v30, %v2577_v27  ;;  %v2582_v30 = vld [vmem:[#allocation4 + $0x1f8] sm:$0xff] }
 0xed5   : > { %v1801_v22 = vmul.f32 1.442695, %v1800_v35  ;;  %v2434_v16 = vmul.f32 0.03125, %v2426_v37  ;;  %v2448_v34 = vmul.f32 %v5283_v8, %v5283_v8  ;;  %v2469_v31 = vsel %vm513_vm4, %v2449_v23, 0.0 }
 0xed6   : > { %4232 = vmatpush3.bf16.msra.mxu0 %v4231_v32  ;;  %v2662_v32 = vld [vmem:[#allocation4 + $0x270] sm:$0xff] }
 0xed7   : > { %4468 = vpow2.f32 %v1801_v22  ;;  %v5290_v55 = vsub.f32 %v2402_v36, %v2434_v16  ;;  %v2466_v42 = vsel %vm513_vm4, %v2448_v34, 0.0  ;;  %v4234_v36 = vpack.c.bf16 %v2580_v58, %v2579_v0  ;;  %4233 = vmatprep.subr.bf16.mxu0 %v4586_v4 }
 0xed8   : > { %2470 = vadd.xlane.f32.xlu0 %v2469_v31  ;;  %2467 = vadd.xlane.f32.xlu1 %v2466_v42  ;;  %v4237_v58 = vpack.c.bf16 %v2582_v30, %v2581_v28 }
 0xed9   : > { %v2450_v52 = vmul.f32 %v5290_v55, %v5290_v55 }
 0xeda   : > { %4235 = vmatpush3.bf16.msra.mxu0 %v4234_v36  ;;  %v2663_v36 = vld [vmem:[#allocation4 + $0x278] sm:$0xff] }
 0xedb   : > { %v2472_v44 = vsel %vm513_vm4, %v2450_v52, 0.0  ;;  %4236 = vmatprep.subr.bf16.mxu0 %v4586_v4 }
 0xedc   : > { %2473 = vadd.xlane.f32.xlu1 %v2472_v44 }
 0xede   : > { %4238 = vmatpush3.bf16.msra.mxu0 %v4237_v58 }
 0xedf   : > { %4245 = vmatprep.subr.bf16.mxu0 %v4586_v4 }
 0xee1   : > { %v5297_v57 = vpop.eup %4468 }
 0xee2   : > { %v1803_v43 = vsel %vm1589_vm7, %v5297_v57, 0.0 }
 0xee3   : > { %1804 = vadd.xlane.f32.xlu0 %v1803_v43 }
 0xf59   : > { %v2453_v18 = vpop.xlane.xlu0 %2452 }
 0xf5a   : > { %v2475_v41 = vmul.f32 0.03125, %v2453_v18 }
 0xf5b   : > { %v2456_v39 = vpop.xlane.xlu1 %2455 }
 0xf5c   : > { %v2476_v17 = vmul.f32 0.03125, %v2456_v39  ;;  %v2483_v60 = vadd.f32 1e-05, %v2475_v41 }
 0xf5d   : > { %v2459_v40 = vpop.xlane.xlu0 %2458 }
 0xf5e   : > { %v2477_v19 = vmul.f32 0.03125, %v2459_v40  ;;  %v2484_v46 = vadd.f32 1e-05, %v2476_v17  ;;  %v2665_v17 = vld [vmem:[#allocation4 + $0x288] sm:$0xff] }
 0xf60   : > { %v2485_v48 = vadd.f32 1e-05, %v2477_v19  ;;  %4470 = vrsqrt.f32 %v2484_v46 }
 0xf61   : > { %v2462_v49 = vpop.xlane.xlu1 %2461  ;;  %v2465_v51 = vpop.xlane.xlu0 %2464 }
 0xf62   : > { %v2478_v56 = vmul.f32 0.03125, %v2462_v49  ;;  %v2479_v45 = vmul.f32 0.03125, %v2465_v51  ;;  %4472 = vrsqrt.f32 %v2485_v48 }
 0xf64   : > { %v2486_v61 = vadd.f32 1e-05, %v2478_v56  ;;  %v2487_v1 = vadd.f32 1e-05, %v2479_v45 }
 0xf65   : > { %v2468_v50 = vpop.xlane.xlu1 %2467  ;;  %v2471_v3 = vpop.xlane.xlu0 %2470 }
 0xf66   : > { %4474 = vrsqrt.f32 %v2486_v61  ;;  %v2480_v63 = vmul.f32 0.03125, %v2468_v50  ;;  %v2481_v5 = vmul.f32 0.03125, %v2471_v3  ;;  %v3748_v50 = vld [vmem:[%s5506_s3 + $0x12] ss:$0 sm:$0xff] }
 0xf67   : > { %4476 = vrsqrt.f32 %v2483_v60 }
 0xf68   : > { %v2488_v7 = vadd.f32 1e-05, %v2480_v63  ;;  %v2489_v9 = vadd.f32 1e-05, %v2481_v5  ;;  %4478 = vrsqrt.f32 %v2487_v1  ;;  %v2740_v63 = vld [vmem:[#allocation4 + $0x290] sm:$0xff]  ;;  %v2741_v5 = vld [vmem:[#allocation4 + $0x298] sm:$0xff] }
 0xf69   : > { %v2474_v10 = vpop.xlane.xlu1 %2473 }
 0xf6a   : > { %4480 = vrsqrt.f32 %v2488_v7  ;;  %v2482_v12 = vmul.f32 0.03125, %v2474_v10  ;;  %v4471_v59 = vpop.eup %4470  ;;  %v3749_v7 = vld [vmem:[%s5506_s3 + $0x13] ss:$0 sm:$0xff]  ;;  %v4246_v10 = vpack.c.bf16 %v2741_v5, %v2740_v63  ;;  %v3271_v63 = vld [vmem:[#allocation4 + $0x2c0] sm:$0xff] }
 0xf6b   : > { %4482 = vrsqrt.f32 %v2489_v9  ;;  %v2500_v16 = vmul.f32 %v4471_v59, %v5259_v47  ;;  %v3272_v5 = vld [vmem:[#allocation4 + $0x2c8] sm:$0xff] }
 0xf6c   : > { %v2490_v14 = vadd.f32 1e-05, %v2482_v12  ;;  %v4473_v15 = vpop.eup %4472 }
 0xf6d   : > { %v2501_v34 = vmul.f32 %v4473_v15, %v5263_v54 }
 0xf6e   : > { %4484 = vrsqrt.f32 %v2490_v14 }
 0xf70   : > { %v4475_v35 = vpop.eup %4474  ;;  %v1805_v33 = vpop.xlane.xlu0 %1804 }
 0xf71   : > { %v2502_v23 = vmul.f32 %v4475_v35, %v5273_v2  ;;  %4486 = vrcp.f32 %v1805_v33  ;;  %v4477_v37 = vpop.eup %4476 }
 0xf72   : > { %v4479_v22 = vpop.eup %4478  ;;  %v2499_v52 = vmul.f32 %v4477_v37, %v5257_v25  ;;  %v4240_v25 = vpack.c.bf16 %v2663_v36, %v2662_v32  ;;  %v5350_v37 = vld [vmem:[#allocation2] sm:$0x1]  ;;  %v2839_v32 = vsub.s32 0, %v4751_v21  ;;  %v3751_v21 = vld [vmem:[%s5506_s3 + $0x14] ss:$0 sm:$0xff] }
 0xf73   : > { %v2515_v44 = vcombine.low %v2500_v16, %v2502_v23  ;;  %v2503_v26 = vmul.f32 %v4479_v22, %v5268_v62 }
 0xf74   : > { %v4481_v31 = vpop.eup %4480  ;;  %v2507_v53 = vcombine.low %v2499_v52, %v2501_v34  ;;  %4241 = vmatpush3.bf16.msra.mxu1 %v4240_v25  ;;  %v2742_v34 = vld [vmem:[%s5506_s3 + $0x1d] sm:$0x1]  ;;  %v2840_v58 = vrot.slane %v5350_v37, %v2839_v32 }
 0xf75   : > { %v4483_v42 = vpop.eup %4482  ;;  %v2504_v2 = vmul.f32 %v4481_v31, %v5283_v8  ;;  %v2522_v54 = vrot.slane %v2515_v44, %v4754_v24  ;;  %v2664_v8 = vld [vmem:[#allocation4 + $0x280] sm:$0xff]  ;;  %4242 = vmatprep.subr.bf16.mxu1 %v4586_v4 }
 0xf76   : > { %v2505_v43 = vmul.f32 %v4483_v42, %v5278_v11  ;;  %v2514_v11 = vrot.slane %v2507_v53, %v4754_v24  ;;  %v4243_v41 = vpack.c.bf16 %v2665_v17, %v2664_v8  ;;  %v2661_v53 = vld [vmem:[%s5506_s3 + $0x1c] sm:$0x1] }
 0xf78   : > { %v4485_v27 = vpop.eup %4484  ;;  %v2523_v0 = vcombine.low %v2503_v26, %v2505_v43  ;;  %v2539_v19 = vcombine.low %v2514_v11, %v2522_v54  ;;  %4244 = vmatpush3.bf16.msra.mxu1 %v4243_v41 }
 0xf79   : > { %v2506_v47 = vmul.f32 %v4485_v27, %v5290_v55  ;;  %4248 = vmatprep.subr.bf16.mxu1 %v4586_v4 }
 0xf7a   : > { %v2530_v40 = vrot.slane %v2523_v0, %v4754_v24 }
 0xf7b   : > { %v4487_v18 = vpop.eup %4486  ;;  %v2531_v39 = vcombine.low %v2504_v2, %v2506_v47 }
 0xf7c   : > { %v1807_v62 = vmul.f32 %v4487_v18, %v5297_v57  ;;  %v2546_v57 = vrot.slane %v2539_v19, %v4759_v29  ;;  %v2847_v18 = vld [vmem:[#allocation4 + $0x200] sm:$0xff] }
 0xf7d   : > { %v2538_v55 = vrot.slane %v2531_v39, %v4754_v24  ;;  %v2848_v39 = vld [vmem:[#allocation4 + $0x208] sm:$0xff] }
 0xf7e   : > { %v1814_v46 = vrot.slane %v1807_v62, %v4754_v24  ;;  %v4249_v11 = vpack.c.bf16 %v2848_v39, %v2847_v18  ;;  %v3017_v18 = vld [vmem:[%s5506_s3 + $0x17] sm:$0x1] }
 0xf7f   : > { %v2547_v48 = vcombine.low %v2530_v40, %v2538_v55 }
 0xf80   : > { %v1822_v49 = vrot.slane %v1814_v46, %v4759_v29  ;;  %v1815_v60 = vcombine.high %v1814_v46, %v4588_v6  ;;  %v2925_v46 = vld [vmem:[#allocation4 + $0x210] sm:$0xff] }
 0xf81   : > { %v2554_v51 = vrot.slane %v2547_v48, %v4759_v29  ;;  %v2926_v48 = vld [vmem:[#allocation4 + $0x218] sm:$0xff] }
 0xf82   : > { %v1830_v56 = vcombine.high %v1822_v49, %v4588_v6  ;;  %v1829_v24 = vrot.slane %v1815_v60, %v4759_v29  ;;  %v3196_v60 = vld [vmem:[#allocation4 + $0x2a0] sm:$0xff] }
 0xf83   : > { %v2556_v45 = vcombine.high %v2546_v57, %v2554_v51  ;;  %v2555_v61 = vcombine.low %v2546_v57, %v2554_v51  ;;  %v2927_v57 = vld [vmem:[#allocation4 + $0x220] sm:$0xff]  ;;  %v2928_v51 = vld [vmem:[#allocation4 + $0x228] sm:$0xff] }
 0xf84   : > { %1833 = vrot.lane.b32.xlu0 %v1830_v56, %s4597_s23  ;;  %v1831_v1 = vcombine.high %v1829_v24, %v4588_v6 }
 0xf85   : > { %2558 = vrot.lane.b32.xlu1 %v2556_v45, %s4592_s27  ;;  %v4255_v45 = vpack.c.bf16 %v2928_v51, %v2927_v57 }
 0xf89   : > { %1837 = vrot.lane.b32.xlu1 %v1829_v24, %s4596_s17 }
 0xf8d   : > { %1841 = vrot.lane.b32.xlu1 %v1831_v1, %s4598_s28  ;;  %v3269_v1 = vld [vmem:[#allocation4 + $0x2b0] sm:$0xff]  ;;  %s4599_s28 = smov 64  }
 0xff6   : > { %v1834_v12 = vpop.permute.xlu0 %1833 }
 0xff7   : > { %v2559_v3 = vpop.permute.xlu1 %2558  ;;  %v1844_v15 = vsel %vm1758_vm8, %v1822_v49, %v1834_v12  ;;  %v4252_v49 = vpack.c.bf16 %v2926_v48, %v2925_v46 }
 0xff8   : > { %v2561_v9 = vsel %vm673_vm5, %v2555_v61, %v2559_v3  ;;  %v3197_v61 = vld [vmem:[#allocation4 + $0x2a8] sm:$0xff] }
 0xff9   : > { %v2567_v29 = vmul.f32 %v3748_v50, %v2561_v9  ;;  %v4270_v24 = vpack.c.bf16 %v3197_v61, %v3196_v60  ;;  %v3270_v50 = vld [vmem:[#allocation4 + $0x2b8] sm:$0xff]  ;;  %v2846_v9 = vld [vmem:[%s5506_s3 + $0x15] sm:$0x1] }
 0xffa   : > { %v4273_v3 = vpack.c.bf16 %v3270_v50, %v3269_v1  ;;  %v3118_v1 = vld [vmem:[#allocation4 + $0x258] sm:$0xff] }
 0xffb   : > { %v2573_v14 = vadd.f32 %v3749_v7, %v2567_v29  ;;  %v1838_v59 = vpop.permute.xlu1 %1837  ;;  %v4276_v7 = vpack.c.bf16 %v3272_v5, %v3271_v63  ;;  %v3120_v63 = vld [vmem:[#allocation4 + $0x268] sm:$0xff] }
 0xffc   : > { %v1845_v35 = vsel %vm287_vm3, %v1844_v15, %v1838_v59 }
 0xffd   : > { %4047 = vmatmul.mubr.msk.f32.vlgmr.msra.gmra.mrb[8].mxu0 %vm696_vm6, %v2573_v14 }
 0xffe   : > { %4247 = vmatpush3.bf16.msra.mxu0 %v4246_v10  ;;  %4064 = vmatprep.mubr.msk.f32.mxu0 %vm4587_vm2, %v4588_v6 }
 0xfff   : > { %v1842_v33 = vpop.permute.xlu1 %1841  ;;  %4257 = vmatprep.subr.bf16.mxu0 %v4586_v4 }
0x1000   : > { %v5346_v23 = vsel %vm1761_vm9, %v1845_v35, %v1842_v33 }
0x1001   : > { %4058 = vmatmul.mubr.msk.f32.vlgmr.msra.gmra.mrb[8].mxu1 %vm673_vm5, %v5346_v23  ;;  %4065 = vmatmul.mubr.msk.f32.vlgmr.msra.gmra.mrb[10].mxu0 %vm287_vm3, %v5350_v37 }
0x1002   : > { %4071 = vmatprep.mubr.msk.f32.mxu1 %vm4587_vm2, %v4588_v6  ;;  %4093 = vmatprep.mubr.msk.f32.mxu0 %vm4587_vm2, %v4588_v6 }
0x1003   : > { %4250 = vmatpush3.bf16.msra.mxu1 %v4249_v11 }
0x1004   : > { %4251 = vmatprep.subr.bf16.mxu1 %v4586_v4 }
0x10d0   : > { %v5358_v22 = vpop.f32.mrb[8].mxu0 }
0x10d1   : > { %v4048_v16 = vpop.f32.mrb[9].mxu0 }
0x10d4   : > { %v2735_v31 = vpop.f32.mrb[8].mxu1  ;;  %v2809_v42 = vpop.f32.mrb[10].mxu0 }
0x10d5   : > { %v2810_v52 = vadd.f32 %v2809_v42, %v2742_v34  ;;  %v4059_v44 = vpop.f32.mrb[9].mxu1  ;;  %v4066_v43 = vpop.f32.mrb[11].mxu0  ;;  %v2739_v26 = vadd.f32 %v2735_v31, %v2661_v53  ;;  %v3020_v42 = vld [vmem:[#allocation4 + $0x230] sm:$0xff]  ;;  %v3023_v53 = vld [vmem:[#allocation4 + $0x248] sm:$0xff] }
0x10d6   : > { %v3022_v43 = vld [vmem:[#allocation4 + $0x240] sm:$0xff] }
0x10d7   : > { %2821 = vrot.lane.b32.xlu0 %v2810_v52, %s4589_s7  ;;  %v2813_v27 = vadd.f32 %v2810_v52, %v2739_v26  ;;  %v3021_v52 = vld [vmem:[#allocation4 + $0x238] sm:$0xff] }
0x10d8   : > { %v4258_v44 = vpack.c.bf16 %v3021_v52, %v3020_v42  ;;  %v3347_v42 = vld [vmem:[#allocation4 + $0x2e8] sm:$0xff] }
0x10d9   : > { %v3754_v2 = vmul.f32 -1.442695, %v2813_v27  ;;  %v3423_v27 = vld [vmem:[#allocation4 + $0x2f0] sm:$0xff] }
0x10da   : > { %4259 = vmatpush3.bf16.msra.mxu0 %v4258_v44  ;;  %v3195_v44 = vld [vmem:[%s5506_s3 + $0x1e] sm:$0x1] }
0x10db   : > { %4488 = vpow2.f32 %v3754_v2  ;;  %4260 = vmatprep.subr.bf16.mxu0 %v4586_v4  ;;  %v3424_v2 = vld [vmem:[#allocation4 + $0x2f8] sm:$0xff] }
0x10e5   : > { %v4489_v28 = vpop.eup %4488 }
0x10e6   : > { %v2817_v30 = vadd.f32 1.0, %v4489_v28  ;;  %v4285_v28 = vpack.c.bf16 %v3424_v2, %v3423_v27 }
0x10e8   : > { %4490 = vrcp.f32 %v2817_v30  ;;  %v4510_v30 = vld [vmem:[#allocation3] sm:$0xff] }
0x10f2   : > { %v4491_v0 = vpop.eup %4490 }
0x10f3   : > { %v2831_v17 = vsub.f32 1.0, %v4491_v0 }
0x1149   : > { %v2822_v47 = vpop.permute.xlu0 %2821 }
0x114a   : > { %v2824_v54 = vmul.f32 %v4491_v0, %v2822_v47 }
0x114c   : > { %2826 = vrot.lane.b32.xlu1 %v2824_v54, %s4592_s27 }
0x1150   : > { %2841 = vrot.lane.b32.xlu1 %v2840_v58, %s4596_s17 }
0x11be   : > { %v2827_v36 = vpop.permute.xlu1 %2826 }
0x11bf   : > { %v2829_v25 = vadd.f32 %v2827_v36, %v2739_v26  ;;  %v4261_v26 = vpack.c.bf16 %v3023_v53, %v3022_v43  ;;  %v3015_v36 = vld [vmem:[%s5506_s3 + $0x16] sm:$0x1] }
0x11c1   : > { %4492 = vtanh.f32 %v2829_v25  ;;  %4262 = vmatpush3.bf16.msra.mxu0 %v4261_v26 }
0x11c2   : > { %v2842_v8 = vpop.permute.xlu1 %2841  ;;  %4263 = vmatprep.subr.bf16.mxu0 %v4586_v4 }
0x11c3   : > { %v2844_v55 = vmul.f32 %v4491_v0, %v2842_v8 }
0x11cb   : > { %v4493_v62 = vpop.eup %4492 }
0x11cc   : > { %2833 = vrot.lane.b32.xlu0 %v4493_v62, %s4595_s16 }
0x123e   : > { %v2834_v40 = vpop.permute.xlu0 %2833 }
0x123f   : > { %v2836_v19 = vmul.f32 %v2834_v40, %v2831_v17  ;;  %v3019_v17 = vld [vmem:[%s5506_s3 + $0x18] sm:$0x1] }
0x1241   : > { %v5375_v41 = vadd.f32 %v2844_v55, %v2836_v19 }
0x1243   : > { %2850 = vrot.lane.b32.xlu0 %v5375_v41, %s4595_s16 }
0x12b5   : > { %v2851_v56 = vpop.permute.xlu0 %2850 }
0x12b6   : > { %3531 = vst.msk [vmem:[#allocation2] sm:$0x1] %vm3530_vm10, %v2851_v56  ;;  %4072 = vmatmul.mubr.msk.f32.vlgmr.msra.gmra.mrb[10].mxu1 %vm287_vm3, %v2851_v56 }
0x12b7   : > { %4253 = vmatpush3.bf16.msra.mxu1 %v4252_v49  ;;  %4082 = vmatprep.mubr.msk.f32.mxu1 %vm4587_vm2, %v4588_v6  ;;  %v3762_v49 = vld [vmem:[%s5506_s3 + $0x1f] ss:$0 sm:$0xff] }
0x12b8   : > { %4254 = vmatprep.subr.bf16.mxu1 %v4586_v4 }
0x12bb   : > { %4256 = vmatpush3.bf16.msra.mxu1 %v4255_v45 }
0x12bc   : > { %4269 = vmatprep.subr.bf16.mxu1 %v4586_v4 }
0x12be   : > { %4083 = vmatmul.mubr.msk.f32.vlgmr.msra.gmra.mrb[10].mxu1 %vm673_vm5, %v5346_v23 }
0x12bf   : > { %4271 = vmatpush3.bf16.msra.mxu1 %v4270_v24  ;;  %4111 = vmatprep.mubr.msk.f32.mxu1 %vm4587_vm2, %v4588_v6  ;;  %v3117_v24 = vld [vmem:[#allocation4 + $0x250] sm:$0xff] }
0x12c0   : > { %4272 = vmatprep.subr.bf16.mxu1 %v4586_v4  ;;  %v4264_v50 = vpack.c.bf16 %v3118_v1, %v3117_v24 }
0x12c2   : > { %4112 = vmatmul.mubr.msk.f32.vlgmr.msra.gmra.mrb[12].mxu1 %vm287_vm3, %v5350_v37 }
0x12c3   : > { %4274 = vmatpush3.bf16.msra.mxu1 %v4273_v3  ;;  %4122 = vmatprep.mubr.msk.f32.mxu1 %vm4587_vm2, %v4588_v6  ;;  %v3119_v3 = vld [vmem:[#allocation4 + $0x260] sm:$0xff] }
0x12c4   : > { %4275 = vmatprep.subr.bf16.mxu1 %v4586_v4  ;;  %v4267_v5 = vpack.c.bf16 %v3120_v63, %v3119_v3 }
0x12c7   : > { %4277 = vmatpush3.bf16.msra.mxu1 %v4276_v7 }
0x12c8   : > { %4284 = vmatprep.subr.bf16.mxu1 %v4586_v4 }
0x12ca   : > { %4123 = vmatmul.mubr.msk.f32.vlgmr.msra.gmra.mrb[12].mxu1 %vm673_vm5, %v5346_v23 }
0x12cb   : > { %4140 = vmatprep.mubr.msk.f32.mxu1 %vm4587_vm2, %v4588_v6  ;;  %4286 = vmatpush3.bf16.msra.mxu1 %v4285_v28 }
0x12ce   : > { %4141 = vmatmul.mubr.msk.f32.vlgmr.msra.gmra.mrb[14].mxu1 %vm287_vm3, %v4510_v30 }
0x1391   : > { %v2995_v29 = vpop.f32.mrb[10].mxu1 }
0x1392   : > { %v4290_v10 = vadd.f32 %v2995_v29, %v2846_v9  ;;  %v4084_v12 = vpop.f32.mrb[11].mxu1 }
0x1393   : > { %v3112_v12 = vld [vmem:[%s5506_s3 + $0x19] sm:$0x1] }
0x1394   : > { %4494 = vtanh.f32 %v4290_v10 }
0x139d   : > { %v5402_v14 = vpop.f32.mrb[12].mxu1 }
0x139e   : > { %v4495_v59 = vpop.eup %4494  ;;  %v4124_v15 = vpop.f32.mrb[13].mxu1  ;;  %v4291_v26 = vadd.f32 %v5402_v14, %v3195_v44 }
0x139f   : > { %v3002_v35 = vsel %vm3001_vm11, %v4495_v59, 0.0  ;;  %v3344_v15 = vld [vmem:[#allocation4 + $0x2d0] sm:$0xff] }
0x13a0   : > { %3003 = vadd.xlane.f32.xlu1 %v3002_v35  ;;  %v3345_v35 = vld [vmem:[#allocation4 + $0x2d8] sm:$0xff]  ;;  %v3421_v27 = vrot.slane %v4291_v26, %v2839_v32  ;;  %v2660_v32 = vadd.f32 %v3751_v21, %v5358_v22 }
0x13a1   : > { %v3496_v62 = vpop.f32.mrb[14].mxu1 }
0x13a2   : > { %v4142_v8 = vpop.f32.mrb[15].mxu1  ;;  %v3497_v57 = vadd.f32 %v3762_v49, %v3496_v62 }
0x142d   : > { %v3004_v33 = vpop.xlane.xlu1 %3003 }
0x142e   : > { %v3005_v37 = vmul.f32 0.03125, %v3004_v33  ;;  %v3114_v33 = vld [vmem:[%s5506_s3 + $0x1a] sm:$0x1] }
0x1430   : > { %v3006_v16 = vsub.f32 %v4495_v59, %v3005_v37 }
0x1432   : > { %v3007_v34 = vmul.f32 %v3006_v16, %v3006_v16 }
0x1434   : > { %v3008_v31 = vsel %vm3001_vm11, %v3007_v34, 0.0 }
0x1435   : > { %3009 = vadd.xlane.f32.xlu0 %v3008_v31  ;;  %v3346_v31 = vld [vmem:[#allocation4 + $0x2e0] sm:$0xff] }
0x1436   : > { %v4282_v52 = vpack.c.bf16 %v3347_v42, %v3346_v31 }
0x14c2   : > { %v3010_v0 = vpop.xlane.xlu0 %3009 }
0x14c3   : > { %v3011_v47 = vmul.f32 0.03125, %v3010_v0 }
0x14c5   : > { %v3012_v54 = vadd.f32 1e-05, %v3011_v47 }
0x14c7   : > { %4496 = vrsqrt.f32 %v3012_v54 }
0x14d1   : > { %v4497_v58 = vpop.eup %4496 }
0x14d2   : > { %v3014_v25 = vmul.f32 %v4497_v58, %v3006_v16  ;;  %v4279_v16 = vpack.c.bf16 %v3345_v35, %v3344_v15 }
0x14d4   : > { %v3016_v39 = vmul.f32 %v3015_v36, %v3014_v25 }
0x14d6   : > { %v3018_v11 = vadd.f32 %v3017_v18, %v3016_v39 }
0x14d8   : > { %4094 = vmatmul.mubr.msk.f32.vlgmr.msra.gmra.mrb[12].mxu0 %vm673_vm5, %v3018_v11 }
0x14d9   : > { %4104 = vmatprep.mubr.msk.f32.mxu0 %vm4587_vm2, %v4588_v6  ;;  %4265 = vmatpush3.bf16.msra.mxu0 %v4264_v50 }
0x14da   : > { %4266 = vmatprep.subr.bf16.mxu0 %v4586_v4 }
0x14dd   : > { %4268 = vmatpush3.bf16.msra.mxu0 %v4267_v5 }
0x14de   : > { %4278 = vmatprep.subr.bf16.mxu0 %v4586_v4 }
0x15ab   : > { %v3093_v40 = vpop.f32.mrb[12].mxu0 }
0x15ac   : > { %v3097_v55 = vadd.f32 %v3093_v40, %v3019_v17  ;;  %v4095_v19 = vpop.f32.mrb[13].mxu0 }
0x15ae   : > { %4498 = vtanh.f32 %v3097_v55 }
0x15b8   : > { %v4499_v46 = vpop.eup %4498 }
0x15b9   : > { %v3099_v48 = vsel %vm3001_vm11, %v4499_v46, 0.0 }
0x15ba   : > { %3100 = vadd.xlane.f32.xlu0 %v3099_v48 }
0x15d0   : > { %3508 = vrot.lane.b32.xlu0 %v3497_v57, %s4589_s7 }
0x15d4   : > { %3524 = vrot.lane.b32.xlu0 %v4510_v30, %s4596_s17 }
0x15d8   : > { %3537 = vrot.lane.b32.xlu0 %v4965_v38, %s4589_s7 }
0x15dc   : > { %3543 = vrot.lane.b32.xlu0 %v5081_v20, %s4599_s28 }
0x15e0   : > { %3567 = vrot.lane.b32.xlu0 %v5218_v13, %s4592_s27 }
0x1647   : > { %v3101_v51 = vpop.xlane.xlu0 %3100 }
0x1648   : > { %v3102_v56 = vmul.f32 0.03125, %v3101_v51 }
0x164a   : > { %v3103_v45 = vsub.f32 %v4499_v46, %v3102_v56 }
0x164b   : > { %v3509_v54 = vpop.permute.xlu0 %3508 }
0x164c   : > { %v3104_v60 = vmul.f32 %v3103_v45, %v3103_v45 }
0x164e   : > { %v3105_v61 = vsel %vm3001_vm11, %v3104_v60, 0.0 }
0x164f   : > { %3106 = vadd.xlane.f32.xlu1 %v3105_v61  ;;  %v3525_v39 = vpop.permute.xlu0 %3524 }
0x16dc   : > { %v3107_v7 = vpop.xlane.xlu1 %3106 }
0x16dd   : > { %v3108_v9 = vmul.f32 0.03125, %v3107_v7 }
0x16df   : > { %v3109_v29 = vadd.f32 1e-05, %v3108_v9 }
0x16e1   : > { %4500 = vrsqrt.f32 %v3109_v29 }
0x16eb   : > { %v4501_v10 = vpop.eup %4500 }
0x16ec   : > { %v3111_v59 = vmul.f32 %v4501_v10, %v3103_v45 }
0x16ee   : > { %v3113_v37 = vmul.f32 %v3112_v12, %v3111_v59 }
0x16f0   : > { %v3115_v34 = vadd.f32 %v3114_v33, %v3113_v37 }
0x16f2   : > { %4105 = vmatmul.mubr.msk.f32.vlgmr.msra.gmra.mrb[14].mxu0 %vm673_vm5, %v3115_v34 }
0x16f3   : > { %4280 = vmatpush3.bf16.msra.mxu0 %v4279_v16  ;;  %4133 = vmatprep.mubr.msk.f32.mxu0 %vm4587_vm2, %v4588_v6 }
0x16f4   : > { %4281 = vmatprep.subr.bf16.mxu0 %v4586_v4 }
0x16f7   : > { %4283 = vmatpush3.bf16.msra.mxu0 %v4282_v52 }
0x16fa   : > { %4134 = vmatmul.mubr.msk.f32.vlgmr.msra.gmra.mrb[16].mxu0 %vm673_vm5, %v5081_v20 }
0x17c5   : > { %v3190_v43 = vpop.f32.mrb[14].mxu0 }
0x17c6   : > { %v4106_v53 = vpop.f32.mrb[15].mxu0 }
0x17cd   : > { %v3414_v2 = vpop.f32.mrb[16].mxu0 }
0x17ce   : > { %v3422_v28 = vadd.f32 %v3421_v27, %v3414_v2  ;;  %v4135_v6 = vpop.f32.mrb[17].mxu0 }
0x17d0   : > { %v3500_v30 = vadd.f32 %v3497_v57, %v3422_v28 }
0x17d2   : > { %v3764_v4 = vmul.f32 -1.442695, %v3500_v30 }
0x17d4   : > { %4502 = vpow2.f32 %v3764_v4 }
0x17de   : > { %v4503_v0 = vpop.eup %4502 }
0x17df   : > { %v3504_v47 = vadd.f32 1.0, %v4503_v0 }
0x17e1   : > { %4504 = vrcp.f32 %v3504_v47 }
0x17eb   : > { %v4505_v20 = vpop.eup %4504 }
0x17ec   : > { %v3511_v58 = vmul.f32 %v4505_v20, %v3509_v54  ;;  %v3518_v18 = vsub.f32 1.0, %v4505_v20  ;;  %v3527_v62 = vmul.f32 %v4505_v20, %v3525_v39 }
0x17ee   : > { %3513 = vrot.lane.b32.xlu1 %v3511_v58, %s4592_s27 }
0x1860   : > { %v3514_v36 = vpop.permute.xlu1 %3513 }
0x1861   : > { %v3516_v25 = vadd.f32 %v3514_v36, %v3422_v28 }
0x1863   : > { %4506 = vtanh.f32 %v3516_v25 }
0x186d   : > { %v4507_v14 = vpop.eup %4506 }
0x186e   : > { %3520 = vrot.lane.b32.xlu1 %v4507_v14, %s4595_s16 }
0x1872   : > { %3540 = vrot.lane.b32.xlu1 %v4965_v38, %s4592_s27  ;;  %v3116_v38 = vld [vmem:[%s5506_s3 + $0x1b] sm:$0x1]  ;;  %s4600_s27 = smov 89  }
0x1873   : > { %v3194_v22 = vadd.f32 %v3190_v43, %v3116_v38 }
0x1876   : > { %3547 = vrot.lane.b32.xlu1 %v2660_v32, %s4589_s7 }
0x187a   : > { %3564 = vrot.lane.b32.xlu1 %v5218_v13, %s4589_s7 }
0x187e   : > { %3570 = vrot.lane.b32.xlu1 %v5346_v23, %s4599_s28  ;;  %v3538_v23 = vpop.permute.xlu0 %3537 }
0x1882   : > { %v3544_v55 = vpop.permute.xlu0 %3543 }
0x1886   : > { %v3568_v48 = vpop.permute.xlu0 %3567 }
0x18e0   : > { %v3521_v11 = vpop.permute.xlu1 %3520 }
0x18e1   : > { %v3523_v8 = vmul.f32 %v3521_v11, %v3518_v18 }
0x18e3   : > { %v3528_v17 = vadd.f32 %v3527_v62, %v3523_v8 }
0x18e4   : > { %v3541_v13 = vpop.permute.xlu1 %3540 }
0x18e5   : > { %3550 = vrot.lane.b32.xlu0 %v3528_v17, %s4600_s27  ;;  %3533 = vrot.lane.b32.xlu1 %v3528_v17, %s4595_s16  ;;  %v3553_v46 = vsel %vm673_vm5, %v3538_v23, %v3541_v13 }
0x18e6   : > { %v3554_v49 = vsel %vm696_vm6, %v3553_v46, %v3544_v55 }
0x18e8   : > { %v3548_v40 = vpop.permute.xlu1 %3547 }
0x18e9   : > { %3574 = vrot.lane.b32.xlu0 %v3194_v22, %s4589_s7  ;;  %3577 = vrot.lane.b32.xlu1 %v5375_v41, %s4601_s19  ;;  %v3556_v51 = vsel %vm3555_vm12, %v3554_v49, %v3548_v40 }
0x18ea   : > { %v3558_v41 = vsel %vm3557_vm13, %v3556_v51, %v3548_v40 }
0x18ec   : > { %v3565_v19 = vpop.permute.xlu1 %3564 }
0x18ed   : > { %v3580_v24 = vsel %vm673_vm5, %v3565_v19, %v3568_v48 }
0x18f0   : > { %v3571_v57 = vpop.permute.xlu1 %3570 }
0x18f1   : > { %v3581_v1 = vsel %vm696_vm6, %v3580_v24, %v3571_v57 }
0x1957   : > { %v3551_v56 = vpop.permute.xlu0 %3550  ;;  %v3534_v45 = vpop.permute.xlu1 %3533 }
0x1958   : > { %v3560_v60 = vsel %vm3559_vm14, %v3558_v41, %v3551_v56  ;;  %3536 = vst.msk [vmem:[#allocation3] sm:$0xff] %vm287_vm3, %v3534_v45 }
0x1959   : > { %v3562_v61 = vsel %vm3561_vm15, %v3560_v60, 0.0 }
0x195a   : > { %3563 = vst [vmem:[%s4719_s10] sm:$0xff] %v3562_v61 }
0x195b   : > { %v3575_v50 = vpop.permute.xlu0 %3574  ;;  %v3578_v3 = vpop.permute.xlu1 %3577 }
0x195c   : > { %v3582_v63 = vsel %vm3555_vm12, %v3581_v1, %v3575_v50 }
0x195d   : > { %v3583_v5 = vsel %vm3557_vm13, %v3582_v63, %v3578_v3 }
0x195e   : > { %v3585_v7 = vsel %vm3584_vm0, %v3583_v5, 0.0 }
0x195f   : > { %3586 = vst [vmem:[%s258_s8] sm:$0x1] %v3585_v7 }
0x1960 PF: > { %s17_s22 = sadd.s32 1, %s4581_s22   ;;  %s5517_s18 = smov %s4573_s20 }
0x1961   : > { %p14_p9 = scmp.ge.s32.totalorder %s17_s22, 8   ;;  %s5518_s19 = smov %s4577_s21 }
0x1962   : > { %s5519_s20 = smov %s5522_s24  ;;  %s5520_s21 = smov %s5526_s25 }
0x1963   :  { %16 = sbr.rel (!%p14_p9) target bundleno = 3 (0x3), region = 86 }
0x196a   :  { %3634 = vsyncpa [#allocation5], 1 }
0x196b   :  { %3636 = vsyncpa [#allocation5 + $0x1], 1 }

</bundles_post_ra>
